<compile_context>
chip_gen: v7x
topology: tpu7x:2x2x1
jax: 0.10.0
libtpu: 0.0.40
codegen_flags: <defaults>
</compile_context>

<pallas_src>
import functools

import jax
import jax.numpy as jnp
from jax.experimental import pallas as pl
from jax.experimental.pallas import tpu as pltpu

EPS = 1e-5
LANE = 128
# Explicit scoped-VMEM request: lifts v5e's 16 MiB default, stays under v7x's 64 MiB.
VMEM_LIMIT = 48 * 1024 * 1024


def _round_up(x, m):
    return (x + m - 1) // m * m


# ---------------------------------------------------------------------------
# Pallas kernels
# ---------------------------------------------------------------------------
def conv_stats_kernel(x_ref, w_ref, y_ref, sum_ref, sq_ref, *, ksize, stride, ho, wo):
    """KxK conv for one image as ksize^2 shifted bf16 matmuls (f32 accumulate),
    plus per-image per-channel sum / sum-of-squares partials for BatchNorm.

      x_ref   : (1, stride*stride, Hp, Wp, Cin)  phase-decomposed padded image (bf16)
      w_ref   : (ksize, ksize, Cin, Cp)          weights, Cout padded to lane-dense Cp
      y_ref   : (1, ho*wo, Cp)                   raw conv output (bf16)
      sum_ref : (1, 1, Cp)  f32   per-image partial sum   (reduced in the wrapper)
      sq_ref  : (1, 1, Cp)  f32   per-image partial sumsq
    """
    cin = x_ref.shape[-1]
    cp = w_ref.shape[-1]
    acc = jnp.zeros((ho * wo, cp), jnp.float32)
    for dy in range(ksize):
        for dx in range(ksize):
            # Phase decomposition turns the strided shift into a unit-stride slice.
            ph = (dy % stride) * stride + (dx % stride)
            oy, ox = dy // stride, dx // stride
            patch = x_ref[0, ph, oy:oy + ho, ox:ox + wo, :]        # (ho, wo, cin)
            patch = patch.reshape(ho * wo, cin)                    # wo multiple of 8 here
            acc += jnp.dot(patch, w_ref[dy, dx],
                           preferred_element_type=jnp.float32)
    y_ref[0] = acc.astype(y_ref.dtype)
    sum_ref[...] = jnp.sum(acc, axis=0, keepdims=True)[None]
    sq_ref[...] = jnp.sum(acc * acc, axis=0, keepdims=True)[None]


def bn_relu_kernel(y_ref, s_ref, o_ref, out_ref):
    """out = relu(y * scale + offset); scale/offset are the folded BN affine."""
    y = y_ref[...].astype(jnp.float32)
    out_ref[...] = jnp.maximum(y * s_ref[...] + o_ref[...], 0.0).astype(out_ref.dtype)


def bn_add_relu_kernel(y_ref, r_ref, s_ref, o_ref, sr_ref, or_ref, out_ref):
    """out = relu((y*s + o) + (r*sr + or)): bn2 + shortcut (bn or identity) + add + relu."""
    main = y_ref[...].astype(jnp.float32) * s_ref[...] + o_ref[...]
    resid = r_ref[...].astype(jnp.float32) * sr_ref[...] + or_ref[...]
    out_ref[...] = jnp.maximum(main + resid, 0.0).astype(out_ref.dtype)


# ---------------------------------------------------------------------------
# pallas_call wrappers (grid over images, all axes "parallel")
# ---------------------------------------------------------------------------
def _conv_bn_stats(xph, w, ho, wo, ksize, stride):
    n, p, hp, wp, cin = xph.shape
    cp = w.shape[-1]
    kern = functools.partial(conv_stats_kernel, ksize=ksize, stride=stride, ho=ho, wo=wo)
    return pl.pallas_call(
        kern,
        grid=(n,),
        in_specs=[
            pl.BlockSpec((1, p, hp, wp, cin), lambda i: (i, 0, 0, 0, 0)),
            # Constant block index; tile is small so default double-buffering is kept
            # (pl.Buffered(1) would halve its VMEM footprint if it ever mattered).
            pl.BlockSpec((ksize, ksize, cin, cp), lambda i: (0, 0, 0, 0)),
        ],
        out_specs=[
            pl.BlockSpec((1, ho * wo, cp), lambda i: (i, 0, 0)),
            pl.BlockSpec((1, 1, cp), lambda i: (i, 0, 0)),   # per-image BN partials
            pl.BlockSpec((1, 1, cp), lambda i: (i, 0, 0)),
        ],
        out_shape=[
            jax.ShapeDtypeStruct((n, ho * wo, cp), jnp.bfloat16),
            jax.ShapeDtypeStruct((n, 1, cp), jnp.float32),
            jax.ShapeDtypeStruct((n, 1, cp), jnp.float32),
        ],
        compiler_params=pltpu.CompilerParams(
            dimension_semantics=("parallel",),
            vmem_limit_bytes=VMEM_LIMIT),
    )(xph, w)


def _bn_relu(y, scale, offset):
    n, m, cp = y.shape
    return pl.pallas_call(
        bn_relu_kernel,
        grid=(n,),
        in_specs=[
            pl.BlockSpec((1, m, cp), lambda i: (i, 0, 0)),
            pl.BlockSpec((1, 1, cp), lambda i: (0, 0, 0)),
            pl.BlockSpec((1, 1, cp), lambda i: (0, 0, 0)),
        ],
        out_specs=pl.BlockSpec((1, m, cp), lambda i: (i, 0, 0)),
        out_shape=jax.ShapeDtypeStruct((n, m, cp), jnp.bfloat16),
        compiler_params=pltpu.CompilerParams(
            dimension_semantics=("parallel",),
            vmem_limit_bytes=VMEM_LIMIT),
    )(y, scale, offset)


def _bn_add_relu(y, r, s, o, sr, orr):
    n, m, cp = y.shape
    blk = pl.BlockSpec((1, m, cp), lambda i: (i, 0, 0))
    vec = pl.BlockSpec((1, 1, cp), lambda i: (0, 0, 0))
    return pl.pallas_call(
        bn_add_relu_kernel,
        grid=(n,),
        in_specs=[blk, blk, vec, vec, vec, vec],
        out_specs=pl.BlockSpec((1, m, cp), lambda i: (i, 0, 0)),
        out_shape=jax.ShapeDtypeStruct((n, m, cp), jnp.float32),
        compiler_params=pltpu.CompilerParams(
            dimension_semantics=("parallel",),
            vmem_limit_bytes=VMEM_LIMIT),
    )(y, r, s, o, sr, orr)


# ---------------------------------------------------------------------------
# Wrapper-side glue (layout plumbing, tiny per-channel math)
# ---------------------------------------------------------------------------
def _make_phases(x_nhwc, ksize, stride, pad):
    """Spatially pad and phase-decompose an NHWC image so a stride-s conv becomes
    ksize^2 unit-stride shifted matmuls inside the kernel.
    Returns (N, stride*stride, Hp, Wp, C) and the conv output spatial size."""
    n, h, w, c = x_nhwc.shape
    xp = jnp.pad(x_nhwc, ((0, 0), (pad, pad), (pad, pad), (0, 0)))
    hf, wf = h + 2 * pad, w + 2 * pad
    ho = (hf - ksize) // stride + 1
    wo = (wf - ksize) // stride + 1
    hp = pl.cdiv(hf, stride)
    wp = pl.cdiv(wf, stride)
    phases = []
    for r in range(stride):
        for s in range(stride):
            phx = xp[:, r::stride, s::stride, :]
            phx = jnp.pad(phx, ((0, 0), (0, hp - phx.shape[1]),
                                (0, wp - phx.shape[2]), (0, 0)))
            phases.append(phx)
    return jnp.stack(phases, axis=1), ho, wo


def _conv_weight(w_oihw, cin_pad, cout_pad):
    """(Cout, Cin, kh, kw) -> (kh, kw, Cin_pad, Cout_pad) bf16, zero padded."""
    cout, cin, _, _ = w_oihw.shape
    w = jnp.transpose(w_oihw, (2, 3, 1, 0))
    w = jnp.pad(w, ((0, 0), (0, 0), (0, cin_pad - cin), (0, cout_pad - cout)))
    return w.astype(jnp.bfloat16)


def _fold_bn(psum, psq, count, gamma, beta, cpad):
    """Reduce per-image BN partials and fold training-mode BN (batch mean, biased
    variance) into a per-channel scale/offset, zero padded to the lane width."""
    c = gamma.shape[0]
    csum = jnp.sum(psum, axis=0)[0]
    csq = jnp.sum(psq, axis=0)[0]
    mean = csum[:c] / count
    # E[y^2] - mean^2 (biased, like PyTorch training BN). Clamp guards the rare
    # cancellation case; partials are f32 and reduced as a small tree sum.
    var = jnp.maximum(csq[:c] / count - mean * mean, 0.0)
    scale = gamma * jax.lax.rsqrt(var + EPS)
    offset = beta - mean * scale
    pad = (0, cpad - c)
    return (jnp.pad(scale, pad).reshape(1, 1, cpad),
            jnp.pad(offset, pad).reshape(1, 1, cpad))


def init_params(key, cin, cout, stride):
    ks = jax.random.split(key, 9)
    p = {
        "w1": 0.1 * jax.random.normal(ks[0], (cout, cin, 3, 3), jnp.float32),
        "g1": 1.0 + 0.1 * jax.random.normal(ks[1], (cout,), jnp.float32),
        "b1": 0.1 * jax.random.normal(ks[2], (cout,), jnp.float32),
        "w2": 0.1 * jax.random.normal(ks[3], (cout, cout, 3, 3), jnp.float32),
        "g2": 1.0 + 0.1 * jax.random.normal(ks[4], (cout,), jnp.float32),
        "b2": 0.1 * jax.random.normal(ks[5], (cout,), jnp.float32),
    }
    if stride != 1 or cin != cout:
        p["ws"] = 0.1 * jax.random.normal(ks[6], (cout, cin, 1, 1), jnp.float32)
        p["gs"] = 1.0 + 0.1 * jax.random.normal(ks[7], (cout,), jnp.float32)
        p["bs"] = 0.1 * jax.random.normal(ks[8], (cout,), jnp.float32)
    return p


@functools.partial(jax.jit, static_argnames=("stride",))
def residual_block_forward(x_nchw, params, stride):
    n, cin, _, _ = x_nchw.shape
    cout = params["w1"].shape[0]
    cpad = _round_up(cout, LANE)

    # NCHW <-> NHWC kept at the block boundary to match the PyTorch interface.
    # TODO(synk): for chained residual blocks, keep activations NHWC (and bf16) across
    # blocks to drop these two full HBM transpose passes per block.
    x = jnp.transpose(x_nchw, (0, 2, 3, 1))
    xb = x.astype(jnp.bfloat16)

    # ---- conv1 (3x3, stride, pad 1) + batch stats, then fused bn1 + relu ----
    xph1, ho, wo = _make_phases(xb, 3, stride, 1)
    w1 = _conv_weight(params["w1"], cin, cpad)
    y1, s1, q1 = _conv_bn_stats(xph1, w1, ho, wo, 3, stride)
    m = n * ho * wo
    sc1, of1 = _fold_bn(s1, q1, m, params["g1"], params["b1"], cpad)
    a1 = _bn_relu(y1, sc1, of1)                                    # (n, ho*wo, cpad) bf16

    # ---- conv2 (3x3, stride 1, pad 1) + batch stats ----
    # Padded channels of a1 are exactly 0 (w1 / scale / offset are zero-padded), so the
    # padded K rows of w2 contribute nothing.
    a1_img = a1.reshape(n, ho, wo, cpad)
    xph2, _, _ = _make_phases(a1_img, 3, 1, 1)
    w2 = _conv_weight(params["w2"], cpad, cpad)
    y2, s2, q2 = _conv_bn_stats(xph2, w2, ho, wo, 3, 1)
    sc2, of2 = _fold_bn(s2, q2, m, params["g2"], params["b2"], cpad)

    # ---- shortcut: 1x1 projection conv + BN, or identity ----
    if "ws" in params:
        xs = xb[:, ::stride, ::stride, :][:, :ho, :wo, :]          # (n, ho, wo, cin)
        xphs = xs[:, None]                                         # ksize=1 -> single phase
        ws = _conv_weight(params["ws"], cin, cpad)
        yr, sr, qr = _conv_bn_stats(xphs, ws, ho, wo, 1, 1)
        scr, ofr = _fold_bn(sr, qr, m, params["gs"], params["bs"], cpad)
    else:
        # Identity: bf16 residual, channel padding only (no row-padded f32 copy).
        yr = jnp.pad(xb, ((0, 0), (0, 0), (0, 0), (0, cpad - cin))).reshape(n, ho * wo, cpad)
        scr = jnp.ones((1, 1, cpad), jnp.float32)
        ofr = jnp.zeros((1, 1, cpad), jnp.float32)

    # ---- bn2 + shortcut-bn/identity + add + relu (one fused elementwise kernel) ----
    out = _bn_add_relu(y2, yr, sc2, of2, scr, ofr)                 # (n, ho*wo, cpad) f32
    out = out[:, :, :cout].reshape(n, ho, wo, cout)
    return jnp.transpose(out, (0, 3, 1, 2))                        # back to NCHW


# ---------------------------------------------------------------------------
# Pure-JAX f32 reference (PyTorch training-mode semantics) for verification
# ---------------------------------------------------------------------------
def ref_forward(x, params, stride):
    def conv(x, w, s, pad):
        return jax.lax.conv_general_dilated(
            x, w, (s, s), [(pad, pad), (pad, pad)],
            dimension_numbers=("NCHW", "OIHW", "NCHW"),
            precision=jax.lax.Precision.HIGHEST)

    def bn(y, g, b):
        mean = jnp.mean(y, axis=(0, 2, 3), keepdims=True)
        var = jnp.var(y, axis=(0, 2, 3), keepdims=True)   # biased, like PyTorch training BN
        return (y - mean) / jnp.sqrt(var + EPS) * g.reshape(1, -1, 1, 1) + b.reshape(1, -1, 1, 1)

    out = jax.nn.relu(bn(conv(x, params["w1"], stride, 1), params["g1"], params["b1"]))
    out = bn(conv(out, params["w2"], 1, 1), params["g2"], params["b2"])
    if "ws" in params:
        res = bn(conv(x, params["ws"], stride, 0), params["gs"], params["bs"])
    else:
        res = x
    return jax.nn.relu(out + res)


if __name__ == "__main__":
    key = jax.random.PRNGKey(0)
    kx, kp = jax.random.split(key)

    # Tolerance sized for bf16 inputs + bf16 intermediate storage (f32 accumulation),
    # amplified slightly by the BatchNorm normalization.
    TOL = dict(atol=5e-2, rtol=5e-2)

    # Config A: projection shortcut (stride=2, 4 -> 8 channels)
    x = jax.random.normal(kx, (2, 4, 16, 16), jnp.float32)
    params = init_params(kp, 4, 8, stride=2)
    out = jax.block_until_ready(residual_block_forward(x, params, stride=2))
    ref = ref_forward(x, params, 2)
    assert out.shape == (2, 8, 8, 8), out.shape
    assert jnp.allclose(out, ref, **TOL), float(jnp.max(jnp.abs(out - ref)))

    # Config B: identity shortcut (stride=1, 8 -> 8 channels)
    x2 = jax.random.normal(kx, (2, 8, 16, 16), jnp.float32)
    params2 = init_params(kp, 8, 8, stride=1)
    out2 = jax.block_until_ready(residual_block_forward(x2, params2, stride=1))
    ref2 = ref_forward(x2, params2, 1)
    assert out2.shape == (2, 8, 16, 16), out2.shape
    assert jnp.allclose(out2, ref2, **TOL), float(jnp.max(jnp.abs(out2 - ref2)))

    print("KERNEL_OK")
</pallas_src>

<mosaic_0001>
module attributes {stable_mosaic.version = 11 : i64} {
  func.func @conv_stats_kernel(%arg0: i32, %arg1: memref<1x1x8x8x4xbf16, #tpu.memory_space<vmem>>, %arg2: memref<1x1x4x128xbf16, #tpu.memory_space<vmem>>, %arg3: memref<1x64x128xbf16, #tpu.memory_space<vmem>>, %arg4: memref<1x1x128xf32, #tpu.memory_space<vmem>>, %arg5: memref<1x1x128xf32, #tpu.memory_space<vmem>>) attributes {dimension_semantics = [#tpu.dimension_semantics<parallel>], iteration_bounds = array<i64: 2>, scalar_prefetch = 0 : i64, scratch_operands = 0 : i64, tpu.core_type = #tpu.core_type<tc>, window_params = [{transform_indices = @transform_0, window_bounds = array<i64: 1, 1, 8, 8, 4>}, {pipeline_mode = #tpu.pipeline_mode<synchronous>, transform_indices = @transform_1, window_bounds = array<i64: 1, 1, 4, 128>}, {transform_indices = @transform_2, window_bounds = array<i64: 1, 64, 128>}, {transform_indices = @transform_3, window_bounds = array<i64: 1, 1, 128>}, {transform_indices = @transform_4, window_bounds = array<i64: 1, 1, 128>}]} {
    %cst = arith.constant 0.000000e+00 : f32
    %0 = vector.broadcast %cst : f32 to vector<64x128xf32>
    %c0 = arith.constant 0 : index
    %c0_0 = arith.constant 0 : index
    %c0_1 = arith.constant 0 : index
    %c0_2 = arith.constant 0 : index
    %c0_3 = arith.constant 0 : index
    %1 = vector.load %arg1[%c0, %c0_0, %c0_1, %c0_2, %c0_3] : memref<1x1x8x8x4xbf16, #tpu.memory_space<vmem>>, vector<1x1x8x8x4xbf16>
    %2 = vector.shape_cast %1 : vector<1x1x8x8x4xbf16> to vector<8x8x4xbf16>
    %3 = vector.shape_cast %2 : vector<8x8x4xbf16> to vector<64x4xbf16>
    %c0_4 = arith.constant 0 : index
    %c0_5 = arith.constant 0 : index
    %c0_6 = arith.constant 0 : index
    %c0_7 = arith.constant 0 : index
    %4 = vector.load %arg2[%c0_4, %c0_5, %c0_6, %c0_7] : memref<1x1x4x128xbf16, #tpu.memory_space<vmem>>, vector<1x1x4x128xbf16>
    %5 = vector.shape_cast %4 : vector<1x1x4x128xbf16> to vector<4x128xbf16>
    %cst_8 = arith.constant dense<0.000000e+00> : vector<64x128xf32>
    %6 = tpu.matmul %3, %5, %cst_8 {dimension_numbers = #tpu.dot_dimension_numbers<[1], [0], [0], [1], [0, 0, 1, 1], [], []>} : vector<64x4xbf16>, vector<4x128xbf16>, vector<64x128xf32> -> vector<64x128xf32>
    %7 = arith.addf %0, %6 : vector<64x128xf32>
    %8 = arith.truncf %7 : vector<64x128xf32> to vector<64x128xbf16>
    %c0_9 = arith.constant 0 : index
    %c0_10 = arith.constant 0 : index
    %c0_11 = arith.constant 0 : index
    %9 = vector.load %arg3[%c0_9, %c0_10, %c0_11] : memref<1x64x128xbf16, #tpu.memory_space<vmem>>, vector<1x64x128xbf16>
    %10 = vector.shape_cast %9 : vector<1x64x128xbf16> to vector<64x128xbf16>
    %11 = vector.shape_cast %8 : vector<64x128xbf16> to vector<1x64x128xbf16>
    tpu.vector_store %arg3[%c0_9, %c0_10, %c0_11], %11 {strides = array<i32>} : memref<1x64x128xbf16, #tpu.memory_space<vmem>>, vector<1x64x128xbf16>,
    %cst_12 = arith.constant dense<0.000000e+00> : vector<128xf32>
    %12 = vector.multi_reduction <add>, %7, %cst_12 [0] : vector<64x128xf32> to vector<128xf32>
    %13 = vector.shape_cast %12 : vector<128xf32> to vector<1x128xf32>
    %14 = vector.shape_cast %13 : vector<1x128xf32> to vector<1x1x128xf32>
    %c0_13 = arith.constant 0 : index
    %c0_14 = arith.constant 0 : index
    %c0_15 = arith.constant 0 : index
    %15 = vector.load %arg4[%c0_13, %c0_14, %c0_15] : memref<1x1x128xf32, #tpu.memory_space<vmem>>, vector<1x1x128xf32>
    tpu.vector_store %arg4[%c0_13, %c0_14, %c0_15], %14 {strides = array<i32>} : memref<1x1x128xf32, #tpu.memory_space<vmem>>, vector<1x1x128xf32>,
    %16 = arith.mulf %7, %7 : vector<64x128xf32>
    %cst_16 = arith.constant dense<0.000000e+00> : vector<128xf32>
    %17 = vector.multi_reduction <add>, %16, %cst_16 [0] : vector<64x128xf32> to vector<128xf32>
    %18 = vector.shape_cast %17 : vector<128xf32> to vector<1x128xf32>
    %19 = vector.shape_cast %18 : vector<1x128xf32> to vector<1x1x128xf32>
    %c0_17 = arith.constant 0 : index
    %c0_18 = arith.constant 0 : index
    %c0_19 = arith.constant 0 : index
    %20 = vector.load %arg5[%c0_17, %c0_18, %c0_19] : memref<1x1x128xf32, #tpu.memory_space<vmem>>, vector<1x1x128xf32>
    tpu.vector_store %arg5[%c0_17, %c0_18, %c0_19], %19 {strides = array<i32>} : memref<1x1x128xf32, #tpu.memory_space<vmem>>, vector<1x1x128xf32>,
    return
  }
  func.func @transform_0(%arg0: i32) -> (i32, i32, i32, i32, i32) {
    %c0_i32 = arith.constant 0 : i32
    %c0_i32_0 = arith.constant 0 : i32
    %c0_i32_1 = arith.constant 0 : i32
    %c0_i32_2 = arith.constant 0 : i32
    %c0_i32_3 = arith.constant 0 : i32
    return %arg0, %c0_i32, %c0_i32_0, %c0_i32_1, %c0_i32_2 : i32, i32, i32, i32, i32
  }
  func.func @transform_1(%arg0: i32) -> (i32, i32, i32, i32) {
    %c0_i32 = arith.constant 0 : i32
    %c0_i32_0 = arith.constant 0 : i32
    %c0_i32_1 = arith.constant 0 : i32
    %c0_i32_2 = arith.constant 0 : i32
    %c0_i32_3 = arith.constant 0 : i32
    return %c0_i32, %c0_i32_0, %c0_i32_1, %c0_i32_2 : i32, i32, i32, i32
  }
  func.func @transform_2(%arg0: i32) -> (i32, i32, i32) {
    %c0_i32 = arith.constant 0 : i32
    %c0_i32_0 = arith.constant 0 : i32
    %c0_i32_1 = arith.constant 0 : i32
    return %arg0, %c0_i32, %c0_i32_0 : i32, i32, i32
  }
  func.func @transform_3(%arg0: i32) -> (i32, i32, i32) {
    %c0_i32 = arith.constant 0 : i32
    %c0_i32_0 = arith.constant 0 : i32
    %c0_i32_1 = arith.constant 0 : i32
    return %arg0, %c0_i32, %c0_i32_0 : i32, i32, i32
  }
  func.func @transform_4(%arg0: i32) -> (i32, i32, i32) {
    %c0_i32 = arith.constant 0 : i32
    %c0_i32_0 = arith.constant 0 : i32
    %c0_i32_1 = arith.constant 0 : i32
    return %arg0, %c0_i32, %c0_i32_0 : i32, i32, i32
  }
}

module attributes {stable_mosaic.version = 11 : i64} {
  func.func @bn_relu_kernel(%arg0: i32, %arg1: memref<1x64x128xbf16, #tpu.memory_space<vmem>>, %arg2: memref<1x1x128xf32, #tpu.memory_space<vmem>>, %arg3: memref<1x1x128xf32, #tpu.memory_space<vmem>>, %arg4: memref<1x64x128xbf16, #tpu.memory_space<vmem>>) attributes {dimension_semantics = [#tpu.dimension_semantics<parallel>], iteration_bounds = array<i64: 2>, scalar_prefetch = 0 : i64, scratch_operands = 0 : i64, tpu.core_type = #tpu.core_type<tc>, window_params = [{transform_indices = @transform_0, window_bounds = array<i64: 1, 64, 128>}, {pipeline_mode = #tpu.pipeline_mode<synchronous>, transform_indices = @transform_1, window_bounds = array<i64: 1, 1, 128>}, {pipeline_mode = #tpu.pipeline_mode<synchronous>, transform_indices = @transform_2, window_bounds = array<i64: 1, 1, 128>}, {transform_indices = @transform_3, window_bounds = array<i64: 1, 64, 128>}]} {
    %c0 = arith.constant 0 : index
    %c0_0 = arith.constant 0 : index
    %c0_1 = arith.constant 0 : index
    %0 = vector.load %arg1[%c0, %c0_0, %c0_1] : memref<1x64x128xbf16, #tpu.memory_space<vmem>>, vector<1x64x128xbf16>
    %1 = arith.extf %0 : vector<1x64x128xbf16> to vector<1x64x128xf32>
    %c0_2 = arith.constant 0 : index
    %c0_3 = arith.constant 0 : index
    %c0_4 = arith.constant 0 : index
    %2 = vector.load %arg2[%c0_2, %c0_3, %c0_4] : memref<1x1x128xf32, #tpu.memory_space<vmem>>, vector<1x1x128xf32>
    %3 = vector.broadcast %2 : vector<1x1x128xf32> to vector<1x64x128xf32>
    %4 = arith.mulf %1, %3 : vector<1x64x128xf32>
    %c0_5 = arith.constant 0 : index
    %c0_6 = arith.constant 0 : index
    %c0_7 = arith.constant 0 : index
    %5 = vector.load %arg3[%c0_5, %c0_6, %c0_7] : memref<1x1x128xf32, #tpu.memory_space<vmem>>, vector<1x1x128xf32>
    %6 = vector.broadcast %5 : vector<1x1x128xf32> to vector<1x64x128xf32>
    %7 = arith.addf %4, %6 : vector<1x64x128xf32>
    %cst = arith.constant 0.000000e+00 : f32
    %8 = vector.broadcast %cst : f32 to vector<1x64x128xf32>
    %9 = arith.maximumf %7, %8 : vector<1x64x128xf32>
    %10 = arith.truncf %9 : vector<1x64x128xf32> to vector<1x64x128xbf16>
    %c0_8 = arith.constant 0 : index
    %c0_9 = arith.constant 0 : index
    %c0_10 = arith.constant 0 : index
    %11 = vector.load %arg4[%c0_8, %c0_9, %c0_10] : memref<1x64x128xbf16, #tpu.memory_space<vmem>>, vector<1x64x128xbf16>
    tpu.vector_store %arg4[%c0_8, %c0_9, %c0_10], %10 {strides = array<i32>} : memref<1x64x128xbf16, #tpu.memory_space<vmem>>, vector<1x64x128xbf16>,
    return
  }
  func.func @transform_0(%arg0: i32) -> (i32, i32, i32) {
    %c0_i32 = arith.constant 0 : i32
    %c0_i32_0 = arith.constant 0 : i32
    %c0_i32_1 = arith.constant 0 : i32
    return %arg0, %c0_i32, %c0_i32_0 : i32, i32, i32
  }
  func.func @transform_1(%arg0: i32) -> (i32, i32, i32) {
    %c0_i32 = arith.constant 0 : i32
    %c0_i32_0 = arith.constant 0 : i32
    %c0_i32_1 = arith.constant 0 : i32
    %c0_i32_2 = arith.constant 0 : i32
    return %c0_i32, %c0_i32_0, %c0_i32_1 : i32, i32, i32
  }
  func.func @transform_2(%arg0: i32) -> (i32, i32, i32) {
    %c0_i32 = arith.constant 0 : i32
    %c0_i32_0 = arith.constant 0 : i32
    %c0_i32_1 = arith.constant 0 : i32
    %c0_i32_2 = arith.constant 0 : i32
    return %c0_i32, %c0_i32_0, %c0_i32_1 : i32, i32, i32
  }
  func.func @transform_3(%arg0: i32) -> (i32, i32, i32) {
    %c0_i32 = arith.constant 0 : i32
    %c0_i32_0 = arith.constant 0 : i32
    %c0_i32_1 = arith.constant 0 : i32
    return %arg0, %c0_i32, %c0_i32_0 : i32, i32, i32
  }
}

module attributes {stable_mosaic.version = 11 : i64} {
  func.func @conv_stats_kernel(%arg0: i32, %arg1: memref<1x4x9x9x4xbf16, #tpu.memory_space<vmem>>, %arg2: memref<3x3x4x128xbf16, #tpu.memory_space<vmem>>, %arg3: memref<1x64x128xbf16, #tpu.memory_space<vmem>>, %arg4: memref<1x1x128xf32, #tpu.memory_space<vmem>>, %arg5: memref<1x1x128xf32, #tpu.memory_space<vmem>>) attributes {dimension_semantics = [#tpu.dimension_semantics<parallel>], iteration_bounds = array<i64: 2>, scalar_prefetch = 0 : i64, scratch_operands = 0 : i64, tpu.core_type = #tpu.core_type<tc>, window_params = [{transform_indices = @transform_0, window_bounds = array<i64: 1, 4, 9, 9, 4>}, {pipeline_mode = #tpu.pipeline_mode<synchronous>, transform_indices = @transform_1, window_bounds = array<i64: 3, 3, 4, 128>}, {transform_indices = @transform_2, window_bounds = array<i64: 1, 64, 128>}, {transform_indices = @transform_3, window_bounds = array<i64: 1, 1, 128>}, {transform_indices = @transform_4, window_bounds = array<i64: 1, 1, 128>}]} {
    %cst = arith.constant 0.000000e+00 : f32
    %0 = vector.broadcast %cst : f32 to vector<64x128xf32>
    %c0 = arith.constant 0 : index
    %c0_0 = arith.constant 0 : index
    %c0_1 = arith.constant 0 : index
    %c0_2 = arith.constant 0 : index
    %c0_3 = arith.constant 0 : index
    %1 = vector.load %arg1[%c0, %c0_0, %c0_1, %c0_2, %c0_3] : memref<1x4x9x9x4xbf16, #tpu.memory_space<vmem>>, vector<1x1x8x8x4xbf16>
    %2 = vector.shape_cast %1 : vector<1x1x8x8x4xbf16> to vector<8x8x4xbf16>
    %3 = vector.shape_cast %2 : vector<8x8x4xbf16> to vector<64x4xbf16>
    %c0_4 = arith.constant 0 : index
    %c0_5 = arith.constant 0 : index
    %c0_6 = arith.constant 0 : index
    %c0_7 = arith.constant 0 : index
    %4 = vector.load %arg2[%c0_4, %c0_5, %c0_6, %c0_7] : memref<3x3x4x128xbf16, #tpu.memory_space<vmem>>, vector<1x1x4x128xbf16>
    %5 = vector.shape_cast %4 : vector<1x1x4x128xbf16> to vector<4x128xbf16>
    %cst_8 = arith.constant dense<0.000000e+00> : vector<64x128xf32>
    %6 = tpu.matmul %3, %5, %cst_8 {dimension_numbers = #tpu.dot_dimension_numbers<[1], [0], [0], [1], [0, 0, 1, 1], [], []>} : vector<64x4xbf16>, vector<4x128xbf16>, vector<64x128xf32> -> vector<64x128xf32>
    %7 = arith.addf %0, %6 : vector<64x128xf32>
    %c0_9 = arith.constant 0 : index
    %c1 = arith.constant 1 : index
    %c0_10 = arith.constant 0 : index
    %c0_11 = arith.constant 0 : index
    %c0_12 = arith.constant 0 : index
    %8 = vector.load %arg1[%c0_9, %c1, %c0_10, %c0_11, %c0_12] : memref<1x4x9x9x4xbf16, #tpu.memory_space<vmem>>, vector<1x1x8x8x4xbf16>
    %9 = vector.shape_cast %8 : vector<1x1x8x8x4xbf16> to vector<8x8x4xbf16>
    %10 = vector.shape_cast %9 : vector<8x8x4xbf16> to vector<64x4xbf16>
    %c0_13 = arith.constant 0 : index
    %c1_14 = arith.constant 1 : index
    %c0_15 = arith.constant 0 : index
    %c0_16 = arith.constant 0 : index
    %11 = vector.load %arg2[%c0_13, %c1_14, %c0_15, %c0_16] : memref<3x3x4x128xbf16, #tpu.memory_space<vmem>>, vector<1x1x4x128xbf16>
    %12 = vector.shape_cast %11 : vector<1x1x4x128xbf16> to vector<4x128xbf16>
    %cst_17 = arith.constant dense<0.000000e+00> : vector<64x128xf32>
    %13 = tpu.matmul %10, %12, %cst_17 {dimension_numbers = #tpu.dot_dimension_numbers<[1], [0], [0], [1], [0, 0, 1, 1], [], []>} : vector<64x4xbf16>, vector<4x128xbf16>, vector<64x128xf32> -> vector<64x128xf32>
    %14 = arith.addf %7, %13 : vector<64x128xf32>
    %c0_18 = arith.constant 0 : index
    %c0_19 = arith.constant 0 : index
    %c0_20 = arith.constant 0 : index
    %c1_21 = arith.constant 1 : index
    %c0_22 = arith.constant 0 : index
    %15 = vector.load %arg1[%c0_18, %c0_19, %c0_20, %c1_21, %c0_22] : memref<1x4x9x9x4xbf16, #tpu.memory_space<vmem>>, vector<1x1x8x8x4xbf16>
    %16 = vector.shape_cast %15 : vector<1x1x8x8x4xbf16> to vector<8x8x4xbf16>
    %17 = vector.shape_cast %16 : vector<8x8x4xbf16> to vector<64x4xbf16>
    %c0_23 = arith.constant 0 : index
    %c2 = arith.constant 2 : index
    %c0_24 = arith.constant 0 : index
    %c0_25 = arith.constant 0 : index
    %18 = vector.load %arg2[%c0_23, %c2, %c0_24, %c0_25] : memref<3x3x4x128xbf16, #tpu.memory_space<vmem>>, vector<1x1x4x128xbf16>
    %19 = vector.shape_cast %18 : vector<1x1x4x128xbf16> to vector<4x128xbf16>
    %cst_26 = arith.constant dense<0.000000e+00> : vector<64x128xf32>
    %20 = tpu.matmul %17, %19, %cst_26 {dimension_numbers = #tpu.dot_dimension_numbers<[1], [0], [0], [1], [0, 0, 1, 1], [], []>} : vector<64x4xbf16>, vector<4x128xbf16>, vector<64x128xf32> -> vector<64x128xf32>
    %21 = arith.addf %14, %20 : vector<64x128xf32>
    %c0_27 = arith.constant 0 : index
    %c2_28 = arith.constant 2 : index
    %c0_29 = arith.constant 0 : index
    %c0_30 = arith.constant 0 : index
    %c0_31 = arith.constant 0 : index
    %22 = vector.load %arg1[%c0_27, %c2_28, %c0_29, %c0_30, %c0_31] : memref<1x4x9x9x4xbf16, #tpu.memory_space<vmem>>, vector<1x1x8x8x4xbf16>
    %23 = vector.shape_cast %22 : vector<1x1x8x8x4xbf16> to vector<8x8x4xbf16>
    %24 = vector.shape_cast %23 : vector<8x8x4xbf16> to vector<64x4xbf16>
    %c1_32 = arith.constant 1 : index
    %c0_33 = arith.constant 0 : index
    %c0_34 = arith.constant 0 : index
    %c0_35 = arith.constant 0 : index
    %25 = vector.load %arg2[%c1_32, %c0_33, %c0_34, %c0_35] : memref<3x3x4x128xbf16, #tpu.memory_space<vmem>>, vector<1x1x4x128xbf16>
    %26 = vector.shape_cast %25 : vector<1x1x4x128xbf16> to vector<4x128xbf16>
    %cst_36 = arith.constant dense<0.000000e+00> : vector<64x128xf32>
    %27 = tpu.matmul %24, %26, %cst_36 {dimension_numbers = #tpu.dot_dimension_numbers<[1], [0], [0], [1], [0, 0, 1, 1], [], []>} : vector<64x4xbf16>, vector<4x128xbf16>, vector<64x128xf32> -> vector<64x128xf32>
    %28 = arith.addf %21, %27 : vector<64x128xf32>
    %c0_37 = arith.constant 0 : index
    %c3 = arith.constant 3 : index
    %c0_38 = arith.constant 0 : index
    %c0_39 = arith.constant 0 : index
    %c0_40 = arith.constant 0 : index
    %29 = vector.load %arg1[%c0_37, %c3, %c0_38, %c0_39, %c0_40] : memref<1x4x9x9x4xbf16, #tpu.memory_space<vmem>>, vector<1x1x8x8x4xbf16>
    %30 = vector.shape_cast %29 : vector<1x1x8x8x4xbf16> to vector<8x8x4xbf16>
    %31 = vector.shape_cast %30 : vector<8x8x4xbf16> to vector<64x4xbf16>
    %c1_41 = arith.constant 1 : index
    %c1_42 = arith.constant 1 : index
    %c0_43 = arith.constant 0 : index
    %c0_44 = arith.constant 0 : index
    %32 = vector.load %arg2[%c1_41, %c1_42, %c0_43, %c0_44] : memref<3x3x4x128xbf16, #tpu.memory_space<vmem>>, vector<1x1x4x128xbf16>
    %33 = vector.shape_cast %32 : vector<1x1x4x128xbf16> to vector<4x128xbf16>
    %cst_45 = arith.constant dense<0.000000e+00> : vector<64x128xf32>
    %34 = tpu.matmul %31, %33, %cst_45 {dimension_numbers = #tpu.dot_dimension_numbers<[1], [0], [0], [1], [0, 0, 1, 1], [], []>} : vector<64x4xbf16>, vector<4x128xbf16>, vector<64x128xf32> -> vector<64x128xf32>
    %35 = arith.addf %28, %34 : vector<64x128xf32>
    %c0_46 = arith.constant 0 : index
    %c2_47 = arith.constant 2 : index
    %c0_48 = arith.constant 0 : index
    %c1_49 = arith.constant 1 : index
    %c0_50 = arith.constant 0 : index
    %36 = vector.load %arg1[%c0_46, %c2_47, %c0_48, %c1_49, %c0_50] : memref<1x4x9x9x4xbf16, #tpu.memory_space<vmem>>, vector<1x1x8x8x4xbf16>
    %37 = vector.shape_cast %36 : vector<1x1x8x8x4xbf16> to vector<8x8x4xbf16>
    %38 = vector.shape_cast %37 : vector<8x8x4xbf16> to vector<64x4xbf16>
    %c1_51 = arith.constant 1 : index
    %c2_52 = arith.constant 2 : index
    %c0_53 = arith.constant 0 : index
    %c0_54 = arith.constant 0 : index
    %39 = vector.load %arg2[%c1_51, %c2_52, %c0_53, %c0_54] : memref<3x3x4x128xbf16, #tpu.memory_space<vmem>>, vector<1x1x4x128xbf16>
    %40 = vector.shape_cast %39 : vector<1x1x4x128xbf16> to vector<4x128xbf16>
    %cst_55 = arith.constant dense<0.000000e+00> : vector<64x128xf32>
    %41 = tpu.matmul %38, %40, %cst_55 {dimension_numbers = #tpu.dot_dimension_numbers<[1], [0], [0], [1], [0, 0, 1, 1], [], []>} : vector<64x4xbf16>, vector<4x128xbf16>, vector<64x128xf32> -> vector<64x128xf32>
    %42 = arith.addf %35, %41 : vector<64x128xf32>
    %c0_56 = arith.constant 0 : index
    %c0_57 = arith.constant 0 : index
    %c1_58 = arith.constant 1 : index
    %c0_59 = arith.constant 0 : index
    %c0_60 = arith.constant 0 : index
    %43 = vector.load %arg1[%c0_56, %c0_57, %c1_58, %c0_59, %c0_60] : memref<1x4x9x9x4xbf16, #tpu.memory_space<vmem>>, vector<1x1x8x8x4xbf16>
    %44 = vector.shape_cast %43 : vector<1x1x8x8x4xbf16> to vector<8x8x4xbf16>
    %45 = vector.shape_cast %44 : vector<8x8x4xbf16> to vector<64x4xbf16>
    %c2_61 = arith.constant 2 : index
    %c0_62 = arith.constant 0 : index
    %c0_63 = arith.constant 0 : index
    %c0_64 = arith.constant 0 : index
    %46 = vector.load %arg2[%c2_61, %c0_62, %c0_63, %c0_64] : memref<3x3x4x128xbf16, #tpu.memory_space<vmem>>, vector<1x1x4x128xbf16>
    %47 = vector.shape_cast %46 : vector<1x1x4x128xbf16> to vector<4x128xbf16>
    %cst_65 = arith.constant dense<0.000000e+00> : vector<64x128xf32>
    %48 = tpu.matmul %45, %47, %cst_65 {dimension_numbers = #tpu.dot_dimension_numbers<[1], [0], [0], [1], [0, 0, 1, 1], [], []>} : vector<64x4xbf16>, vector<4x128xbf16>, vector<64x128xf32> -> vector<64x128xf32>
    %49 = arith.addf %42, %48 : vector<64x128xf32>
    %c0_66 = arith.constant 0 : index
    %c1_67 = arith.constant 1 : index
    %c1_68 = arith.constant 1 : index
    %c0_69 = arith.constant 0 : index
    %c0_70 = arith.constant 0 : index
    %50 = vector.load %arg1[%c0_66, %c1_67, %c1_68, %c0_69, %c0_70] : memref<1x4x9x9x4xbf16, #tpu.memory_space<vmem>>, vector<1x1x8x8x4xbf16>
    %51 = vector.shape_cast %50 : vector<1x1x8x8x4xbf16> to vector<8x8x4xbf16>
    %52 = vector.shape_cast %51 : vector<8x8x4xbf16> to vector<64x4xbf16>
    %c2_71 = arith.constant 2 : index
    %c1_72 = arith.constant 1 : index
    %c0_73 = arith.constant 0 : index
    %c0_74 = arith.constant 0 : index
    %53 = vector.load %arg2[%c2_71, %c1_72, %c0_73, %c0_74] : memref<3x3x4x128xbf16, #tpu.memory_space<vmem>>, vector<1x1x4x128xbf16>
    %54 = vector.shape_cast %53 : vector<1x1x4x128xbf16> to vector<4x128xbf16>
    %cst_75 = arith.constant dense<0.000000e+00> : vector<64x128xf32>
    %55 = tpu.matmul %52, %54, %cst_75 {dimension_numbers = #tpu.dot_dimension_numbers<[1], [0], [0], [1], [0, 0, 1, 1], [], []>} : vector<64x4xbf16>, vector<4x128xbf16>, vector<64x128xf32> -> vector<64x128xf32>
    %56 = arith.addf %49, %55 : vector<64x128xf32>
    %c0_76 = arith.constant 0 : index
    %c0_77 = arith.constant 0 : index
    %c1_78 = arith.constant 1 : index
    %c1_79 = arith.constant 1 : index
    %c0_80 = arith.constant 0 : index
    %57 = vector.load %arg1[%c0_76, %c0_77, %c1_78, %c1_79, %c0_80] : memref<1x4x9x9x4xbf16, #tpu.memory_space<vmem>>, vector<1x1x8x8x4xbf16>
    %58 = vector.shape_cast %57 : vector<1x1x8x8x4xbf16> to vector<8x8x4xbf16>
    %59 = vector.shape_cast %58 : vector<8x8x4xbf16> to vector<64x4xbf16>
    %c2_81 = arith.constant 2 : index
    %c2_82 = arith.constant 2 : index
    %c0_83 = arith.constant 0 : index
    %c0_84 = arith.constant 0 : index
    %60 = vector.load %arg2[%c2_81, %c2_82, %c0_83, %c0_84] : memref<3x3x4x128xbf16, #tpu.memory_space<vmem>>, vector<1x1x4x128xbf16>
    %61 = vector.shape_cast %60 : vector<1x1x4x128xbf16> to vector<4x128xbf16>
    %cst_85 = arith.constant dense<0.000000e+00> : vector<64x128xf32>
    %62 = tpu.matmul %59, %61, %cst_85 {dimension_numbers = #tpu.dot_dimension_numbers<[1], [0], [0], [1], [0, 0, 1, 1], [], []>} : vector<64x4xbf16>, vector<4x128xbf16>, vector<64x128xf32> -> vector<64x128xf32>
    %63 = arith.addf %56, %62 : vector<64x128xf32>
    %64 = arith.truncf %63 : vector<64x128xf32> to vector<64x128xbf16>
    %c0_86 = arith.constant 0 : index
    %c0_87 = arith.constant 0 : index
    %c0_88 = arith.constant 0 : index
    %65 = vector.load %arg3[%c0_86, %c0_87, %c0_88] : memref<1x64x128xbf16, #tpu.memory_space<vmem>>, vector<1x64x128xbf16>
    %66 = vector.shape_cast %65 : vector<1x64x128xbf16> to vector<64x128xbf16>
    %67 = vector.shape_cast %64 : vector<64x128xbf16> to vector<1x64x128xbf16>
    tpu.vector_store %arg3[%c0_86, %c0_87, %c0_88], %67 {strides = array<i32>} : memref<1x64x128xbf16, #tpu.memory_space<vmem>>, vector<1x64x128xbf16>,
    %cst_89 = arith.constant dense<0.000000e+00> : vector<128xf32>
    %68 = vector.multi_reduction <add>, %63, %cst_89 [0] : vector<64x128xf32> to vector<128xf32>
    %69 = vector.shape_cast %68 : vector<128xf32> to vector<1x128xf32>
    %70 = vector.shape_cast %69 : vector<1x128xf32> to vector<1x1x128xf32>
    %c0_90 = arith.constant 0 : index
    %c0_91 = arith.constant 0 : index
    %c0_92 = arith.constant 0 : index
    %71 = vector.load %arg4[%c0_90, %c0_91, %c0_92] : memref<1x1x128xf32, #tpu.memory_space<vmem>>, vector<1x1x128xf32>
    tpu.vector_store %arg4[%c0_90, %c0_91, %c0_92], %70 {strides = array<i32>} : memref<1x1x128xf32, #tpu.memory_space<vmem>>, vector<1x1x128xf32>,
    %72 = arith.mulf %63, %63 : vector<64x128xf32>
    %cst_93 = arith.constant dense<0.000000e+00> : vector<128xf32>
    %73 = vector.multi_reduction <add>, %72, %cst_93 [0] : vector<64x128xf32> to vector<128xf32>
    %74 = vector.shape_cast %73 : vector<128xf32> to vector<1x128xf32>
    %75 = vector.shape_cast %74 : vector<1x128xf32> to vector<1x1x128xf32>
    %c0_94 = arith.constant 0 : index
    %c0_95 = arith.constant 0 : index
    %c0_96 = arith.constant 0 : index
    %76 = vector.load %arg5[%c0_94, %c0_95, %c0_96] : memref<1x1x128xf32, #tpu.memory_space<vmem>>, vector<1x1x128xf32>
    tpu.vector_store %arg5[%c0_94, %c0_95, %c0_96], %75 {strides = array<i32>} : memref<1x1x128xf32, #tpu.memory_space<vmem>>, vector<1x1x128xf32>,
    return
  }
  func.func @transform_0(%arg0: i32) -> (i32, i32, i32, i32, i32) {
    %c0_i32 = arith.constant 0 : i32
    %c0_i32_0 = arith.constant 0 : i32
    %c0_i32_1 = arith.constant 0 : i32
    %c0_i32_2 = arith.constant 0 : i32
    %c0_i32_3 = arith.constant 0 : i32
    return %arg0, %c0_i32, %c0_i32_0, %c0_i32_1, %c0_i32_2 : i32, i32, i32, i32, i32
  }
  func.func @transform_1(%arg0: i32) -> (i32, i32, i32, i32) {
    %c0_i32 = arith.constant 0 : i32
    %c0_i32_0 = arith.constant 0 : i32
    %c0_i32_1 = arith.constant 0 : i32
    %c0_i32_2 = arith.constant 0 : i32
    %c0_i32_3 = arith.constant 0 : i32
    return %c0_i32, %c0_i32_0, %c0_i32_1, %c0_i32_2 : i32, i32, i32, i32
  }
  func.func @transform_2(%arg0: i32) -> (i32, i32, i32) {
    %c0_i32 = arith.constant 0 : i32
    %c0_i32_0 = arith.constant 0 : i32
    %c0_i32_1 = arith.constant 0 : i32
    return %arg0, %c0_i32, %c0_i32_0 : i32, i32, i32
  }
  func.func @transform_3(%arg0: i32) -> (i32, i32, i32) {
    %c0_i32 = arith.constant 0 : i32
    %c0_i32_0 = arith.constant 0 : i32
    %c0_i32_1 = arith.constant 0 : i32
    return %arg0, %c0_i32, %c0_i32_0 : i32, i32, i32
  }
  func.func @transform_4(%arg0: i32) -> (i32, i32, i32) {
    %c0_i32 = arith.constant 0 : i32
    %c0_i32_0 = arith.constant 0 : i32
    %c0_i32_1 = arith.constant 0 : i32
    return %arg0, %c0_i32, %c0_i32_0 : i32, i32, i32
  }
}

module attributes {stable_mosaic.version = 11 : i64} {
  func.func @conv_stats_kernel(%arg0: i32, %arg1: memref<1x1x10x10x128xbf16, #tpu.memory_space<vmem>>, %arg2: memref<3x3x128x128xbf16, #tpu.memory_space<vmem>>, %arg3: memref<1x64x128xbf16, #tpu.memory_space<vmem>>, %arg4: memref<1x1x128xf32, #tpu.memory_space<vmem>>, %arg5: memref<1x1x128xf32, #tpu.memory_space<vmem>>) attributes {dimension_semantics = [#tpu.dimension_semantics<parallel>], iteration_bounds = array<i64: 2>, scalar_prefetch = 0 : i64, scratch_operands = 0 : i64, tpu.core_type = #tpu.core_type<tc>, window_params = [{transform_indices = @transform_0, window_bounds = array<i64: 1, 1, 10, 10, 128>}, {pipeline_mode = #tpu.pipeline_mode<synchronous>, transform_indices = @transform_1, window_bounds = array<i64: 3, 3, 128, 128>}, {transform_indices = @transform_2, window_bounds = array<i64: 1, 64, 128>}, {transform_indices = @transform_3, window_bounds = array<i64: 1, 1, 128>}, {transform_indices = @transform_4, window_bounds = array<i64: 1, 1, 128>}]} {
    %cst = arith.constant 0.000000e+00 : f32
    %0 = vector.broadcast %cst : f32 to vector<64x128xf32>
    %c0 = arith.constant 0 : index
    %c0_0 = arith.constant 0 : index
    %c0_1 = arith.constant 0 : index
    %c0_2 = arith.constant 0 : index
    %c0_3 = arith.constant 0 : index
    %1 = vector.load %arg1[%c0, %c0_0, %c0_1, %c0_2, %c0_3] : memref<1x1x10x10x128xbf16, #tpu.memory_space<vmem>>, vector<1x1x8x8x128xbf16>
    %2 = vector.shape_cast %1 : vector<1x1x8x8x128xbf16> to vector<8x8x128xbf16>
    %3 = vector.shape_cast %2 : vector<8x8x128xbf16> to vector<64x128xbf16>
    %c0_4 = arith.constant 0 : index
    %c0_5 = arith.constant 0 : index
    %c0_6 = arith.constant 0 : index
    %c0_7 = arith.constant 0 : index
    %4 = vector.load %arg2[%c0_4, %c0_5, %c0_6, %c0_7] : memref<3x3x128x128xbf16, #tpu.memory_space<vmem>>, vector<1x1x128x128xbf16>
    %5 = vector.shape_cast %4 : vector<1x1x128x128xbf16> to vector<128x128xbf16>
    %cst_8 = arith.constant dense<0.000000e+00> : vector<64x128xf32>
    %6 = tpu.matmul %3, %5, %cst_8 {dimension_numbers = #tpu.dot_dimension_numbers<[1], [0], [0], [1], [0, 0, 1, 1], [], []>} : vector<64x128xbf16>, vector<128x128xbf16>, vector<64x128xf32> -> vector<64x128xf32>
    %7 = arith.addf %0, %6 : vector<64x128xf32>
    %c0_9 = arith.constant 0 : index
    %c0_10 = arith.constant 0 : index
    %c0_11 = arith.constant 0 : index
    %c1 = arith.constant 1 : index
    %c0_12 = arith.constant 0 : index
    %8 = vector.load %arg1[%c0_9, %c0_10, %c0_11, %c1, %c0_12] : memref<1x1x10x10x128xbf16, #tpu.memory_space<vmem>>, vector<1x1x8x8x128xbf16>
    %9 = vector.shape_cast %8 : vector<1x1x8x8x128xbf16> to vector<8x8x128xbf16>
    %10 = vector.shape_cast %9 : vector<8x8x128xbf16> to vector<64x128xbf16>
    %c0_13 = arith.constant 0 : index
    %c1_14 = arith.constant 1 : index
    %c0_15 = arith.constant 0 : index
    %c0_16 = arith.constant 0 : index
    %11 = vector.load %arg2[%c0_13, %c1_14, %c0_15, %c0_16] : memref<3x3x128x128xbf16, #tpu.memory_space<vmem>>, vector<1x1x128x128xbf16>
    %12 = vector.shape_cast %11 : vector<1x1x128x128xbf16> to vector<128x128xbf16>
    %cst_17 = arith.constant dense<0.000000e+00> : vector<64x128xf32>
    %13 = tpu.matmul %10, %12, %cst_17 {dimension_numbers = #tpu.dot_dimension_numbers<[1], [0], [0], [1], [0, 0, 1, 1], [], []>} : vector<64x128xbf16>, vector<128x128xbf16>, vector<64x128xf32> -> vector<64x128xf32>
    %14 = arith.addf %7, %13 : vector<64x128xf32>
    %c0_18 = arith.constant 0 : index
    %c0_19 = arith.constant 0 : index
    %c0_20 = arith.constant 0 : index
    %c2 = arith.constant 2 : index
    %c0_21 = arith.constant 0 : index
    %15 = vector.load %arg1[%c0_18, %c0_19, %c0_20, %c2, %c0_21] : memref<1x1x10x10x128xbf16, #tpu.memory_space<vmem>>, vector<1x1x8x8x128xbf16>
    %16 = vector.shape_cast %15 : vector<1x1x8x8x128xbf16> to vector<8x8x128xbf16>
    %17 = vector.shape_cast %16 : vector<8x8x128xbf16> to vector<64x128xbf16>
    %c0_22 = arith.constant 0 : index
    %c2_23 = arith.constant 2 : index
    %c0_24 = arith.constant 0 : index
    %c0_25 = arith.constant 0 : index
    %18 = vector.load %arg2[%c0_22, %c2_23, %c0_24, %c0_25] : memref<3x3x128x128xbf16, #tpu.memory_space<vmem>>, vector<1x1x128x128xbf16>
    %19 = vector.shape_cast %18 : vector<1x1x128x128xbf16> to vector<128x128xbf16>
    %cst_26 = arith.constant dense<0.000000e+00> : vector<64x128xf32>
    %20 = tpu.matmul %17, %19, %cst_26 {dimension_numbers = #tpu.dot_dimension_numbers<[1], [0], [0], [1], [0, 0, 1, 1], [], []>} : vector<64x128xbf16>, vector<128x128xbf16>, vector<64x128xf32> -> vector<64x128xf32>
    %21 = arith.addf %14, %20 : vector<64x128xf32>
    %c0_27 = arith.constant 0 : index
    %c0_28 = arith.constant 0 : index
    %c1_29 = arith.constant 1 : index
    %c0_30 = arith.constant 0 : index
    %c0_31 = arith.constant 0 : index
    %22 = vector.load %arg1[%c0_27, %c0_28, %c1_29, %c0_30, %c0_31] : memref<1x1x10x10x128xbf16, #tpu.memory_space<vmem>>, vector<1x1x8x8x128xbf16>
    %23 = vector.shape_cast %22 : vector<1x1x8x8x128xbf16> to vector<8x8x128xbf16>
    %24 = vector.shape_cast %23 : vector<8x8x128xbf16> to vector<64x128xbf16>
    %c1_32 = arith.constant 1 : index
    %c0_33 = arith.constant 0 : index
    %c0_34 = arith.constant 0 : index
    %c0_35 = arith.constant 0 : index
    %25 = vector.load %arg2[%c1_32, %c0_33, %c0_34, %c0_35] : memref<3x3x128x128xbf16, #tpu.memory_space<vmem>>, vector<1x1x128x128xbf16>
    %26 = vector.shape_cast %25 : vector<1x1x128x128xbf16> to vector<128x128xbf16>
    %cst_36 = arith.constant dense<0.000000e+00> : vector<64x128xf32>
    %27 = tpu.matmul %24, %26, %cst_36 {dimension_numbers = #tpu.dot_dimension_numbers<[1], [0], [0], [1], [0, 0, 1, 1], [], []>} : vector<64x128xbf16>, vector<128x128xbf16>, vector<64x128xf32> -> vector<64x128xf32>
    %28 = arith.addf %21, %27 : vector<64x128xf32>
    %c0_37 = arith.constant 0 : index
    %c0_38 = arith.constant 0 : index
    %c1_39 = arith.constant 1 : index
    %c1_40 = arith.constant 1 : index
    %c0_41 = arith.constant 0 : index
    %29 = vector.load %arg1[%c0_37, %c0_38, %c1_39, %c1_40, %c0_41] : memref<1x1x10x10x128xbf16, #tpu.memory_space<vmem>>, vector<1x1x8x8x128xbf16>
    %30 = vector.shape_cast %29 : vector<1x1x8x8x128xbf16> to vector<8x8x128xbf16>
    %31 = vector.shape_cast %30 : vector<8x8x128xbf16> to vector<64x128xbf16>
    %c1_42 = arith.constant 1 : index
    %c1_43 = arith.constant 1 : index
    %c0_44 = arith.constant 0 : index
    %c0_45 = arith.constant 0 : index
    %32 = vector.load %arg2[%c1_42, %c1_43, %c0_44, %c0_45] : memref<3x3x128x128xbf16, #tpu.memory_space<vmem>>, vector<1x1x128x128xbf16>
    %33 = vector.shape_cast %32 : vector<1x1x128x128xbf16> to vector<128x128xbf16>
    %cst_46 = arith.constant dense<0.000000e+00> : vector<64x128xf32>
    %34 = tpu.matmul %31, %33, %cst_46 {dimension_numbers = #tpu.dot_dimension_numbers<[1], [0], [0], [1], [0, 0, 1, 1], [], []>} : vector<64x128xbf16>, vector<128x128xbf16>, vector<64x128xf32> -> vector<64x128xf32>
    %35 = arith.addf %28, %34 : vector<64x128xf32>
    %c0_47 = arith.constant 0 : index
    %c0_48 = arith.constant 0 : index
    %c1_49 = arith.constant 1 : index
    %c2_50 = arith.constant 2 : index
    %c0_51 = arith.constant 0 : index
    %36 = vector.load %arg1[%c0_47, %c0_48, %c1_49, %c2_50, %c0_51] : memref<1x1x10x10x128xbf16, #tpu.memory_space<vmem>>, vector<1x1x8x8x128xbf16>
    %37 = vector.shape_cast %36 : vector<1x1x8x8x128xbf16> to vector<8x8x128xbf16>
    %38 = vector.shape_cast %37 : vector<8x8x128xbf16> to vector<64x128xbf16>
    %c1_52 = arith.constant 1 : index
    %c2_53 = arith.constant 2 : index
    %c0_54 = arith.constant 0 : index
    %c0_55 = arith.constant 0 : index
    %39 = vector.load %arg2[%c1_52, %c2_53, %c0_54, %c0_55] : memref<3x3x128x128xbf16, #tpu.memory_space<vmem>>, vector<1x1x128x128xbf16>
    %40 = vector.shape_cast %39 : vector<1x1x128x128xbf16> to vector<128x128xbf16>
    %cst_56 = arith.constant dense<0.000000e+00> : vector<64x128xf32>
    %41 = tpu.matmul %38, %40, %cst_56 {dimension_numbers = #tpu.dot_dimension_numbers<[1], [0], [0], [1], [0, 0, 1, 1], [], []>} : vector<64x128xbf16>, vector<128x128xbf16>, vector<64x128xf32> -> vector<64x128xf32>
    %42 = arith.addf %35, %41 : vector<64x128xf32>
    %c0_57 = arith.constant 0 : index
    %c0_58 = arith.constant 0 : index
    %c2_59 = arith.constant 2 : index
    %c0_60 = arith.constant 0 : index
    %c0_61 = arith.constant 0 : index
    %43 = vector.load %arg1[%c0_57, %c0_58, %c2_59, %c0_60, %c0_61] : memref<1x1x10x10x128xbf16, #tpu.memory_space<vmem>>, vector<1x1x8x8x128xbf16>
    %44 = vector.shape_cast %43 : vector<1x1x8x8x128xbf16> to vector<8x8x128xbf16>
    %45 = vector.shape_cast %44 : vector<8x8x128xbf16> to vector<64x128xbf16>
    %c2_62 = arith.constant 2 : index
    %c0_63 = arith.constant 0 : index
    %c0_64 = arith.constant 0 : index
    %c0_65 = arith.constant 0 : index
    %46 = vector.load %arg2[%c2_62, %c0_63, %c0_64, %c0_65] : memref<3x3x128x128xbf16, #tpu.memory_space<vmem>>, vector<1x1x128x128xbf16>
    %47 = vector.shape_cast %46 : vector<1x1x128x128xbf16> to vector<128x128xbf16>
    %cst_66 = arith.constant dense<0.000000e+00> : vector<64x128xf32>
    %48 = tpu.matmul %45, %47, %cst_66 {dimension_numbers = #tpu.dot_dimension_numbers<[1], [0], [0], [1], [0, 0, 1, 1], [], []>} : vector<64x128xbf16>, vector<128x128xbf16>, vector<64x128xf32> -> vector<64x128xf32>
    %49 = arith.addf %42, %48 : vector<64x128xf32>
    %c0_67 = arith.constant 0 : index
    %c0_68 = arith.constant 0 : index
    %c2_69 = arith.constant 2 : index
    %c1_70 = arith.constant 1 : index
    %c0_71 = arith.constant 0 : index
    %50 = vector.load %arg1[%c0_67, %c0_68, %c2_69, %c1_70, %c0_71] : memref<1x1x10x10x128xbf16, #tpu.memory_space<vmem>>, vector<1x1x8x8x128xbf16>
    %51 = vector.shape_cast %50 : vector<1x1x8x8x128xbf16> to vector<8x8x128xbf16>
    %52 = vector.shape_cast %51 : vector<8x8x128xbf16> to vector<64x128xbf16>
    %c2_72 = arith.constant 2 : index
    %c1_73 = arith.constant 1 : index
    %c0_74 = arith.constant 0 : index
    %c0_75 = arith.constant 0 : index
    %53 = vector.load %arg2[%c2_72, %c1_73, %c0_74, %c0_75] : memref<3x3x128x128xbf16, #tpu.memory_space<vmem>>, vector<1x1x128x128xbf16>
    %54 = vector.shape_cast %53 : vector<1x1x128x128xbf16> to vector<128x128xbf16>
    %cst_76 = arith.constant dense<0.000000e+00> : vector<64x128xf32>
    %55 = tpu.matmul %52, %54, %cst_76 {dimension_numbers = #tpu.dot_dimension_numbers<[1], [0], [0], [1], [0, 0, 1, 1], [], []>} : vector<64x128xbf16>, vector<128x128xbf16>, vector<64x128xf32> -> vector<64x128xf32>
    %56 = arith.addf %49, %55 : vector<64x128xf32>
    %c0_77 = arith.constant 0 : index
    %c0_78 = arith.constant 0 : index
    %c2_79 = arith.constant 2 : index
    %c2_80 = arith.constant 2 : index
    %c0_81 = arith.constant 0 : index
    %57 = vector.load %arg1[%c0_77, %c0_78, %c2_79, %c2_80, %c0_81] : memref<1x1x10x10x128xbf16, #tpu.memory_space<vmem>>, vector<1x1x8x8x128xbf16>
    %58 = vector.shape_cast %57 : vector<1x1x8x8x128xbf16> to vector<8x8x128xbf16>
    %59 = vector.shape_cast %58 : vector<8x8x128xbf16> to vector<64x128xbf16>
    %c2_82 = arith.constant 2 : index
    %c2_83 = arith.constant 2 : index
    %c0_84 = arith.constant 0 : index
    %c0_85 = arith.constant 0 : index
    %60 = vector.load %arg2[%c2_82, %c2_83, %c0_84, %c0_85] : memref<3x3x128x128xbf16, #tpu.memory_space<vmem>>, vector<1x1x128x128xbf16>
    %61 = vector.shape_cast %60 : vector<1x1x128x128xbf16> to vector<128x128xbf16>
    %cst_86 = arith.constant dense<0.000000e+00> : vector<64x128xf32>
    %62 = tpu.matmul %59, %61, %cst_86 {dimension_numbers = #tpu.dot_dimension_numbers<[1], [0], [0], [1], [0, 0, 1, 1], [], []>} : vector<64x128xbf16>, vector<128x128xbf16>, vector<64x128xf32> -> vector<64x128xf32>
    %63 = arith.addf %56, %62 : vector<64x128xf32>
    %64 = arith.truncf %63 : vector<64x128xf32> to vector<64x128xbf16>
    %c0_87 = arith.constant 0 : index
    %c0_88 = arith.constant 0 : index
    %c0_89 = arith.constant 0 : index
    %65 = vector.load %arg3[%c0_87, %c0_88, %c0_89] : memref<1x64x128xbf16, #tpu.memory_space<vmem>>, vector<1x64x128xbf16>
    %66 = vector.shape_cast %65 : vector<1x64x128xbf16> to vector<64x128xbf16>
    %67 = vector.shape_cast %64 : vector<64x128xbf16> to vector<1x64x128xbf16>
    tpu.vector_store %arg3[%c0_87, %c0_88, %c0_89], %67 {strides = array<i32>} : memref<1x64x128xbf16, #tpu.memory_space<vmem>>, vector<1x64x128xbf16>,
    %cst_90 = arith.constant dense<0.000000e+00> : vector<128xf32>
    %68 = vector.multi_reduction <add>, %63, %cst_90 [0] : vector<64x128xf32> to vector<128xf32>
    %69 = vector.shape_cast %68 : vector<128xf32> to vector<1x128xf32>
    %70 = vector.shape_cast %69 : vector<1x128xf32> to vector<1x1x128xf32>
    %c0_91 = arith.constant 0 : index
    %c0_92 = arith.constant 0 : index
    %c0_93 = arith.constant 0 : index
    %71 = vector.load %arg4[%c0_91, %c0_92, %c0_93] : memref<1x1x128xf32, #tpu.memory_space<vmem>>, vector<1x1x128xf32>
    tpu.vector_store %arg4[%c0_91, %c0_92, %c0_93], %70 {strides = array<i32>} : memref<1x1x128xf32, #tpu.memory_space<vmem>>, vector<1x1x128xf32>,
    %72 = arith.mulf %63, %63 : vector<64x128xf32>
    %cst_94 = arith.constant dense<0.000000e+00> : vector<128xf32>
    %73 = vector.multi_reduction <add>, %72, %cst_94 [0] : vector<64x128xf32> to vector<128xf32>
    %74 = vector.shape_cast %73 : vector<128xf32> to vector<1x128xf32>
    %75 = vector.shape_cast %74 : vector<1x128xf32> to vector<1x1x128xf32>
    %c0_95 = arith.constant 0 : index
    %c0_96 = arith.constant 0 : index
    %c0_97 = arith.constant 0 : index
    %76 = vector.load %arg5[%c0_95, %c0_96, %c0_97] : memref<1x1x128xf32, #tpu.memory_space<vmem>>, vector<1x1x128xf32>
    tpu.vector_store %arg5[%c0_95, %c0_96, %c0_97], %75 {strides = array<i32>} : memref<1x1x128xf32, #tpu.memory_space<vmem>>, vector<1x1x128xf32>,
    return
  }
  func.func @transform_0(%arg0: i32) -> (i32, i32, i32, i32, i32) {
    %c0_i32 = arith.constant 0 : i32
    %c0_i32_0 = arith.constant 0 : i32
    %c0_i32_1 = arith.constant 0 : i32
    %c0_i32_2 = arith.constant 0 : i32
    %c0_i32_3 = arith.constant 0 : i32
    return %arg0, %c0_i32, %c0_i32_0, %c0_i32_1, %c0_i32_2 : i32, i32, i32, i32, i32
  }
  func.func @transform_1(%arg0: i32) -> (i32, i32, i32, i32) {
    %c0_i32 = arith.constant 0 : i32
    %c0_i32_0 = arith.constant 0 : i32
    %c0_i32_1 = arith.constant 0 : i32
    %c0_i32_2 = arith.constant 0 : i32
    %c0_i32_3 = arith.constant 0 : i32
    return %c0_i32, %c0_i32_0, %c0_i32_1, %c0_i32_2 : i32, i32, i32, i32
  }
  func.func @transform_2(%arg0: i32) -> (i32, i32, i32) {
    %c0_i32 = arith.constant 0 : i32
    %c0_i32_0 = arith.constant 0 : i32
    %c0_i32_1 = arith.constant 0 : i32
    return %arg0, %c0_i32, %c0_i32_0 : i32, i32, i32
  }
  func.func @transform_3(%arg0: i32) -> (i32, i32, i32) {
    %c0_i32 = arith.constant 0 : i32
    %c0_i32_0 = arith.constant 0 : i32
    %c0_i32_1 = arith.constant 0 : i32
    return %arg0, %c0_i32, %c0_i32_0 : i32, i32, i32
  }
  func.func @transform_4(%arg0: i32) -> (i32, i32, i32) {
    %c0_i32 = arith.constant 0 : i32
    %c0_i32_0 = arith.constant 0 : i32
    %c0_i32_1 = arith.constant 0 : i32
    return %arg0, %c0_i32, %c0_i32_0 : i32, i32, i32
  }
}

module attributes {stable_mosaic.version = 11 : i64} {
  func.func @bn_add_relu_kernel(%arg0: i32, %arg1: memref<1x64x128xbf16, #tpu.memory_space<vmem>>, %arg2: memref<1x64x128xbf16, #tpu.memory_space<vmem>>, %arg3: memref<1x1x128xf32, #tpu.memory_space<vmem>>, %arg4: memref<1x1x128xf32, #tpu.memory_space<vmem>>, %arg5: memref<1x1x128xf32, #tpu.memory_space<vmem>>, %arg6: memref<1x1x128xf32, #tpu.memory_space<vmem>>, %arg7: memref<1x64x128xf32, #tpu.memory_space<vmem>>) attributes {dimension_semantics = [#tpu.dimension_semantics<parallel>], iteration_bounds = array<i64: 2>, scalar_prefetch = 0 : i64, scratch_operands = 0 : i64, tpu.core_type = #tpu.core_type<tc>, window_params = [{transform_indices = @transform_0, window_bounds = array<i64: 1, 64, 128>}, {transform_indices = @transform_1, window_bounds = array<i64: 1, 64, 128>}, {pipeline_mode = #tpu.pipeline_mode<synchronous>, transform_indices = @transform_2, window_bounds = array<i64: 1, 1, 128>}, {pipeline_mode = #tpu.pipeline_mode<synchronous>, transform_indices = @transform_3, window_bounds = array<i64: 1, 1, 128>}, {pipeline_mode = #tpu.pipeline_mode<synchronous>, transform_indices = @transform_4, window_bounds = array<i64: 1, 1, 128>}, {pipeline_mode = #tpu.pipeline_mode<synchronous>, transform_indices = @transform_5, window_bounds = array<i64: 1, 1, 128>}, {transform_indices = @transform_6, window_bounds = array<i64: 1, 64, 128>}]} {
    %c0 = arith.constant 0 : index
    %c0_0 = arith.constant 0 : index
    %c0_1 = arith.constant 0 : index
    %0 = vector.load %arg1[%c0, %c0_0, %c0_1] : memref<1x64x128xbf16, #tpu.memory_space<vmem>>, vector<1x64x128xbf16>
    %1 = arith.extf %0 : vector<1x64x128xbf16> to vector<1x64x128xf32>
    %c0_2 = arith.constant 0 : index
    %c0_3 = arith.constant 0 : index
    %c0_4 = arith.constant 0 : index
    %2 = vector.load %arg3[%c0_2, %c0_3, %c0_4] : memref<1x1x128xf32, #tpu.memory_space<vmem>>, vector<1x1x128xf32>
    %3 = vector.broadcast %2 : vector<1x1x128xf32> to vector<1x64x128xf32>
    %4 = arith.mulf %1, %3 : vector<1x64x128xf32>
    %c0_5 = arith.constant 0 : index
    %c0_6 = arith.constant 0 : index
    %c0_7 = arith.constant 0 : index
    %5 = vector.load %arg4[%c0_5, %c0_6, %c0_7] : memref<1x1x128xf32, #tpu.memory_space<vmem>>, vector<1x1x128xf32>
    %6 = vector.broadcast %5 : vector<1x1x128xf32> to vector<1x64x128xf32>
    %7 = arith.addf %4, %6 : vector<1x64x128xf32>
    %c0_8 = arith.constant 0 : index
    %c0_9 = arith.constant 0 : index
    %c0_10 = arith.constant 0 : index
    %8 = vector.load %arg2[%c0_8, %c0_9, %c0_10] : memref<1x64x128xbf16, #tpu.memory_space<vmem>>, vector<1x64x128xbf16>
    %9 = arith.extf %8 : vector<1x64x128xbf16> to vector<1x64x128xf32>
    %c0_11 = arith.constant 0 : index
    %c0_12 = arith.constant 0 : index
    %c0_13 = arith.constant 0 : index
    %10 = vector.load %arg5[%c0_11, %c0_12, %c0_13] : memref<1x1x128xf32, #tpu.memory_space<vmem>>, vector<1x1x128xf32>
    %11 = vector.broadcast %10 : vector<1x1x128xf32> to vector<1x64x128xf32>
    %12 = arith.mulf %9, %11 : vector<1x64x128xf32>
    %c0_14 = arith.constant 0 : index
    %c0_15 = arith.constant 0 : index
    %c0_16 = arith.constant 0 : index
    %13 = vector.load %arg6[%c0_14, %c0_15, %c0_16] : memref<1x1x128xf32, #tpu.memory_space<vmem>>, vector<1x1x128xf32>
    %14 = vector.broadcast %13 : vector<1x1x128xf32> to vector<1x64x128xf32>
    %15 = arith.addf %12, %14 : vector<1x64x128xf32>
    %16 = arith.addf %7, %15 : vector<1x64x128xf32>
    %cst = arith.constant 0.000000e+00 : f32
    %17 = vector.broadcast %cst : f32 to vector<1x64x128xf32>
    %18 = arith.maximumf %16, %17 : vector<1x64x128xf32>
    %c0_17 = arith.constant 0 : index
    %c0_18 = arith.constant 0 : index
    %c0_19 = arith.constant 0 : index
    %19 = vector.load %arg7[%c0_17, %c0_18, %c0_19] : memref<1x64x128xf32, #tpu.memory_space<vmem>>, vector<1x64x128xf32>
    tpu.vector_store %arg7[%c0_17, %c0_18, %c0_19], %18 {strides = array<i32>} : memref<1x64x128xf32, #tpu.memory_space<vmem>>, vector<1x64x128xf32>,
    return
  }
  func.func @transform_0(%arg0: i32) -> (i32, i32, i32) {
    %c0_i32 = arith.constant 0 : i32
    %c0_i32_0 = arith.constant 0 : i32
    %c0_i32_1 = arith.constant 0 : i32
    return %arg0, %c0_i32, %c0_i32_0 : i32, i32, i32
  }
  func.func @transform_1(%arg0: i32) -> (i32, i32, i32) {
    %c0_i32 = arith.constant 0 : i32
    %c0_i32_0 = arith.constant 0 : i32
    %c0_i32_1 = arith.constant 0 : i32
    return %arg0, %c0_i32, %c0_i32_0 : i32, i32, i32
  }
  func.func @transform_2(%arg0: i32) -> (i32, i32, i32) {
    %c0_i32 = arith.constant 0 : i32
    %c0_i32_0 = arith.constant 0 : i32
    %c0_i32_1 = arith.constant 0 : i32
    %c0_i32_2 = arith.constant 0 : i32
    return %c0_i32, %c0_i32_0, %c0_i32_1 : i32, i32, i32
  }
  func.func @transform_3(%arg0: i32) -> (i32, i32, i32) {
    %c0_i32 = arith.constant 0 : i32
    %c0_i32_0 = arith.constant 0 : i32
    %c0_i32_1 = arith.constant 0 : i32
    %c0_i32_2 = arith.constant 0 : i32
    return %c0_i32, %c0_i32_0, %c0_i32_1 : i32, i32, i32
  }
  func.func @transform_4(%arg0: i32) -> (i32, i32, i32) {
    %c0_i32 = arith.constant 0 : i32
    %c0_i32_0 = arith.constant 0 : i32
    %c0_i32_1 = arith.constant 0 : i32
    %c0_i32_2 = arith.constant 0 : i32
    return %c0_i32, %c0_i32_0, %c0_i32_1 : i32, i32, i32
  }
  func.func @transform_5(%arg0: i32) -> (i32, i32, i32) {
    %c0_i32 = arith.constant 0 : i32
    %c0_i32_0 = arith.constant 0 : i32
    %c0_i32_1 = arith.constant 0 : i32
    %c0_i32_2 = arith.constant 0 : i32
    return %c0_i32, %c0_i32_0, %c0_i32_1 : i32, i32, i32
  }
  func.func @transform_6(%arg0: i32) -> (i32, i32, i32) {
    %c0_i32 = arith.constant 0 : i32
    %c0_i32_0 = arith.constant 0 : i32
    %c0_i32_1 = arith.constant 0 : i32
    return %arg0, %c0_i32, %c0_i32_0 : i32, i32, i32
  }
}

</mosaic_0001>

<bundles_post_ra>
// kernel: residual_block_forward.8
= control target key start
LH: loop header
LB: loop body
LE: loop exit
PB: predicated region body
PF: predicated region fallthrough
CT: control target
= control target key end

     0   :  { %s632_s15 = smov 0   ;;  %s663_s0 = inlined_call_operand.vmem [shape: bf16[2,1,8,8,4], index: 0, kind: input, shape index: {}]   ;;  %s664_s1 = inlined_call_operand.vmem [shape: bf16[1,1,4,128], index: 1, kind: input, shape index: {}]   ;;  %s665_s2 = inlined_call_operand.vmem [shape: bf16[2,64,128], index: 2, kind: output, shape index: {0}]   ;;  %s666_s3 = inlined_call_operand.vmem [shape: f32[2,1,128], index: 3, kind: output, shape index: {1}]   ;;  %s667_s4 = inlined_call_operand.vmem [shape: f32[2,1,128], index: 4, kind: output, shape index: {2}]  }
   0x1 LB: > { %s508_s16 = sadd.s32 4294967295, %s605_s15   ;;  %p512_p0 = scmp.ge.s32.totalorder %s605_s15, 1  ;;  %s605_s15 = sphi %s632_s15, %s15_s15  }
   0x2   : > { %p167_p1 = scmp.lt.s32.totalorder %s605_s15, 3 }
   0x4   : > { %p168_p2 = pnand %p512_p0, %p167_p1 }
   0x5   : > { %v224_v0 = vld [vmem:[%s664_s1] sm:$0x3] (!%p168_p2)  ;;  %vm258_vm0 = vcmask (!%p168_p2), 1041408   ;;  %p199_p3 = scmp.lt.s32.totalorder (!%p168_p2), %s508_s16, 1  ;;  %vm245_vm1 = vcmask (!%p168_p2), 31744  }
   0x6   : > { %171 = sbr.rel (%p168_p2) target bundleno = 262 (0x106), region = 28  ;;  %585 = vmatprep.subr.msk.bf16.mxu0 (!%p168_p2), %vm258_vm0, %v224_v0  ;;  %v260_v1 = vsel (!%p168_p2), %vm258_vm0, %v224_v0, 0  ;;  %586 = vmatprep.subr.msk.bf16.mxu1 (!%p168_p2), %vm258_vm0, %v224_v0 }
   0x7   : > { %574 = vmatpush3.bf16.msra.mxu0 (!%p168_p2), %v260_v1  ;;  %584 = vmatpush3.bf16.msra.mxu1 (!%p168_p2), %v260_v1 }
   0xd   : > { %s669_s16 = smov (!%p199_p3, %s508_s16), 1 }
   0xe   : > { %s535_s19 = sshll.u32 %s669_s16, 5  ;;  %s211_s28 = scalar_lea.vmem %s666_s3, %s669_s16 }
   0xf   : > { %s203_s22 = scalar_lea.vmem %s663_s0, %s535_s19  ;;  %s208_s25 = scalar_lea.vmem %s665_s2, %s535_s19 }
  0x10   : > { %v595_v2 = vld [vmem:[%s203_s22] sm:$0xff]   ;;  %v596_v3 = vld [vmem:[%s203_s22 + $0x8] sm:$0xff]   ;;  %v597_v4 = vld [vmem:[%s203_s22 + $0x10] sm:$0xff]   ;;  %s214_s5 = scalar_lea.vmem %s667_s4, %s669_s16 }
  0x11   : > { %575 = vmatprep.mubr.msk.bf16.mxu0 %vm245_vm1, %v595_v2  ;;  %v598_v5 = vld [vmem:[%s203_s22 + $0x18] sm:$0xff]   ;;  %579 = vmatprep.mubr.msk.bf16.mxu1 %vm245_vm1, %v597_v4 }
  0x12   : > { %576 = vmatmul.mubr.msk.bf16.vlgmr.msra.gmra.mrb[0].mxu0 %vm245_vm1, %v596_v3  ;;  %580 = vmatmul.mubr.msk.bf16.vlgmr.msra.gmra.mrb[0].mxu1 %vm245_vm1, %v598_v5 }
  0xe5   : > { %v577_v6 = vpop.f32.mrb[0].mxu0  ;;  %v581_v9 = vpop.f32.mrb[0].mxu1 }
  0xe6   : > { %v296_v7 = vpop.f32.mrb[1].mxu0  ;;  %v312_v12 = vpop.f32.mrb[1].mxu1  ;;  %v383_v20 = vmul.f32 %v577_v6, %v577_v6  ;;  %v387_v33 = vmul.f32 %v581_v9, %v581_v9 }
  0xe7   : > { %v578_v8 = vpop.f32.mrb[2].mxu0  ;;  %v381_v13 = vmul.f32 %v296_v7, %v296_v7  ;;  %v582_v17 = vpop.f32.mrb[2].mxu1  ;;  %v385_v27 = vmul.f32 %v312_v12, %v312_v12 }
  0xe8   : > { %v553_v10 = vpack.c.bf16 %v578_v8, %v577_v6  ;;  %v299_v11 = vpop.f32.mrb[3].mxu0  ;;  %v563_v18 = vpack.c.bf16 %v582_v17, %v581_v9  ;;  %v315_v19 = vpop.f32.mrb[3].mxu1  ;;  %v384_v24 = vmul.f32 %v578_v8, %v578_v8  ;;  %v388_v36 = vmul.f32 %v582_v17, %v582_v17 }
  0xe9   : > { %v548_v14 = vpack.c.bf16 %v299_v11, %v296_v7  ;;  %v367_v15 = vadd.f32 %v299_v11, %v296_v7  ;;  %v382_v16 = vmul.f32 %v299_v11, %v299_v11  ;;  %v558_v23 = vpack.c.bf16 %v315_v19, %v312_v12 }
  0xea   : > { %565 = vst [vmem:[%s208_s25 + $0x8] sm:$0xff] %v553_v10   ;;  %567 = vst [vmem:[%s208_s25 + $0x18] sm:$0xff] %v563_v18   ;;  %v386_v32 = vmul.f32 %v315_v19, %v315_v19 }
  0xeb   : > { %549 = vst [vmem:[%s208_s25] sm:$0xff] %v548_v14   ;;  %v368_v21 = vadd.f32 %v577_v6, %v367_v15  ;;  %v389_v22 = vadd.f32 %v382_v16, %v381_v13  ;;  %566 = vst [vmem:[%s208_s25 + $0x10] sm:$0xff] %v558_v23  }
  0xed   : > { %v390_v25 = vadd.f32 %v389_v22, %v383_v20  ;;  %v369_v26 = vadd.f32 %v578_v8, %v368_v21 }
  0xef   : > { %v370_v28 = vadd.f32 %v369_v26, %v312_v12  ;;  %v391_v29 = vadd.f32 %v390_v25, %v384_v24 }
  0xf1   : > { %v392_v30 = vadd.f32 %v391_v29, %v385_v27  ;;  %v371_v31 = vadd.f32 %v370_v28, %v315_v19 }
  0xf3   : > { %v372_v34 = vadd.f32 %v581_v9, %v371_v31  ;;  %v393_v35 = vadd.f32 %v392_v30, %v386_v32 }
  0xf5   : > { %v373_v37 = vadd.f32 %v582_v17, %v372_v34  ;;  %v394_v38 = vadd.f32 %v393_v35, %v387_v33 }
  0xf7   : > { %v374_v39 = vrot.slane %v373_v37, 4  ;;  %v395_v40 = vadd.f32 %v394_v38, %v388_v36 }
  0xf9   : > { %v375_v41 = vadd.f32 %v374_v39, %v373_v37  ;;  %v396_v42 = vrot.slane %v395_v40, 4 }
  0xfb   : > { %v376_v43 = vrot.slane %v375_v41, 2  ;;  %v397_v44 = vadd.f32 %v396_v42, %v395_v40 }
  0xfd   : > { %v377_v45 = vadd.f32 %v376_v43, %v375_v41  ;;  %v398_v46 = vrot.slane %v397_v44, 2 }
  0xff   : > { %v378_v47 = vrot.slane %v377_v45, 1  ;;  %v399_v48 = vadd.f32 %v398_v46, %v397_v44 }
 0x101   : > { %v379_v49 = vadd.f32 %v378_v47, %v377_v45  ;;  %v400_v50 = vrot.slane %v399_v48, 1 }
 0x103   : > { %380 = vst [vmem:[%s211_s28] sm:$0x1] %v379_v49  ;;  %v401_v51 = vadd.f32 %v400_v50, %v399_v48 }
 0x105   : > { %402 = vst [vmem:[%s214_s5] sm:$0x1] %v401_v51 }
 0x106 PF: > { %s15_s15 = sadd.s32 1, %s605_s15  }
 0x107   : > { %p12_p4 = scmp.ge.s32.totalorder %s15_s15, 4  }
 0x109   :  { %14 = sbr.rel (!%p12_p4) target bundleno = 1 (0x1), region = 82 }

// kernel: residual_block_forward.6
= control target key start
LH: loop header
LB: loop body
LE: loop exit
PB: predicated region body
PF: predicated region fallthrough
CT: control target
= control target key end

     0   :  { %s429_s12 = smov 0   ;;  %s459_s0 = inlined_call_operand.vmem [shape: bf16[2,64,128], index: 0, kind: input, shape index: {}]   ;;  %s460_s1 = inlined_call_operand.vmem [shape: f32[1,1,128], index: 1, kind: input, shape index: {}]   ;;  %s461_s2 = inlined_call_operand.vmem [shape: f32[1,1,128], index: 2, kind: input, shape index: {}]   ;;  %s462_s3 = inlined_call_operand.vmem [shape: bf16[2,64,128], index: 3, kind: output, shape index: {}]  }
   0x1 LB: > { %s320_s13 = sadd.s32 4294967295, %s407_s12   ;;  %p324_p0 = scmp.ge.s32.totalorder %s407_s12, 1  ;;  %s407_s12 = sphi %s429_s12, %s13_s12  }
   0x2   : > { %p137_p1 = scmp.lt.s32.totalorder %s407_s12, 3 }
   0x4   : > { %p138_p2 = pnand %p324_p0, %p137_p1 }
   0x5   : > { %p161_p3 = scmp.lt.s32.totalorder (!%p138_p2), %s320_s13, 1  ;;  %v329_v0 = vld [vmem:[%s460_s1] ss:$0 sm:$0xff] (!%p138_p2) }
   0x6   : > { %141 = sbr.rel (%p138_p2) target bundleno = 29 (0x1d), region = 32  ;;  %v330_v9 = vld [vmem:[%s461_s2] ss:$0 sm:$0xff] (!%p138_p2) }
   0xd   : > { %s464_s13 = smov (!%p161_p3, %s320_s13), 1 }
   0xe   : > { %s341_s14 = sshll.u32 %s464_s13, 5 }
   0xf   : > { %s165_s17 = scalar_lea.vmem %s459_s0, %s341_s14  ;;  %s170_s24 = scalar_lea.vmem %s462_s3, %s341_s14 }
  0x10   : > { %v352_v1 = vld [vmem:[%s165_s17] sm:$0xff]   ;;  %v387_v2 = vld [vmem:[%s165_s17 + $0x8] sm:$0xff]   ;;  %v388_v3 = vld [vmem:[%s165_s17 + $0x10] sm:$0xff]  }
  0x11   : > { %v353_v4 = vunpack.c.l.bf16 %v352_v1  ;;  %v354_v5 = vunpack.c.h.bf16 %v352_v1  ;;  %v357_v6 = vunpack.c.l.bf16 %v387_v2  ;;  %v358_v7 = vunpack.c.h.bf16 %v387_v2  ;;  %v389_v8 = vld [vmem:[%s165_s17 + $0x18] sm:$0xff]  }
  0x12   : > { %v361_v10 = vunpack.c.l.bf16 %v388_v3  ;;  %v362_v11 = vunpack.c.h.bf16 %v388_v3  ;;  %v365_v12 = vunpack.c.l.bf16 %v389_v8  ;;  %v366_v13 = vunpack.c.h.bf16 %v389_v8 }
  0x13   : > { %v194_v14 = vmul.f32 %v353_v4, %v329_v0  ;;  %v195_v15 = vmul.f32 %v354_v5, %v329_v0  ;;  %v196_v16 = vmul.f32 %v357_v6, %v329_v0  ;;  %v197_v17 = vmul.f32 %v358_v7, %v329_v0 }
  0x14   : > { %v198_v18 = vmul.f32 %v361_v10, %v329_v0  ;;  %v199_v19 = vmul.f32 %v362_v11, %v329_v0  ;;  %v200_v20 = vmul.f32 %v365_v12, %v329_v0  ;;  %v201_v21 = vmul.f32 %v366_v13, %v329_v0 }
  0x15   : > { %v209_v22 = vadd.f32 %v330_v9, %v194_v14  ;;  %v210_v23 = vadd.f32 %v330_v9, %v195_v15  ;;  %v211_v24 = vadd.f32 %v330_v9, %v196_v16  ;;  %v212_v25 = vadd.f32 %v330_v9, %v197_v17 }
  0x16   : > { %v213_v26 = vadd.f32 %v330_v9, %v198_v18  ;;  %v214_v27 = vadd.f32 %v330_v9, %v199_v19  ;;  %v215_v28 = vadd.f32 %v330_v9, %v200_v20  ;;  %v216_v29 = vadd.f32 %v330_v9, %v201_v21 }
  0x17   : > { %v217_v30 = vmax.f32 %v209_v22, 0.0  ;;  %v218_v31 = vmax.f32 %v210_v23, 0.0  ;;  %v219_v32 = vmax.f32 %v211_v24, 0.0  ;;  %v220_v33 = vmax.f32 %v212_v25, 0.0 }
  0x18   : > { %v221_v34 = vmax.f32 %v213_v26, 0.0  ;;  %v222_v35 = vmax.f32 %v214_v27, 0.0  ;;  %v223_v36 = vmax.f32 %v215_v28, 0.0  ;;  %v224_v37 = vmax.f32 %v216_v29, 0.0 }
  0x19   : > { %v370_v38 = vpack.c.bf16 %v218_v31, %v217_v30  ;;  %v375_v39 = vpack.c.bf16 %v220_v33, %v219_v32 }
  0x1a   : > { %v380_v40 = vpack.c.bf16 %v222_v35, %v221_v34  ;;  %v385_v41 = vpack.c.bf16 %v224_v37, %v223_v36 }
  0x1b   : > { %371 = vst [vmem:[%s170_s24] sm:$0xff] %v370_v38   ;;  %390 = vst [vmem:[%s170_s24 + $0x8] sm:$0xff] %v375_v39  }
  0x1c   : > { %391 = vst [vmem:[%s170_s24 + $0x10] sm:$0xff] %v380_v40   ;;  %392 = vst [vmem:[%s170_s24 + $0x18] sm:$0xff] %v385_v41  }
  0x1d PF: > { %s13_s12 = sadd.s32 1, %s407_s12  }
  0x1e   : > { %p10_p4 = scmp.ge.s32.totalorder %s13_s12, 4  }
  0x20   :  { %12 = sbr.rel (!%p10_p4) target bundleno = 1 (0x1), region = 62 }

// kernel: residual_block_forward.9
= control target key start
LH: loop header
LB: loop body
LE: loop exit
PB: predicated region body
PF: predicated region fallthrough
CT: control target
= control target key end

     0   :  { %s564_s21 = smov 0   ;;  %s662_s0 = inlined_call_operand.vmem [shape: bf16[2,64,128], index: 0, kind: input, shape index: {}]   ;;  %s663_s1 = inlined_call_operand.vmem [shape: bf16[2,64,128], index: 1, kind: input, shape index: {}]   ;;  %s664_s2 = inlined_call_operand.vmem [shape: f32[1,1,128], index: 2, kind: input, shape index: {}]   ;;  %s665_s3 = inlined_call_operand.vmem [shape: f32[1,1,128], index: 3, kind: input, shape index: {}]   ;;  %s666_s4 = inlined_call_operand.vmem [shape: f32[1,1,128], index: 4, kind: input, shape index: {}]   ;;  %s667_s5 = inlined_call_operand.vmem [shape: f32[1,1,128], index: 5, kind: input, shape index: {}]   ;;  %s668_s6 = inlined_call_operand.vmem [shape: f32[2,64,128], index: 6, kind: output, shape index: {}]  }
   0x1 LB: > { %s455_s22 = sadd.s32 4294967295, %s527_s21   ;;  %p459_p0 = scmp.ge.s32.totalorder %s527_s21, 1  ;;  %s527_s21 = sphi %s564_s21, %s16_s21  }
   0x2   : > { %p222_p1 = scmp.lt.s32.totalorder %s527_s21, 3 }
   0x4   : > { %p223_p2 = pnand %p459_p0, %p222_p1 }
   0x5   : > { %p257_p3 = scmp.lt.s32.totalorder (!%p223_p2), %s455_s22, 1  ;;  %v588_v0 = vld [vmem:[%s664_s2] ss:$0 sm:$0xff] (!%p223_p2) }
   0x6   : > { %226 = sbr.rel (%p223_p2) target bundleno = 39 (0x27), region = 44  ;;  %v593_v1 = vld [vmem:[%s666_s4] ss:$0 sm:$0xff] (!%p223_p2) }
   0x7   : > { %v602_v10 = vld [vmem:[%s665_s3] ss:$0 sm:$0xff] (!%p223_p2) }
   0x8   : > { %v607_v11 = vld [vmem:[%s667_s5] ss:$0 sm:$0xff] (!%p223_p2) }
   0xd   : > { %s670_s22 = smov (!%p257_p3, %s455_s22), 1 }
   0xe   : > { %s472_s23 = sshll.u32 %s670_s22, 5  ;;  %s474_s14 = sshll.u32 %s670_s22, 6 }
   0xf   : > { %s578_s26 = scalar_lea.vmem %s662_s0, %s472_s23  ;;  %s583_s29 = scalar_lea.vmem %s663_s1, %s472_s23 }
  0x10   : > { %v476_v2 = vld [vmem:[%s578_s26] sm:$0xff]   ;;  %v507_v4 = vld [vmem:[%s578_s26 + $0x8] sm:$0xff]   ;;  %v508_v24 = vld [vmem:[%s578_s26 + $0x10] sm:$0xff]   ;;  %s631_s17 = scalar_lea.vmem %s668_s6, %s474_s14 }
  0x11   : > { %v492_v3 = vld [vmem:[%s583_s29] sm:$0xff]   ;;  %v477_v5 = vunpack.c.l.bf16 %v476_v2  ;;  %v478_v7 = vunpack.c.h.bf16 %v476_v2  ;;  %v510_v9 = vld [vmem:[%s583_s29 + $0x8] sm:$0xff]   ;;  %v481_v12 = vunpack.c.l.bf16 %v507_v4  ;;  %v482_v14 = vunpack.c.h.bf16 %v507_v4  ;;  %v511_v25 = vld [vmem:[%s583_s29 + $0x10] sm:$0xff]  }
  0x12   : > { %v493_v6 = vunpack.c.l.bf16 %v492_v3  ;;  %v494_v8 = vunpack.c.h.bf16 %v492_v3  ;;  %v497_v13 = vunpack.c.l.bf16 %v510_v9  ;;  %v498_v15 = vunpack.c.h.bf16 %v510_v9  ;;  %v509_v42 = vld [vmem:[%s578_s26 + $0x18] sm:$0xff]  }
  0x13   : > { %v295_v16 = vmul.f32 %v477_v5, %v588_v0  ;;  %v296_v18 = vmul.f32 %v478_v7, %v588_v0  ;;  %v297_v20 = vmul.f32 %v481_v12, %v588_v0  ;;  %v298_v22 = vmul.f32 %v482_v14, %v588_v0  ;;  %v512_v43 = vld [vmem:[%s583_s29 + $0x18] sm:$0xff]  }
  0x14   : > { %v341_v17 = vmul.f32 %v493_v6, %v593_v1  ;;  %v342_v19 = vmul.f32 %v494_v8, %v593_v1  ;;  %v343_v21 = vmul.f32 %v497_v13, %v593_v1  ;;  %v344_v23 = vmul.f32 %v498_v15, %v593_v1 }
  0x15   : > { %v310_v26 = vadd.f32 %v602_v10, %v295_v16  ;;  %v311_v28 = vadd.f32 %v602_v10, %v296_v18  ;;  %v312_v30 = vadd.f32 %v602_v10, %v297_v20  ;;  %v313_v32 = vadd.f32 %v602_v10, %v298_v22 }
  0x16   : > { %v356_v27 = vadd.f32 %v607_v11, %v341_v17  ;;  %v357_v29 = vadd.f32 %v607_v11, %v342_v19  ;;  %v358_v31 = vadd.f32 %v607_v11, %v343_v21  ;;  %v359_v33 = vadd.f32 %v607_v11, %v344_v23 }
  0x17   : > { %v485_v36 = vunpack.c.l.bf16 %v508_v24  ;;  %v501_v37 = vunpack.c.l.bf16 %v511_v25  ;;  %v486_v40 = vunpack.c.h.bf16 %v508_v24  ;;  %v502_v41 = vunpack.c.h.bf16 %v511_v25 }
  0x18   : > { %v364_v34 = vadd.f32 %v356_v27, %v310_v26  ;;  %v365_v35 = vadd.f32 %v357_v29, %v311_v28  ;;  %v366_v38 = vadd.f32 %v358_v31, %v312_v30  ;;  %v367_v39 = vadd.f32 %v359_v33, %v313_v32 }
  0x19   : > { %v299_v46 = vmul.f32 %v485_v36, %v588_v0  ;;  %v345_v47 = vmul.f32 %v501_v37, %v593_v1  ;;  %v300_v50 = vmul.f32 %v486_v40, %v588_v0  ;;  %v346_v51 = vmul.f32 %v502_v41, %v593_v1 }
  0x1a   : > { %v372_v44 = vmax.f32 %v364_v34, 0.0  ;;  %v373_v45 = vmax.f32 %v365_v35, 0.0  ;;  %v374_v48 = vmax.f32 %v366_v38, 0.0  ;;  %v375_v49 = vmax.f32 %v367_v39, 0.0 }
  0x1b   : > { %v314_v52 = vadd.f32 %v602_v10, %v299_v46  ;;  %v360_v53 = vadd.f32 %v607_v11, %v345_v47  ;;  %v489_v54 = vunpack.c.l.bf16 %v509_v42  ;;  %v505_v55 = vunpack.c.l.bf16 %v512_v43 }
  0x1c   : > { %380 = vst [vmem:[%s631_s17] sm:$0xff] %v372_v44  ;;  %381 = vst [vmem:[%s631_s17 + $0x8] sm:$0xff] %v373_v45  ;;  %v315_v56 = vadd.f32 %v602_v10, %v300_v50  ;;  %v361_v57 = vadd.f32 %v607_v11, %v346_v51  ;;  %v490_v58 = vunpack.c.h.bf16 %v509_v42  ;;  %v506_v59 = vunpack.c.h.bf16 %v512_v43 }
  0x1d   : > { %382 = vst [vmem:[%s631_s17 + $0x10] sm:$0xff] %v374_v48  ;;  %383 = vst [vmem:[%s631_s17 + $0x18] sm:$0xff] %v375_v49  ;;  %v368_v60 = vadd.f32 %v360_v53, %v314_v52  ;;  %v301_v61 = vmul.f32 %v489_v54, %v588_v0  ;;  %v347_v62 = vmul.f32 %v505_v55, %v593_v1 }
  0x1e   : > { %v369_v63 = vadd.f32 %v361_v57, %v315_v56  ;;  %v302_v2 = vmul.f32 %v490_v58, %v588_v0  ;;  %v348_v3 = vmul.f32 %v506_v59, %v593_v1 }
  0x1f   : > { %v376_v4 = vmax.f32 %v368_v60, 0.0  ;;  %v316_v5 = vadd.f32 %v602_v10, %v301_v61  ;;  %v362_v6 = vadd.f32 %v607_v11, %v347_v62 }
  0x20   : > { %v377_v7 = vmax.f32 %v369_v63, 0.0  ;;  %v317_v8 = vadd.f32 %v602_v10, %v302_v2  ;;  %v363_v9 = vadd.f32 %v607_v11, %v348_v3 }
  0x21   : > { %384 = vst [vmem:[%s631_s17 + $0x20] sm:$0xff] %v376_v4  ;;  %v370_v12 = vadd.f32 %v362_v6, %v316_v5 }
  0x22   : > { %385 = vst [vmem:[%s631_s17 + $0x28] sm:$0xff] %v377_v7  ;;  %v371_v13 = vadd.f32 %v363_v9, %v317_v8 }
  0x23   : > { %v378_v14 = vmax.f32 %v370_v12, 0.0 }
  0x24   : > { %v379_v15 = vmax.f32 %v371_v13, 0.0 }
  0x25   : > { %386 = vst [vmem:[%s631_s17 + $0x30] sm:$0xff] %v378_v14 }
  0x26   : > { %387 = vst [vmem:[%s631_s17 + $0x38] sm:$0xff] %v379_v15 }
  0x27 PF: > { %s16_s21 = sadd.s32 1, %s527_s21  }
  0x28   : > { %p13_p4 = scmp.ge.s32.totalorder %s16_s21, 4  }
  0x2a   :  { %15 = sbr.rel (!%p13_p4) target bundleno = 1 (0x1), region = 77 }

// kernel: residual_block_forward.5
= control target key start
LH: loop header
LB: loop body
LE: loop exit
PB: predicated region body
PF: predicated region fallthrough
CT: control target
= control target key end

     0   :  { %s2267_s15 = smov 0   ;;  %s2539_s0 = inlined_call_operand.vmem [shape: bf16[2,4,9,9,4], index: 0, kind: input, shape index: {}]   ;;  %s2540_s1 = inlined_call_operand.vmem [shape: bf16[3,3,4,128], index: 1, kind: input, shape index: {}]   ;;  %s2541_s2 = inlined_call_operand.vmem [shape: bf16[2,64,128], index: 2, kind: output, shape index: {0}]   ;;  %s2542_s3 = inlined_call_operand.vmem [shape: f32[2,1,128], index: 3, kind: output, shape index: {1}]   ;;  %s2543_s4 = inlined_call_operand.vmem [shape: f32[2,1,128], index: 4, kind: output, shape index: {2}]  }
   0x1 LB: > { %s1788_s16 = sadd.s32 4294967295, %s2240_s15   ;;  %p1792_p0 = scmp.ge.s32.totalorder %s2240_s15, 1  ;;  %s2240_s15 = sphi %s2267_s15, %s15_s15  }
   0x2   : > { %p167_p1 = scmp.lt.s32.totalorder %s2240_s15, 3 }
   0x4   : > { %p168_p2 = pnand %p1792_p0, %p167_p1 }
   0x5   : > { %v1804_v0 = vld [vmem:[%s2540_s1 + $0x2] sm:$0x3] (!%p168_p2)  ;;  %vm269_vm0 = vcmask (!%p168_p2), 1041408   ;;  %v2281_v1 = vld [vmem:[%s2540_s1 + $0x8] sm:$0x3] (!%p168_p2)  ;;  %p199_p3 = scmp.lt.s32.totalorder (!%p168_p2), %s1788_s16, 1 }
   0x6   : > { %171 = sbr.rel (%p168_p2) target bundleno = 332 (0x14c), region = 28  ;;  %2191 = vmatprep.subr.msk.bf16.mxu1 (!%p168_p2), %vm269_vm0, %v1804_v0  ;;  %2195 = vmatprep.subr.msk.bf16.mxu0 (!%p168_p2), %vm269_vm0, %v2281_v1  ;;  %v271_v2 = vsel (!%p168_p2), %vm269_vm0, %v1804_v0, 0  ;;  %v2289_v3 = vsel (!%p168_p2), %vm269_vm0, %v2281_v1, 0  ;;  %v224_v4 = vld [vmem:[%s2540_s1] sm:$0x3] (!%p168_p2)  ;;  %vm256_vm1 = vcmask (!%p168_p2), 31744  }
   0x7   : > { %2036 = vmatpush3.bf16.msra.mxu1 (!%p168_p2), %v271_v2  ;;  %2076 = vmatpush3.bf16.msra.mxu0 (!%p168_p2), %v2289_v3  ;;  %v1880_v5 = vld [vmem:[%s2540_s1 + $0xa] sm:$0x3] (!%p168_p2)  ;;  %v371_v6 = vsel (!%p168_p2), %vm269_vm0, %v224_v4, 0  ;;  %v1897_v9 = vld [vmem:[%s2540_s1 + $0xc] sm:$0x3] (!%p168_p2) }
   0x8   : > { %2192 = vmatprep.subr.msk.bf16.mxu1 (!%p168_p2), %vm269_vm0, %v224_v4  ;;  %2197 = vmatprep.subr.msk.bf16.mxu0 (!%p168_p2), %vm269_vm0, %v1880_v5  ;;  %v1064_v7 = vsel (!%p168_p2), %vm269_vm0, %v1880_v5, 0  ;;  %v1821_v10 = vld [vmem:[%s2540_s1 + $0x4] sm:$0x3] (!%p168_p2)  ;;  %vm454_vm2 = vsmask.f32 (!%p168_p2), 3328  ;;  %v2326_v15 = vsel (!%p168_p2), %vm269_vm0, %v1897_v9, 0 }
   0x9   : > { %vm455_vm3 = vsmask.f32 (!%p168_p2), 7440  ;;  %v2329_v16 = vsel (!%p168_p2), %vm269_vm0, %v1821_v10, 0 }
   0xa   : > { %vm2346_vm4 = vmor (!%p168_p2), %vm454_vm2, %vm455_vm3 }
   0xd   : > { %s2547_s16 = smov (!%p199_p3, %s1788_s16), 1 }
   0xe   : > { %s2201_s25 = smul.u32 288, %s2547_s16  ;;  %s1958_s13 = sshll.u32 %s2547_s16, 5 }
   0xf   : > { %s2522_s18 = scalar_lea.vmem %s2541_s2, %s1958_s13  ;;  %s211_s21 = scalar_lea.vmem %s2542_s3, %s2547_s16 }
  0x10   : > { %s2306_s28 = scalar_lea.vmem %s2539_s0, %s2201_s25  ;;  %s214_s24 = scalar_lea.vmem %s2543_s4, %s2547_s16 }
  0x11   : > { %v2210_v8 = vld [vmem:[%s2306_s28 + $0x48] ss:$8 sps:$4 sm:$0xff]   ;;  %v2211_v11 = vld [vmem:[%s2306_s28 + $0xd8] ss:$8 sps:$4 sm:$0xff]   ;;  %v1865_v19 = vld [vmem:[%s2306_s28 + $0x94] sm:$0x1] }
  0x12   : > { %2037 = vmatprep.mubr.msk.bf16.mxu1 %vm256_vm1, %v2210_v8  ;;  %v2212_v12 = vld [vmem:[%s2306_s28 + $0x58] ss:$8 sps:$4 sm:$0xff]   ;;  %2077 = vmatprep.mubr.msk.bf16.mxu0 %vm256_vm1, %v2211_v11  ;;  %v2213_v13 = vld [vmem:[%s2306_s28 + $0xe8] ss:$8 sps:$4 sm:$0xff]   ;;  %v1867_v21 = vld [vmem:[%s2306_s28 + $0x9c] sm:$0x1] }
  0x13   : > { %2038 = vmatmul.mubr.msk.bf16.vlgmr.msra.gmra.mrb[0].mxu1 %vm256_vm1, %v2212_v12  ;;  %v2214_v14 = vld [vmem:[%s2306_s28 + $0x68] ss:$8 sps:$4 sm:$0xff]   ;;  %2078 = vmatmul.mubr.msk.bf16.vlgmr.msra.gmra.mrb[0].mxu0 %vm256_vm1, %v2213_v13  ;;  %v2215_v17 = vld [vmem:[%s2306_s28 + $0x78] ss:$8 sps:$4 sm:$0xff]   ;;  %v935_v24 = vshll.u32 %v1865_v19, 16  ;;  %v949_v27 = vshll.u32 %v1867_v21, 16 }
  0x14   : > { %2046 = vmatpush3.bf16.msra.mxu1 %v371_v6  ;;  %2086 = vmatpush3.bf16.msra.mxu0 %v1064_v7  ;;  %v1864_v18 = vld [vmem:[%s2306_s28 + $0x90] sm:$0xf]  ;;  %v1866_v20 = vld [vmem:[%s2306_s28 + $0x98] sm:$0xf]  ;;  %v1868_v28 = vld [vmem:[%s2306_s28 + $0xa0] sm:$0xf] }
  0x15   : > { %2041 = vmatprep.mubr.msk.bf16.mxu1 %vm256_vm1, %v2214_v14  ;;  %v926_v22 = vshrl.u32 %v1864_v18, 16  ;;  %v929_v23 = vshll.u32 %v1864_v18, 16  ;;  %v940_v25 = vshrl.u32 %v1866_v20, 16  ;;  %2198 = vmatprep.subr.msk.bf16.mxu0 %vm269_vm0, %v1897_v9  ;;  %v943_v26 = vshll.u32 %v1866_v20, 16  ;;  %v1869_v29 = vld [vmem:[%s2306_s28 + $0xa4] sm:$0x1] }
  0x16   : > { %2193 = vmatprep.subr.msk.bf16.mxu1 %vm269_vm0, %v1821_v10  ;;  %v937_v32 = vrot.slane %v935_v24, 5  ;;  %v1870_v34 = vld [vmem:[%s2306_s28 + $0xa8] sm:$0xf]  ;;  %v951_v36 = vrot.slane %v949_v27, 5  ;;  %v1871_v37 = vld [vmem:[%s2306_s28 + $0xac] sm:$0x1] }
  0x17   : > { %v928_v30 = vrot.slane %v926_v22, 4  ;;  %v931_v31 = vrot.slane %v929_v23, 5  ;;  %v942_v33 = vrot.slane %v940_v25, 4  ;;  %v945_v35 = vrot.slane %v943_v26, 5  ;;  %v2216_v53 = vld [vmem:[%s2306_s28] ss:$8 sps:$4 sm:$0xff]  }
  0x18   : > { %v954_v38 = vshrl.u32 %v1868_v28, 16  ;;  %v957_v39 = vshll.u32 %v1868_v28, 16  ;;  %v963_v41 = vshll.u32 %v1869_v29, 16  ;;  %v968_v42 = vshrl.u32 %v1870_v34, 16  ;;  %v2217_v59 = vld [vmem:[%s2306_s28 + $0x10] ss:$8 sps:$4 sm:$0xff]  }
  0x19   : > { %v932_v40 = vor.u32 %v931_v31, %v928_v30  ;;  %v971_v43 = vshll.u32 %v1870_v34, 16  ;;  %v946_v45 = vor.u32 %v945_v35, %v942_v33  ;;  %v977_v48 = vshll.u32 %v1871_v37, 16  ;;  %v1872_v60 = vld [vmem:[%s2306_s28 + $0xb0] sm:$0xf]  ;;  %v1873_v61 = vld [vmem:[%s2306_s28 + $0xb4] sm:$0x1] }
  0x1a   : > { %v956_v46 = vrot.slane %v954_v38, 4  ;;  %v959_v47 = vrot.slane %v957_v39, 5  ;;  %v965_v50 = vrot.slane %v963_v41, 5  ;;  %v970_v51 = vrot.slane %v968_v42, 4  ;;  %v1874_v0 = vld [vmem:[%s2306_s28 + $0xb8] sm:$0xf] }
  0x1b   : > { %2042 = vmatmul.mubr.msk.bf16.gmra.mrb[4].mxu1 %vm256_vm1, %v2215_v17  ;;  %v933_v49 = vrot.slane %v932_v40, 4  ;;  %v973_v52 = vrot.slane %v971_v43, 5  ;;  %v947_v54 = vrot.slane %v946_v45, 4  ;;  %v979_v56 = vrot.slane %v977_v48, 5  ;;  %v1875_v2 = vld [vmem:[%s2306_s28 + $0xbc] sm:$0x1] }
  0x1c   : > { %v960_v55 = vor.u32 %v959_v47, %v956_v46  ;;  %2047 = vmatprep.mubr.msk.bf16.mxu1 %vm256_vm1, %v2216_v53  ;;  %v982_v4 = vshrl.u32 %v1872_v60, 16  ;;  %v985_v7 = vshll.u32 %v1872_v60, 16  ;;  %v991_v8 = vshll.u32 %v1873_v61, 16  ;;  %v1876_v9 = vld [vmem:[%s2306_s28 + $0xc0] sm:$0xf] }
  0x1d   : > { %v938_v57 = vsel %vm2346_vm4, %v933_v49, %v937_v32  ;;  %v974_v58 = vor.u32 %v973_v52, %v970_v51  ;;  %v952_v62 = vsel %vm2346_vm4, %v947_v54, %v951_v36  ;;  %v2365_v10 = vld [vmem:[%s2540_s1 + $0x6] sm:$0x3]  ;;  %v996_v13 = vshrl.u32 %v1874_v0, 16  ;;  %v1877_v17 = vld [vmem:[%s2306_s28 + $0xc4] sm:$0x1] }
  0x1e   : > { %v961_v63 = vrot.slane %v960_v55, 4  ;;  %v1881_v5 = vcombine.low %v938_v57, %v952_v62  ;;  %v984_v12 = vrot.slane %v982_v4, 4  ;;  %v999_v14 = vshll.u32 %v1874_v0, 16  ;;  %v1878_v22 = vld [vmem:[%s2306_s28 + $0xc8] sm:$0xf] }
  0x1f   : > { %v975_v6 = vrot.slane %v974_v58, 4  ;;  %v987_v19 = vrot.slane %v985_v7, 5  ;;  %v993_v20 = vrot.slane %v991_v8, 5  ;;  %v1005_v21 = vshll.u32 %v1875_v2, 16  ;;  %v2377_v23 = vld [vmem:[%s2540_s1 + $0xe] sm:$0x3] }
  0x20   : > { %v966_v11 = vsel %vm2346_vm4, %v961_v63, %v965_v50  ;;  %2087 = vmatprep.mubr.msk.bf16.mxu0 %vm256_vm1, %v1881_v5  ;;  %v998_v25 = vrot.slane %v996_v13, 4  ;;  %v1001_v26 = vrot.slane %v999_v14, 5  ;;  %v1879_v27 = vld [vmem:[%s2306_s28 + $0xcc] sm:$0x1]  ;;  %v1010_v28 = vshrl.u32 %v1876_v9, 16 }
  0x21   : > { %v980_v18 = vsel %vm2346_vm4, %v975_v6, %v979_v56  ;;  %v988_v29 = vor.u32 %v987_v19, %v984_v12  ;;  %v1007_v30 = vrot.slane %v1005_v21, 5  ;;  %v1013_v31 = vshll.u32 %v1876_v9, 16  ;;  %v2220_v53 = vld [vmem:[%s2306_s28 + $0x8] ss:$8 sps:$4 sm:$0xff]   ;;  %v438_v54 = vld [vmem:[%s2306_s28] sm:$0xf] }
  0x22   : > { %v1882_v24 = vcombine.low %v966_v11, %v980_v18  ;;  %v1019_v32 = vshll.u32 %v1877_v17, 16  ;;  %v1002_v33 = vor.u32 %v1001_v26, %v998_v25  ;;  %v1012_v34 = vrot.slane %v1010_v28, 4  ;;  %v439_v56 = vld [vmem:[%s2306_s28 + $0x4] sm:$0x1]  ;;  %v440_v57 = vld [vmem:[%s2306_s28 + $0x8] sm:$0xf] }
  0x23   : > { %2048 = vmatmul.mubr.msk.bf16.vlgmr.msra.gmra.mrb[0].mxu1 %vm256_vm1, %v2217_v59  ;;  %v1024_v35 = vshrl.u32 %v1878_v22, 16  ;;  %v1027_v36 = vshll.u32 %v1878_v22, 16  ;;  %v989_v37 = vrot.slane %v988_v29, 4  ;;  %v1015_v38 = vrot.slane %v1013_v31, 5  ;;  %v441_v58 = vld [vmem:[%s2306_s28 + $0xc] sm:$0x1] }
  0x24   : > { %2056 = vmatpush3.bf16.msra.mxu1 %v2329_v16  ;;  %2088 = vmatmul.mubr.msk.bf16.vlgmr.msra.gmra.mrb[0].mxu0 %vm256_vm1, %v1882_v24  ;;  %v1033_v39 = vshll.u32 %v1879_v27, 16  ;;  %v2218_v16 = vld [vmem:[%s2306_s28 + $0x20] ss:$8 sps:$4 sm:$0xff]   ;;  %v1003_v40 = vrot.slane %v1002_v33, 4  ;;  %v1021_v46 = vrot.slane %v1019_v32, 5  ;;  %v458_v60 = vshrl.u32 %v438_v54, 16 }
  0x25   : > { %2194 = vmatprep.subr.msk.bf16.mxu1 %vm269_vm0, %v2365_v10  ;;  %2096 = vmatpush3.bf16.msra.mxu0 %v2326_v15  ;;  %v1026_v41 = vrot.slane %v1024_v35, 4  ;;  %v1029_v42 = vrot.slane %v1027_v36, 5  ;;  %v994_v43 = vsel %vm2346_vm4, %v989_v37, %v993_v20  ;;  %v1016_v45 = vor.u32 %v1015_v38, %v1012_v34  ;;  %v2219_v15 = vld [vmem:[%s2306_s28 + $0x30] ss:$8 sps:$4 sm:$0xff]   ;;  %v443_v6 = vld [vmem:[%s2306_s28 + $0x14] sm:$0x1] }
  0x26   : > { %2199 = vmatprep.subr.msk.bf16.mxu0 %vm269_vm0, %v2377_v23  ;;  %2051 = vmatprep.mubr.msk.bf16.mxu1 %vm256_vm1, %v2218_v16  ;;  %v1008_v47 = vsel %vm2346_vm4, %v1003_v40, %v1007_v30  ;;  %v1035_v49 = vrot.slane %v1033_v39, 5  ;;  %v461_v61 = vshll.u32 %v438_v54, 16  ;;  %v467_v62 = vshll.u32 %v439_v56, 16  ;;  %v442_v63 = vld [vmem:[%s2306_s28 + $0x10] sm:$0xf] }
  0x27   : > { %v1030_v48 = vor.u32 %v1029_v42, %v1026_v41  ;;  %v1883_v50 = vcombine.low %v994_v43, %v1008_v47  ;;  %v1017_v51 = vrot.slane %v1016_v45, 4  ;;  %v472_v2 = vshrl.u32 %v440_v57, 16  ;;  %v444_v11 = vld [vmem:[%s2306_s28 + $0x18] sm:$0xf]  ;;  %v445_v18 = vld [vmem:[%s2306_s28 + $0x1c] sm:$0x1] }
  0x28   : > { %v475_v4 = vshll.u32 %v440_v57, 16  ;;  %v481_v5 = vshll.u32 %v441_v58, 16  ;;  %v460_v7 = vrot.slane %v458_v60, 4  ;;  %v463_v8 = vrot.slane %v461_v61, 5  ;;  %v2221_v29 = vld [vmem:[%s2306_s28 + $0x18] ss:$8 sps:$4 sm:$0xff]  }
  0x29   : > { %v1031_v52 = vrot.slane %v1030_v48, 4  ;;  %2091 = vmatprep.mubr.msk.bf16.mxu0 %vm256_vm1, %v1883_v50  ;;  %v1022_v55 = vsel %vm2346_vm4, %v1017_v51, %v1021_v46  ;;  %v469_v9 = vrot.slane %v467_v62, 5  ;;  %v486_v12 = vshrl.u32 %v442_v63, 16  ;;  %v2222_v37 = vld [vmem:[%s2306_s28 + $0x28] ss:$8 sps:$4 sm:$0xff]  }
  0x2a   : > { %v474_v13 = vrot.slane %v472_v2, 4  ;;  %v477_v14 = vrot.slane %v475_v4, 5  ;;  %v483_v17 = vrot.slane %v481_v5, 5  ;;  %v489_v19 = vshll.u32 %v442_v63, 16  ;;  %v446_v40 = vld [vmem:[%s2306_s28 + $0x20] sm:$0xf] }
  0x2b   : > { %2052 = vmatmul.mubr.msk.bf16.gmra.mrb[4].mxu1 %vm256_vm1, %v2219_v15  ;;  %v1036_v59 = vsel %vm2346_vm4, %v1031_v52, %v1035_v49  ;;  %v464_v20 = vor.u32 %v463_v8, %v460_v7  ;;  %v488_v21 = vrot.slane %v486_v12, 4  ;;  %v495_v22 = vshll.u32 %v443_v6, 16  ;;  %v447_v45 = vld [vmem:[%s2306_s28 + $0x24] sm:$0x1]  ;;  %v448_v46 = vld [vmem:[%s2306_s28 + $0x28] sm:$0xf] }
  0x2c   : > { %v1884_v0 = vcombine.low %v1022_v55, %v1036_v59  ;;  %v500_v24 = vshrl.u32 %v444_v11, 16  ;;  %v478_v25 = vor.u32 %v477_v14, %v474_v13  ;;  %v491_v26 = vrot.slane %v489_v19, 5  ;;  %v449_v48 = vld [vmem:[%s2306_s28 + $0x2c] sm:$0x1]  ;;  %v450_v55 = vld [vmem:[%s2306_s28 + $0x30] sm:$0xf] }
  0x2d   : > { %v503_v27 = vshll.u32 %v444_v11, 16  ;;  %v509_v28 = vshll.u32 %v445_v18, 16  ;;  %v1302_v30 = vsel %vm269_vm0, %v2377_v23, 0  ;;  %v465_v31 = vrot.slane %v464_v20, 4  ;;  %v2424_v23 = vld [vmem:[%s2540_s1 + $0x10] sm:$0x3] }
  0x2e   : > { %2092 = vmatmul.mubr.msk.bf16.gmra.mrb[4].mxu0 %vm256_vm1, %v1884_v0  ;;  %v497_v32 = vrot.slane %v495_v22, 5  ;;  %v502_v33 = vrot.slane %v500_v24, 4  ;;  %v479_v34 = vrot.slane %v478_v25, 4  ;;  %v492_v35 = vor.u32 %v491_v26, %v488_v21  ;;  %v451_v60 = vld [vmem:[%s2306_s28 + $0x34] sm:$0x1] }
  0x2f   : > { %2097 = vmatprep.mubr.msk.bf16.mxu0 %vm256_vm1, %v2220_v53  ;;  %v505_v36 = vrot.slane %v503_v27, 5  ;;  %v470_v38 = vsel %vm2346_vm4, %v465_v31, %v469_v9  ;;  %v511_v39 = vrot.slane %v509_v28, 5  ;;  %v715_v16 = vsel %vm269_vm0, %v2365_v10, 0  ;;  %v2223_v62 = vld [vmem:[%s2306_s28 + $0x38] ss:$8 sps:$4 sm:$0xff]  }
  0x30   : > { %v484_v41 = vsel %vm2346_vm4, %v479_v34, %v483_v17  ;;  %v493_v42 = vrot.slane %v492_v35, 4  ;;  %v514_v15 = vshrl.u32 %v446_v40, 16  ;;  %v517_v49 = vshll.u32 %v446_v40, 16  ;;  %v452_v0 = vld [vmem:[%s2306_s28 + $0x38] sm:$0xf] }
  0x31   : > { %v506_v43 = vor.u32 %v505_v36, %v502_v33  ;;  %v1822_v47 = vcombine.low %v470_v38, %v484_v41  ;;  %v523_v10 = vshll.u32 %v447_v45, 16  ;;  %v528_v50 = vshrl.u32 %v448_v46, 16  ;;  %v453_v2 = vld [vmem:[%s2306_s28 + $0x3c] sm:$0x1]  ;;  %v2224_v14 = vld [vmem:[%s2306_s28 + $0x50] ss:$8 sps:$4 sm:$0xff]  }
  0x32   : > { %v498_v51 = vsel %vm2346_vm4, %v493_v42, %v497_v32  ;;  %v516_v53 = vrot.slane %v514_v15, 4  ;;  %v531_v54 = vshll.u32 %v448_v46, 16  ;;  %v519_v56 = vrot.slane %v517_v49, 5  ;;  %v2225_v35 = vld [vmem:[%s2306_s28 + $0x60] ss:$8 sps:$4 sm:$0xff]  }
  0x33   : > { %v507_v52 = vrot.slane %v506_v43, 4  ;;  %2057 = vmatprep.mubr.msk.bf16.mxu1 %vm256_vm1, %v1822_v47  ;;  %v525_v57 = vrot.slane %v523_v10, 5  ;;  %v530_v58 = vrot.slane %v528_v50, 4  ;;  %v537_v59 = vshll.u32 %v449_v48, 16  ;;  %v1924_v40 = vld [vmem:[%s2306_s28 + $0xc] sm:$0x1] }
  0x34   : > { %v533_v63 = vrot.slane %v531_v54, 5  ;;  %v542_v4 = vshrl.u32 %v450_v55, 16  ;;  %v520_v6 = vor.u32 %v519_v56, %v516_v53  ;;  %v545_v8 = vshll.u32 %v450_v55, 16  ;;  %v1925_v41 = vld [vmem:[%s2306_s28 + $0x10] sm:$0xf] }
  0x35   : > { %v512_v61 = vsel %vm2346_vm4, %v507_v52, %v511_v39  ;;  %v539_v7 = vrot.slane %v537_v59, 5  ;;  %v551_v12 = vshll.u32 %v451_v60, 16  ;;  %v556_v13 = vshrl.u32 %v452_v0, 16  ;;  %v2228_v39 = vld [vmem:[%s2306_s28 + $0x70] ss:$8 sps:$4 sm:$0xff]  }
  0x36   : > { %2098 = vmatmul.mubr.msk.bf16.vlgmr.msra.gmra.mrb[0].mxu0 %vm256_vm1, %v2221_v29  ;;  %v1823_v5 = vcombine.low %v498_v51, %v512_v61  ;;  %v534_v9 = vor.u32 %v533_v63, %v530_v58  ;;  %v544_v11 = vrot.slane %v542_v4, 4  ;;  %v521_v17 = vrot.slane %v520_v6, 4  ;;  %v1926_v42 = vld [vmem:[%s2306_s28 + $0x14] sm:$0x1]  ;;  %v1927_v48 = vld [vmem:[%s2306_s28 + $0x18] sm:$0xf] }
  0x37   : > { %2106 = vmatpush3.bf16.msra.mxu0 %v1302_v30  ;;  %2101 = vmatprep.mubr.msk.bf16.mxu0 %vm256_vm1, %v2222_v37  ;;  %v547_v18 = vrot.slane %v545_v8, 5  ;;  %v559_v19 = vshll.u32 %v452_v0, 16  ;;  %v565_v20 = vshll.u32 %v453_v2, 16  ;;  %v558_v22 = vrot.slane %v556_v13, 4  ;;  %v2226_v37 = vld [vmem:[%s2306_s28 + $0x90] ss:$8 sps:$4 sm:$0xff]  }
  0x38   : > { %2200 = vmatprep.subr.msk.bf16.mxu0 %vm269_vm0, %v2424_v23  ;;  %2058 = vmatmul.mubr.msk.bf16.vlgmr.msra.gmra.mrb[0].mxu1 %vm256_vm1, %v1823_v5  ;;  %v535_v21 = vrot.slane %v534_v9, 4  ;;  %v526_v24 = vsel %vm2346_vm4, %v521_v17, %v525_v57  ;;  %v553_v26 = vrot.slane %v551_v12, 5  ;;  %v1532_v34 = vsel %vm269_vm0, %v2424_v23, 0  ;;  %v1928_v50 = vld [vmem:[%s2306_s28 + $0x1c] sm:$0x1] }
  0x39   : > { %2066 = vmatpush3.bf16.msra.mxu1 %v715_v16  ;;  %v548_v25 = vor.u32 %v547_v18, %v544_v11  ;;  %v561_v27 = vrot.slane %v559_v19, 5  ;;  %v567_v32 = vrot.slane %v565_v20, 5  ;;  %v1923_v16 = vld [vmem:[%s2306_s28 + $0x8] sm:$0xf]  ;;  %v1403_v23 = vshll.u32 %v1924_v40, 16 }
  0x3a   : > { %2196 = vmatprep.subr.msk.bf16.mxu1 %vm269_vm0, %v2281_v1  ;;  %v540_v28 = vsel %vm2346_vm4, %v535_v21, %v539_v7  ;;  %v1394_v43 = vshrl.u32 %v1923_v16, 16  ;;  %v1397_v45 = vshll.u32 %v1923_v16, 16  ;;  %v1408_v46 = vshrl.u32 %v1925_v41, 16  ;;  %v1929_v51 = vld [vmem:[%s2306_s28 + $0x20] sm:$0xf] }
  0x3b   : > { %v1824_v29 = vcombine.low %v526_v24, %v540_v28  ;;  %v549_v30 = vrot.slane %v548_v25, 4  ;;  %v562_v31 = vor.u32 %v561_v27, %v558_v22  ;;  %v1411_v15 = vshll.u32 %v1925_v41, 16  ;;  %v2227_v52 = vld [vmem:[%s2306_s28 + $0xa0] ss:$8 sps:$4 sm:$0xff]   ;;  %v1930_v58 = vld [vmem:[%s2306_s28 + $0x24] sm:$0x1] }
  0x3c   : > { %v1417_v47 = vshll.u32 %v1926_v42, 16  ;;  %v1396_v49 = vrot.slane %v1394_v43, 4  ;;  %v1399_v10 = vrot.slane %v1397_v45, 5  ;;  %v2229_v53 = vld [vmem:[%s2306_s28 + $0x80] ss:$8 sps:$4 sm:$0xff]   ;;  %v1405_v54 = vrot.slane %v1403_v23, 5 }
  0x3d   : > { %2061 = vmatprep.mubr.msk.bf16.mxu1 %vm256_vm1, %v1824_v29  ;;  %v554_v1 = vsel %vm2346_vm4, %v549_v30, %v553_v26  ;;  %v563_v33 = vrot.slane %v562_v31, 4  ;;  %v1410_v55 = vrot.slane %v1408_v46, 4  ;;  %v1413_v56 = vrot.slane %v1411_v15, 5  ;;  %v2230_v5 = vld [vmem:[%s2306_s28 + $0xb0] ss:$8 sps:$4 sm:$0xff]  }
  0x3e   : > { %2102 = vmatmul.mubr.msk.bf16.gmra.mrb[4].mxu0 %vm256_vm1, %v2223_v62  ;;  %v1419_v57 = vrot.slane %v1417_v47, 5  ;;  %v1400_v59 = vor.u32 %v1399_v10, %v1396_v49  ;;  %v1422_v60 = vshrl.u32 %v1927_v48, 16  ;;  %v1425_v61 = vshll.u32 %v1927_v48, 16  ;;  %v1931_v17 = vld [vmem:[%s2306_s28 + $0x28] sm:$0xf] }
  0x3f   : > { %2107 = vmatprep.mubr.msk.bf16.mxu0 %vm256_vm1, %v2224_v14  ;;  %v568_v36 = vsel %vm2346_vm4, %v563_v33, %v567_v32  ;;  %v1431_v62 = vshll.u32 %v1928_v50, 16  ;;  %v1414_v63 = vor.u32 %v1413_v56, %v1410_v55  ;;  %v1436_v0 = vshrl.u32 %v1929_v51, 16  ;;  %v1932_v20 = vld [vmem:[%s2306_s28 + $0x2c] sm:$0x1]  ;;  %v1933_v21 = vld [vmem:[%s2306_s28 + $0x30] sm:$0xf] }
  0x40   : > { %v1825_v38 = vcombine.low %v554_v1, %v568_v36  ;;  %v1439_v2 = vshll.u32 %v1929_v51, 16  ;;  %v1445_v4 = vshll.u32 %v1930_v58, 16  ;;  %v1401_v6 = vrot.slane %v1400_v59, 4  ;;  %v1934_v22 = vld [vmem:[%s2306_s28 + $0x34] sm:$0x1] }
  0x41   : > { %v1424_v7 = vrot.slane %v1422_v60, 4  ;;  %v1427_v8 = vrot.slane %v1425_v61, 5  ;;  %v1433_v9 = vrot.slane %v1431_v62, 5  ;;  %v1415_v11 = vrot.slane %v1414_v63, 4  ;;  %v2231_v32 = vld [vmem:[%s2306_s28 + $0xc0] ss:$8 sps:$4 sm:$0xff]  }
  0x42   : > { %2062 = vmatmul.mubr.msk.bf16.gmra.mrb[4].mxu1 %vm256_vm1, %v1825_v38  ;;  %v1438_v12 = vrot.slane %v1436_v0, 4  ;;  %v1441_v13 = vrot.slane %v1439_v2, 5  ;;  %v1447_v14 = vrot.slane %v1445_v4, 5  ;;  %v1406_v18 = vsel %vm2346_vm4, %v1401_v6, %v1405_v54  ;;  %v1935_v36 = vld [vmem:[%s2306_s28 + $0x38] sm:$0xf] }
  0x43   : > { %2067 = vmatprep.mubr.msk.bf16.mxu1 %vm256_vm1, %v2226_v37  ;;  %v1428_v19 = vor.u32 %v1427_v8, %v1424_v7  ;;  %v1420_v24 = vsel %vm2346_vm4, %v1415_v11, %v1419_v57  ;;  %v1450_v26 = vshrl.u32 %v1931_v17, 16  ;;  %v1453_v27 = vshll.u32 %v1931_v17, 16  ;;  %v1936_v16 = vld [vmem:[%s2306_s28 + $0x3c] sm:$0x1]  ;;  %v1937_v43 = vld [vmem:[%s2306_s28 + $0x40] sm:$0xf] }
  0x44   : > { %v1442_v25 = vor.u32 %v1441_v13, %v1438_v12  ;;  %v1940_v28 = vcombine.low %v1406_v18, %v1420_v24  ;;  %v1459_v30 = vshll.u32 %v1932_v20, 16  ;;  %v1464_v31 = vshrl.u32 %v1933_v21, 16  ;;  %v1938_v45 = vld [vmem:[%s2306_s28 + $0x44] sm:$0x1]  ;;  %v2232_v15 = vld [vmem:[%s2306_s28 + $0xf8] ss:$8 sps:$4 sm:$0xff]  }
  0x45   : > { %v1429_v29 = vrot.slane %v1428_v19, 4  ;;  %v1452_v33 = vrot.slane %v1450_v26, 4  ;;  %v1478_v23 = vshrl.u32 %v1935_v36, 16  ;;  %v1481_v48 = vshll.u32 %v1935_v36, 16  ;;  %v2233_v8 = vld [vmem:[%s2306_s28 + $0x108] ss:$8 sps:$4 sm:$0xff]  }
  0x46   : > { %2108 = vmatmul.mubr.msk.bf16.vlgmr.msra.gmra.mrb[0].mxu0 %vm256_vm1, %v2225_v35  ;;  %v1443_v1 = vrot.slane %v1442_v25, 4  ;;  %v1467_v35 = vshll.u32 %v1933_v21, 16  ;;  %v1461_v37 = vrot.slane %v1459_v30, 5  ;;  %v1466_v38 = vrot.slane %v1464_v31, 4 }
  0x47   : > { %2116 = vmatpush3.bf16.msra.mxu0 %v1532_v34  ;;  %2111 = vmatprep.mubr.msk.bf16.mxu0 %vm256_vm1, %v2228_v39  ;;  %v1455_v34 = vrot.slane %v1453_v27, 5  ;;  %v1473_v39 = vshll.u32 %v1934_v22, 16  ;;  %v1487_v49 = vshll.u32 %v1936_v16, 16  ;;  %v1480_v51 = vrot.slane %v1478_v23, 4 }
  0x48   : > { %v1448_v40 = vsel %vm2346_vm4, %v1443_v1, %v1447_v14  ;;  %v1469_v42 = vrot.slane %v1467_v35, 5  ;;  %v1495_v54 = vshll.u32 %v1937_v43, 16  ;;  %v1501_v55 = vshll.u32 %v1938_v45, 16 }
  0x49   : > { %v1456_v41 = vor.u32 %v1455_v34, %v1452_v33  ;;  %v1475_v47 = vrot.slane %v1473_v39, 5  ;;  %v1489_v60 = vrot.slane %v1487_v49, 5 }
  0x4a   : > { %2068 = vmatmul.mubr.msk.bf16.vlgmr.msra.gmra.mrb[0].mxu1 %vm256_vm1, %v2227_v52  ;;  %v1470_v50 = vor.u32 %v1469_v42, %v1466_v38  ;;  %v1492_v52 = vshrl.u32 %v1937_v43, 16  ;;  %v1497_v61 = vrot.slane %v1495_v54, 5  ;;  %v1503_v4 = vrot.slane %v1501_v55, 5 }
  0x4b   : > { %2126 = vmatpush3.bf16.msra.mxu1 %v2289_v3  ;;  %2071 = vmatprep.mubr.msk.bf16.mxu1 %vm256_vm1, %v2230_v5  ;;  %v1434_v3 = vsel %vm2346_vm4, %v1429_v29, %v1433_v9  ;;  %v1457_v10 = vrot.slane %v1456_v41, 4 }
  0x4c   : > { %v1941_v46 = vcombine.low %v1434_v3, %v1448_v40  ;;  %v1471_v57 = vrot.slane %v1470_v50, 4  ;;  %v1494_v58 = vrot.slane %v1492_v52, 4 }
  0x4d   : > { %v1462_v56 = vsel %vm2346_vm4, %v1457_v10, %v1461_v37 }
  0x4e   : > { %2112 = vmatmul.mubr.msk.bf16.gmra.mrb[4].mxu0 %vm256_vm1, %v2229_v53  ;;  %v1483_v53 = vrot.slane %v1481_v48, 5  ;;  %v1476_v62 = vsel %vm2346_vm4, %v1471_v57, %v1475_v47  ;;  %v1498_v2 = vor.u32 %v1497_v61, %v1494_v58 }
  0x4f   : > { %2117 = vmatprep.mubr.msk.bf16.mxu0 %vm256_vm1, %v1940_v28  ;;  %v1942_v63 = vcombine.low %v1462_v56, %v1476_v62 }
  0x50   : > { %v1484_v59 = vor.u32 %v1483_v53, %v1480_v51  ;;  %v1499_v6 = vrot.slane %v1498_v2, 4 }
  0x52   : > { %2072 = vmatmul.mubr.msk.bf16.gmra.mrb[4].mxu1 %vm256_vm1, %v2231_v32  ;;  %v1485_v0 = vrot.slane %v1484_v59, 4  ;;  %v1504_v7 = vsel %vm2346_vm4, %v1499_v6, %v1503_v4 }
  0x53   : > { %2081 = vmatprep.mubr.msk.bf16.mxu1 %vm256_vm1, %v2232_v15 }
  0x54   : > { %v1490_v5 = vsel %vm2346_vm4, %v1485_v0, %v1489_v60 }
  0x55   : > { %v1943_v9 = vcombine.low %v1490_v5, %v1504_v7 }
  0x56   : > { %2118 = vmatmul.mubr.msk.bf16.vlgmr.msra.gmra.mrb[0].mxu0 %vm256_vm1, %v1941_v46 }
  0x57   : > { %2121 = vmatprep.mubr.msk.bf16.mxu0 %vm256_vm1, %v1942_v63 }
  0x5e   : > { %2122 = vmatmul.mubr.msk.bf16.gmra.mrb[4].mxu0 %vm256_vm1, %v1943_v9  ;;  %2082 = vmatmul.mubr.msk.bf16.vlgmr.msra.gmra.mrb[4].mxu1 %vm256_vm1, %v2233_v8 }
 0x11d   : > { %v2069_v11 = vpop.f32.mrb[0].mxu1 }
 0x11e   : > { %v751_v12 = vpop.f32.mrb[1].mxu1 }
 0x11f   : > { %v2070_v13 = vpop.f32.mrb[2].mxu1 }
 0x120   : > { %v754_v14 = vpop.f32.mrb[3].mxu1 }
 0x129   : > { %v2119_v17 = vpop.f32.mrb[0].mxu0 }
 0x12a   : > { %v2127_v18 = vadd.f32 %v2119_v17, %v2069_v11  ;;  %v1568_v19 = vpop.f32.mrb[1].mxu0 }
 0x12b   : > { %v2128_v20 = vadd.f32 %v1568_v19, %v751_v12  ;;  %v2120_v21 = vpop.f32.mrb[2].mxu0 }
 0x12c   : > { %v2129_v22 = vadd.f32 %v2120_v21, %v2070_v13  ;;  %v1571_v24 = vpop.f32.mrb[3].mxu0  ;;  %v1663_v30 = vmul.f32 %v2127_v18, %v2127_v18 }
 0x12d   : > { %v2130_v44 = vadd.f32 %v1571_v24, %v754_v14  ;;  %v1661_v26 = vmul.f32 %v2128_v20, %v2128_v20 }
 0x12e   : > { %v1975_v25 = vpack.c.bf16 %v2129_v22, %v2127_v18  ;;  %v1664_v1 = vmul.f32 %v2129_v22, %v2129_v22 }
 0x12f   : > { %v1970_v27 = vpack.c.bf16 %v2130_v44, %v2128_v20  ;;  %v1647_v28 = vadd.f32 %v2130_v44, %v2128_v20  ;;  %v1662_v29 = vmul.f32 %v2130_v44, %v2130_v44 }
 0x130   : > { %1987 = vst [vmem:[%s2522_s18 + $0x8] sm:$0xff] %v1975_v25  }
 0x131   : > { %1971 = vst [vmem:[%s2522_s18] sm:$0xff] %v1970_v27   ;;  %v1648_v31 = vadd.f32 %v2127_v18, %v1647_v28  ;;  %v1669_v32 = vadd.f32 %v1662_v29, %v1661_v26  ;;  %v2123_v34 = vpop.f32.mrb[4].mxu0  ;;  %v2083_v3 = vpop.f32.mrb[4].mxu1 }
 0x132   : > { %v1584_v36 = vpop.f32.mrb[5].mxu0  ;;  %v2131_v39 = vadd.f32 %v2123_v34, %v2083_v3  ;;  %v886_v16 = vpop.f32.mrb[5].mxu1 }
 0x133   : > { %v1670_v33 = vadd.f32 %v1669_v32, %v1663_v30  ;;  %v1649_v35 = vadd.f32 %v2129_v22, %v1648_v31  ;;  %v2124_v38 = vpop.f32.mrb[6].mxu0  ;;  %v2132_v41 = vadd.f32 %v1584_v36, %v886_v16  ;;  %v2084_v42 = vpop.f32.mrb[6].mxu1 }
 0x134   : > { %v1587_v40 = vpop.f32.mrb[7].mxu0  ;;  %v2133_v43 = vadd.f32 %v2124_v38, %v2084_v42  ;;  %v889_v45 = vpop.f32.mrb[7].mxu1  ;;  %v1667_v51 = vmul.f32 %v2131_v39, %v2131_v39 }
 0x135   : > { %v1671_v37 = vadd.f32 %v1670_v33, %v1664_v1  ;;  %v1650_v23 = vadd.f32 %v2132_v41, %v1649_v35  ;;  %v1665_v46 = vmul.f32 %v2132_v41, %v2132_v41  ;;  %v2134_v15 = vadd.f32 %v1587_v40, %v889_v45 }
 0x136   : > { %v1985_v47 = vpack.c.bf16 %v2133_v43, %v2131_v39  ;;  %v1668_v54 = vmul.f32 %v2133_v43, %v2133_v43 }
 0x137   : > { %v1672_v48 = vadd.f32 %v1671_v37, %v1665_v46  ;;  %v1980_v49 = vpack.c.bf16 %v2134_v15, %v2132_v41  ;;  %v1651_v10 = vadd.f32 %v2134_v15, %v1650_v23  ;;  %v1666_v50 = vmul.f32 %v2134_v15, %v2134_v15 }
 0x138   : > { %1989 = vst [vmem:[%s2522_s18 + $0x18] sm:$0xff] %v1985_v47  }
 0x139   : > { %1988 = vst [vmem:[%s2522_s18 + $0x10] sm:$0xff] %v1980_v49   ;;  %v1652_v52 = vadd.f32 %v2131_v39, %v1651_v10  ;;  %v1673_v53 = vadd.f32 %v1672_v48, %v1666_v50 }
 0x13b   : > { %v1653_v55 = vadd.f32 %v2133_v43, %v1652_v52  ;;  %v1674_v56 = vadd.f32 %v1673_v53, %v1667_v51 }
 0x13d   : > { %v1654_v57 = vrot.slane %v1653_v55, 4  ;;  %v1675_v58 = vadd.f32 %v1674_v56, %v1668_v54 }
 0x13f   : > { %v1655_v59 = vadd.f32 %v1654_v57, %v1653_v55  ;;  %v1676_v60 = vrot.slane %v1675_v58, 4 }
 0x141   : > { %v1656_v61 = vrot.slane %v1655_v59, 2  ;;  %v1677_v62 = vadd.f32 %v1676_v60, %v1675_v58 }
 0x143   : > { %v1657_v63 = vadd.f32 %v1656_v61, %v1655_v59  ;;  %v1678_v0 = vrot.slane %v1677_v62, 2 }
 0x145   : > { %v1658_v2 = vrot.slane %v1657_v63, 1  ;;  %v1679_v4 = vadd.f32 %v1678_v0, %v1677_v62 }
 0x147   : > { %v1659_v5 = vadd.f32 %v1658_v2, %v1657_v63  ;;  %v1680_v6 = vrot.slane %v1679_v4, 1 }
 0x149   : > { %1660 = vst [vmem:[%s211_s21] sm:$0x1] %v1659_v5  ;;  %v1681_v7 = vadd.f32 %v1680_v6, %v1679_v4 }
 0x14b   : > { %1682 = vst [vmem:[%s214_s24] sm:$0x1] %v1681_v7 }
 0x14c PF: > { %s15_s15 = sadd.s32 1, %s2240_s15  }
 0x14d   : > { %p12_p4 = scmp.ge.s32.totalorder %s15_s15, 4  }
 0x14f   :  { %14 = sbr.rel (!%p12_p4) target bundleno = 1 (0x1), region = 95 }

// kernel: residual_block_forward.7
= control target key start
LH: loop header
LB: loop body
LE: loop exit
PB: predicated region body
PF: predicated region fallthrough
CT: control target
= control target key end

     0   :  { %s3270_s15 = smov 0   ;;  %s3847_s0 = inlined_call_operand.vmem [shape: bf16[2,1,10,10,128], index: 0, kind: input, shape index: {}]   ;;  %s3848_s1 = inlined_call_operand.vmem [shape: bf16[3,3,128,128], index: 1, kind: input, shape index: {}]   ;;  %s3849_s2 = inlined_call_operand.vmem [shape: bf16[2,64,128], index: 2, kind: output, shape index: {0}]   ;;  %s3850_s3 = inlined_call_operand.vmem [shape: f32[2,1,128], index: 3, kind: output, shape index: {1}]   ;;  %s3851_s4 = inlined_call_operand.vmem [shape: f32[2,1,128], index: 4, kind: output, shape index: {2}]  }
   0x1 LB: > { %s2366_s16 = sadd.s32 4294967295, %s3243_s15   ;;  %p2370_p0 = scmp.ge.s32.totalorder %s3243_s15, 1  ;;  %s3243_s15 = sphi %s3270_s15, %s15_s15  }
   0x2   : > { %p167_p1 = scmp.lt.s32.totalorder %s3243_s15, 3 }
   0x4   : > { %p168_p2 = pnand %p2370_p0, %p167_p1 }
   0x5   : > { %v3153_v0 = vld [vmem:[%s3848_s1 + $0x40] sm:$0xff] (!%p168_p2)   ;;  %p199_p3 = scmp.lt.s32.totalorder (!%p168_p2), %s2366_s16, 1  ;;  %v3155_v2 = vld [vmem:[%s3848_s1 + $0x48] sm:$0xff] (!%p168_p2)   ;;  %v3157_v4 = vld [vmem:[%s3848_s1 + $0x50] sm:$0xff] (!%p168_p2)   ;;  %vm248_vm0 = vsmask.f32 (!%p168_p2), 3328 }
   0x6   : > { %171 = sbr.rel (%p168_p2) target bundleno = 418 (0x1a2), region = 28  ;;  %v3154_v1 = vld [vmem:[%s3848_s1 + $0x100] sm:$0xff] (!%p168_p2)   ;;  %2848 = vmatprep.subr.bf16.mxu1 (!%p168_p2), %v3153_v0  ;;  %v3156_v3 = vld [vmem:[%s3848_s1 + $0x108] sm:$0xff] (!%p168_p2)   ;;  %v3158_v5 = vld [vmem:[%s3848_s1 + $0x110] sm:$0xff] (!%p168_p2)   ;;  %vm249_vm1 = vsmask.f32 (!%p168_p2), 7440 }
   0x7   : > { %2944 = vmatprep.subr.bf16.mxu0 (!%p168_p2), %v3154_v1  ;;  %2849 = vmatpush3.bf16.msra.mxu1 (!%p168_p2), %v3153_v0  ;;  %v3159_v6 = vld [vmem:[%s3848_s1 + $0x58] sm:$0xff] (!%p168_p2)   ;;  %v3161_v8 = vld [vmem:[%s3848_s1 + $0x60] sm:$0xff] (!%p168_p2)   ;;  %v3163_v10 = vld [vmem:[%s3848_s1 + $0x68] sm:$0xff] (!%p168_p2)   ;;  %vm670_vm3 = vcmask (!%p168_p2), 1042432   ;;  %vm671_vm4 = vcmask (!%p168_p2), 1046532  }
   0x8   : > { %2945 = vmatpush3.bf16.msra.mxu0 (!%p168_p2), %v3154_v1  ;;  %2850 = vmatprep.subr.bf16.mxu1 (!%p168_p2), %v3155_v2  ;;  %v3160_v7 = vld [vmem:[%s3848_s1 + $0x118] sm:$0xff] (!%p168_p2)   ;;  %v3162_v9 = vld [vmem:[%s3848_s1 + $0x120] sm:$0xff] (!%p168_p2)   ;;  %v3164_v14 = vld [vmem:[%s3848_s1 + $0x128] sm:$0xff] (!%p168_p2)  }
   0x9   : > { %2946 = vmatprep.subr.bf16.mxu0 (!%p168_p2), %v3156_v3  ;;  %v3165_v22 = vld [vmem:[%s3848_s1 + $0x70] sm:$0xff] (!%p168_p2)   ;;  %v3167_v37 = vld [vmem:[%s3848_s1 + $0x78] sm:$0xff] (!%p168_p2)   ;;  %vm3359_vm2 = vmor (!%p168_p2), %vm248_vm0, %vm249_vm1 }
   0xa   : > { %v3166_v23 = vld [vmem:[%s3848_s1 + $0x130] sm:$0xff] (!%p168_p2)   ;;  %v3168_v47 = vld [vmem:[%s3848_s1 + $0x138] sm:$0xff] (!%p168_p2)   ;;  %v3169_v63 = vld [vmem:[%s3848_s1] sm:$0xff] (!%p168_p2)  }
   0xb   : > { %2851 = vmatpush3.bf16.msra.mxu1 (!%p168_p2), %v3155_v2  ;;  %v3391_v1 = vld [vmem:[%s3848_s1 + $0x140] sm:$0xff] (!%p168_p2)   ;;  %vm3533_vm5 = vmor (!%p168_p2), %vm670_vm3, %vm671_vm4 }
   0xc   : > { %2947 = vmatpush3.bf16.msra.mxu0 (!%p168_p2), %v3156_v3  ;;  %2852 = vmatprep.subr.bf16.mxu1 (!%p168_p2), %v3157_v4  ;;  %v3233_v38 = vld [vmem:[%s3848_s1 + $0x220] sm:$0xff] (!%p168_p2)  }
   0xd   : > { %s3857_s16 = smov (!%p199_p3, %s2366_s16), 1  ;;  %2948 = vmatprep.subr.bf16.mxu0 %v3158_v5 }
   0xe   : > { %s3144_s7 = smul.u32 80, %s3857_s16  ;;  %s211_s5 = scalar_lea.vmem %s3850_s3, %s3857_s16 }
   0xf   : > { %2853 = vmatpush3.bf16.msra.mxu1 %v3157_v4  ;;  %s214_s8 = scalar_lea.vmem %s3851_s4, %s3857_s16 }
  0x10   : > { %2949 = vmatpush3.bf16.msra.mxu0 %v3158_v5  ;;  %2854 = vmatprep.subr.bf16.mxu1 %v3159_v6  ;;  %s3314_s14 = scalar_lea.vmem %s3847_s0, %s3144_s7 }
  0x11   : > { %2950 = vmatprep.subr.bf16.mxu0 %v3160_v7  ;;  %v3320_v11 = vld [vmem:[%s3314_s14] sm:$0xf]  ;;  %v3323_v12 = vld [vmem:[%s3314_s14 + $0x8] sm:$0xf]  ;;  %v3326_v13 = vld [vmem:[%s3314_s14 + $0x4] sm:$0x1] }
  0x12   : > { %v3332_v15 = vld [vmem:[%s3314_s14 + $0xc] sm:$0x1]  ;;  %v252_v16 = vshrl.u32 %v3320_v11, 16  ;;  %v255_v17 = vshll.u32 %v3320_v11, 16  ;;  %v261_v18 = vshll.u32 %v3326_v13, 16  ;;  %v266_v19 = vshrl.u32 %v3323_v12, 16 }
  0x13   : > { %2855 = vmatpush3.bf16.msra.mxu1 %v3159_v6  ;;  %v269_v20 = vshll.u32 %v3323_v12, 16  ;;  %v275_v21 = vshll.u32 %v3332_v15, 16  ;;  %v2486_v30 = vld [vmem:[%s3314_s14 + $0x8] sm:$0xf]  ;;  %v3348_v31 = vld [vmem:[%s3314_s14 + $0xc] sm:$0x1] }
  0x14   : > { %2951 = vmatpush3.bf16.msra.mxu0 %v3160_v7  ;;  %2856 = vmatprep.subr.bf16.mxu1 %v3161_v8  ;;  %v254_v24 = vrot.slane %v252_v16, 4  ;;  %v257_v25 = vrot.slane %v255_v17, 5  ;;  %v263_v26 = vrot.slane %v261_v18, 5  ;;  %v268_v27 = vrot.slane %v266_v19, 4  ;;  %v2488_v33 = vld [vmem:[%s3314_s14 + $0x10] sm:$0xf] }
  0x15   : > { %2952 = vmatprep.subr.bf16.mxu0 %v3162_v9  ;;  %v271_v28 = vrot.slane %v269_v20, 5  ;;  %v277_v29 = vrot.slane %v275_v21, 5  ;;  %v3352_v34 = vld [vmem:[%s3314_s14 + $0x14] sm:$0x1]  ;;  %v1047_v35 = vshrl.u32 %v2486_v30, 16  ;;  %v1050_v36 = vshll.u32 %v2486_v30, 16 }
  0x16   : > { %v258_v32 = vor.u32 %v257_v25, %v254_v24  ;;  %v1056_v40 = vshll.u32 %v3348_v31, 16  ;;  %v1061_v41 = vshrl.u32 %v2488_v33, 16  ;;  %v1064_v42 = vshll.u32 %v2488_v33, 16  ;;  %v3369_v51 = vld [vmem:[%s3314_s14 + $0x10] sm:$0xf] }
  0x17   : > { %2857 = vmatpush3.bf16.msra.mxu1 %v3161_v8  ;;  %v272_v39 = vor.u32 %v271_v28, %v268_v27  ;;  %v1049_v44 = vrot.slane %v1047_v35, 4  ;;  %v1052_v45 = vrot.slane %v1050_v36, 5  ;;  %v1070_v46 = vshll.u32 %v3352_v34, 16  ;;  %v3374_v55 = vld [vmem:[%s3314_s14 + $0x18] sm:$0xf] }
  0x18   : > { %2953 = vmatpush3.bf16.msra.mxu0 %v3162_v9  ;;  %2858 = vmatprep.subr.bf16.mxu1 %v3163_v10  ;;  %v259_v43 = vrot.slane %v258_v32, 4  ;;  %v1063_v49 = vrot.slane %v1061_v41, 4  ;;  %v1066_v50 = vrot.slane %v1064_v42, 5  ;;  %v1058_v54 = vrot.slane %v1056_v40, 5  ;;  %v3377_v56 = vld [vmem:[%s3314_s14 + $0x14] sm:$0x1] }
  0x19   : > { %2954 = vmatprep.subr.bf16.mxu0 %v3164_v14  ;;  %v273_v48 = vrot.slane %v272_v39, 4  ;;  %v1053_v53 = vor.u32 %v1052_v45, %v1049_v44  ;;  %v1072_v59 = vrot.slane %v1070_v46, 5  ;;  %v3382_v60 = vld [vmem:[%s3314_s14 + $0x1c] sm:$0x1]  ;;  %v280_v61 = vshrl.u32 %v3369_v51, 16 }
  0x1a   : > { %v264_v52 = vsel %vm3359_vm2, %v259_v43, %v263_v26  ;;  %v1067_v58 = vor.u32 %v1066_v50, %v1063_v49  ;;  %v283_v2 = vshll.u32 %v3369_v51, 16  ;;  %v289_v3 = vshll.u32 %v3377_v56, 16  ;;  %v2490_v8 = vld [vmem:[%s3314_s14 + $0x18] sm:$0xf]  ;;  %v3402_v16 = vld [vmem:[%s3314_s14 + $0x1c] sm:$0x1] }
  0x1b   : > { %2859 = vmatpush3.bf16.msra.mxu1 %v3163_v10  ;;  %v278_v57 = vsel %vm3359_vm2, %v273_v48, %v277_v29  ;;  %v1054_v0 = vrot.slane %v1053_v53, 4  ;;  %v282_v5 = vrot.slane %v280_v61, 4  ;;  %v294_v6 = vshrl.u32 %v3374_v55, 16  ;;  %v2492_v17 = vld [vmem:[%s3314_s14 + $0x20] sm:$0xf]  ;;  %v3171_v43 = vld [vmem:[%s3848_s1 + $0x8] sm:$0xff]  }
  0x1c   : > { %2955 = vmatpush3.bf16.msra.mxu0 %v3164_v14  ;;  %2860 = vmatprep.subr.bf16.mxu1 %v3165_v22  ;;  %v2390_v62 = vcombine.low %v264_v52, %v278_v57  ;;  %v1068_v4 = vrot.slane %v1067_v58, 4  ;;  %v297_v7 = vshll.u32 %v3374_v55, 16  ;;  %v285_v10 = vrot.slane %v283_v2, 5  ;;  %v3408_v21 = vld [vmem:[%s3314_s14 + $0x24] sm:$0x1] }
  0x1d   : > { %2956 = vmatprep.subr.bf16.mxu0 %v3166_v23  ;;  %v1059_v9 = vsel %vm3359_vm2, %v1054_v0, %v1058_v54  ;;  %v303_v14 = vshll.u32 %v3382_v60, 16  ;;  %v296_v19 = vrot.slane %v294_v6, 4  ;;  %v291_v24 = vrot.slane %v289_v3, 5  ;;  %v3172_v54 = vld [vmem:[%s3848_s1 + $0x148] sm:$0xff]   ;;  %v3438_v0 = vld [vmem:[%s3314_s14 + $0x24] sm:$0x1] }
  0x1e   : > { %2864 = vmatprep.mubr.bf16.mxu1 %v2390_v62  ;;  %v1073_v18 = vsel %vm3359_vm2, %v1068_v4, %v1072_v59  ;;  %v299_v20 = vrot.slane %v297_v7, 5  ;;  %v1075_v27 = vshrl.u32 %v2490_v8, 16  ;;  %v1078_v28 = vshll.u32 %v2490_v8, 16  ;;  %v3173_v59 = vld [vmem:[%s3848_s1 + $0x10] sm:$0xff]   ;;  %v3432_v62 = vld [vmem:[%s3314_s14 + $0x20] sm:$0xf] }
  0x1f   : > { %2861 = vmatpush3.bf16.msra.mxu1 %v3165_v22  ;;  %v2518_v22 = vcombine.low %v1059_v9, %v1073_v18  ;;  %v305_v25 = vrot.slane %v303_v14, 5  ;;  %v1084_v29 = vshll.u32 %v3402_v16, 16  ;;  %v1089_v32 = vshrl.u32 %v2492_v17, 16  ;;  %v3441_v2 = vld [vmem:[%s3314_s14 + $0x2c] sm:$0x1]  ;;  %v3174_v9 = vld [vmem:[%s3848_s1 + $0x150] sm:$0xff]  }
  0x20   : > { %2957 = vmatpush3.bf16.msra.mxu0 %v3166_v23  ;;  %2862 = vmatprep.subr.bf16.mxu1 %v3167_v37  ;;  %v286_v23 = vor.u32 %v285_v10, %v282_v5  ;;  %v300_v26 = vor.u32 %v299_v20, %v296_v19  ;;  %v1092_v33 = vshll.u32 %v2492_v17, 16  ;;  %v1098_v35 = vshll.u32 %v3408_v21, 16  ;;  %v3175_v10 = vld [vmem:[%s3848_s1 + $0x18] sm:$0xff]  }
  0x21   : > { %2958 = vmatprep.subr.bf16.mxu0 %v3168_v47  ;;  %2960 = vmatprep.mubr.bf16.mxu0 %v2518_v22  ;;  %v1080_v39 = vrot.slane %v1078_v28, 5  ;;  %v1091_v41 = vrot.slane %v1089_v32, 4  ;;  %v1086_v46 = vrot.slane %v1084_v29, 5  ;;  %v1338_v57 = vrot.slane %v3348_v31, 5  ;;  %v3176_v29 = vld [vmem:[%s3848_s1 + $0x158] sm:$0xff]  }
  0x22   : > { %v287_v30 = vrot.slane %v286_v23, 4  ;;  %v301_v36 = vrot.slane %v300_v26, 4  ;;  %v1094_v42 = vrot.slane %v1092_v33, 5  ;;  %v308_v3 = vshrl.u32 %v3432_v62, 16  ;;  %v2494_v23 = vld [vmem:[%s3314_s14 + $0x28] sm:$0xf] }
  0x23   : > { %2863 = vmatpush3.bf16.msra.mxu1 %v3167_v37  ;;  %v1077_v37 = vrot.slane %v1075_v27, 4  ;;  %v311_v4 = vshll.u32 %v3432_v62, 16  ;;  %v317_v5 = vshll.u32 %v3438_v0, 16  ;;  %v331_v8 = vshll.u32 %v3441_v2, 16  ;;  %v3462_v26 = vld [vmem:[%s3314_s14 + $0x34] sm:$0x1] }
  0x24   : > { %2959 = vmatpush3.bf16.msra.mxu0 %v3168_v47  ;;  %2872 = vmatprep.subr.bf16.mxu1 %v3169_v63  ;;  %v292_v40 = vsel %vm3359_vm2, %v287_v30, %v291_v24  ;;  %v306_v44 = vsel %vm3359_vm2, %v301_v36, %v305_v25  ;;  %v1100_v47 = vrot.slane %v1098_v35, 5  ;;  %v1095_v49 = vor.u32 %v1094_v42, %v1091_v41  ;;  %v3458_v24 = vld [vmem:[%s3314_s14 + $0x2c] sm:$0x1]  ;;  %v2496_v25 = vld [vmem:[%s3314_s14 + $0x30] sm:$0xf]  ;;  %v3177_v30 = vld [vmem:[%s3848_s1 + $0x20] sm:$0xff]  }
  0x25   : > { %2968 = vmatprep.subr.bf16.mxu0 %v3391_v1  ;;  %v1081_v45 = vor.u32 %v1080_v39, %v1077_v37  ;;  %v2391_v48 = vcombine.low %v292_v40, %v306_v44  ;;  %v310_v14 = vrot.slane %v308_v3, 4  ;;  %v313_v17 = vrot.slane %v311_v4, 5 }
  0x26   : > { %v1096_v52 = vrot.slane %v1095_v49, 4  ;;  %v319_v18 = vrot.slane %v317_v5, 5  ;;  %v333_v22 = vrot.slane %v331_v8, 5  ;;  %v1103_v27 = vshrl.u32 %v2494_v23, 16  ;;  %v2498_v5 = vld [vmem:[%s3314_s14 + $0x38] sm:$0xf] }
  0x27   : > { %v1082_v50 = vrot.slane %v1081_v45, 4  ;;  %2865 = vmatmul.mubr.bf16.vlgmr.msra.gmra.mrb[0].mxu1 %v2391_v48  ;;  %v1106_v28 = vshll.u32 %v2494_v23, 16  ;;  %v1112_v33 = vshll.u32 %v3458_v24, 16  ;;  %v1117_v35 = vshrl.u32 %v2496_v25, 16 }
  0x28   : > { %2873 = vmatpush3.bf16.msra.mxu1 %v3169_v63  ;;  %v1101_v58 = vsel %vm3359_vm2, %v1096_v52, %v1100_v47  ;;  %v3435_v63 = vld [vmem:[%s3314_s14 + $0x28] sm:$0xf]  ;;  %v1120_v36 = vshll.u32 %v2496_v25, 16  ;;  %v1105_v39 = vrot.slane %v1103_v27, 4  ;;  %v1126_v41 = vshll.u32 %v3462_v26, 16 }
  0x29   : > { %v1087_v53 = vsel %vm3359_vm2, %v1082_v50, %v1086_v46  ;;  %2874 = vmatprep.subr.bf16.mxu1 %v3171_v43  ;;  %v322_v6 = vshrl.u32 %v3435_v63, 16  ;;  %v325_v7 = vshll.u32 %v3435_v63, 16  ;;  %v1108_v40 = vrot.slane %v1106_v28, 5  ;;  %v3473_v46 = vld [vmem:[%s3314_s14 + $0x30] sm:$0xf] }
  0x2a   : > { %v2519_v61 = vcombine.low %v1087_v53, %v1101_v58  ;;  %v1119_v44 = vrot.slane %v1117_v35, 4  ;;  %v1122_v45 = vrot.slane %v1120_v36, 5  ;;  %v1128_v49 = vrot.slane %v1126_v41, 5  ;;  %v3478_v50 = vld [vmem:[%s3314_s14 + $0x38] sm:$0xf] }
  0x2b   : > { %v324_v19 = vrot.slane %v322_v6, 4  ;;  %v327_v20 = vrot.slane %v325_v7, 5  ;;  %v1109_v48 = vor.u32 %v1108_v40, %v1105_v39  ;;  %v3481_v52 = vld [vmem:[%s3314_s14 + $0x34] sm:$0x1]  ;;  %v336_v53 = vshrl.u32 %v3473_v46, 16  ;;  %v3179_v6 = vld [vmem:[%s3848_s1 + $0x28] sm:$0xff]  }
  0x2c   : > { %2961 = vmatmul.mubr.bf16.vlgmr.msra.gmra.mrb[0].mxu0 %v2519_v61  ;;  %2875 = vmatpush3.bf16.msra.mxu1 %v3171_v43  ;;  %v1114_v43 = vrot.slane %v1112_v33, 5  ;;  %v3490_v61 = vld [vmem:[%s3314_s14 + $0x3c] sm:$0x1]  ;;  %v339_v3 = vshll.u32 %v3473_v46, 16  ;;  %v345_v4 = vshll.u32 %v3481_v52, 16  ;;  %v1131_v28 = vshrl.u32 %v2498_v5, 16 }
  0x2d   : > { %2969 = vmatpush3.bf16.msra.mxu0 %v3391_v1  ;;  %2876 = vmatprep.subr.bf16.mxu1 %v3173_v59  ;;  %v314_v1 = vor.u32 %v313_v17, %v310_v14  ;;  %v328_v32 = vor.u32 %v327_v20, %v324_v19  ;;  %v1110_v8 = vrot.slane %v1109_v48, 4  ;;  %v350_v14 = vshrl.u32 %v3478_v50, 16  ;;  %v3500_v17 = vld [vmem:[%s3314_s14 + $0x3c] sm:$0x1]  ;;  %v3508_v27 = vld [vmem:[%s3314_s14 + $0x44] sm:$0x1] }
  0x2e   : > { %2970 = vmatprep.subr.bf16.mxu0 %v3172_v54  ;;  %v341_v19 = vrot.slane %v339_v3, 5  ;;  %v347_v20 = vrot.slane %v345_v4, 5  ;;  %v359_v25 = vshll.u32 %v3490_v61, 16  ;;  %v1134_v36 = vshll.u32 %v2498_v5, 16 }
  0x2f   : > { %v315_v37 = vrot.slane %v314_v1, 4  ;;  %v329_v42 = vrot.slane %v328_v32, 4  ;;  %v1115_v23 = vsel %vm3359_vm2, %v1110_v8, %v1114_v43  ;;  %v352_v1 = vrot.slane %v350_v14, 4 }
  0x30   : > { %2877 = vmatpush3.bf16.msra.mxu1 %v3173_v59  ;;  %v1123_v59 = vor.u32 %v1122_v45, %v1119_v44  ;;  %v361_v40 = vrot.slane %v359_v25, 5  ;;  %v1133_v41 = vrot.slane %v1131_v28, 4  ;;  %v1136_v45 = vrot.slane %v1134_v36, 5  ;;  %v2532_v25 = vld [vmem:[%s3314_s14 + $0x18] sm:$0xe] }
  0x31   : > { %2971 = vmatpush3.bf16.msra.mxu0 %v3172_v54  ;;  %2878 = vmatprep.subr.bf16.mxu1 %v3175_v10  ;;  %v320_v47 = vsel %vm3359_vm2, %v315_v37, %v319_v18  ;;  %v3178_v54 = vld [vmem:[%s3848_s1 + $0x160] sm:$0xff]   ;;  %v334_v58 = vsel %vm3359_vm2, %v329_v42, %v333_v22  ;;  %v353_v22 = vshll.u32 %v3478_v50, 16  ;;  %v3181_v37 = vld [vmem:[%s3848_s1 + $0x30] sm:$0xff]   ;;  %v1140_v42 = vshll.u32 %v3500_v17, 16  ;;  %v3184_v28 = vld [vmem:[%s3848_s1 + $0x178] sm:$0xff]  }
  0x32   : > { %2972 = vmatprep.subr.bf16.mxu0 %v3174_v9  ;;  %v2392_v7 = vcombine.low %v320_v47, %v334_v58  ;;  %v1124_v18 = vrot.slane %v1123_v59, 4  ;;  %v1342_v47 = vrot.slane %v3352_v34, 5  ;;  %v1346_v48 = vrot.slane %v3402_v16, 5  ;;  %v3182_v58 = vld [vmem:[%s3848_s1 + $0x170] sm:$0xff]  }
  0x33   : > { %v355_v35 = vrot.slane %v353_v22, 5  ;;  %v1137_v4 = vor.u32 %v1136_v45, %v1133_v41  ;;  %v1142_v34 = vrot.slane %v1140_v42, 5  ;;  %v1350_v22 = vrot.slane %v3408_v21, 5  ;;  %v3187_v41 = vld [vmem:[%s3848_s1 + $0x180] sm:$0xff]  }
  0x34   : > { %2879 = vmatpush3.bf16.msra.mxu1 %v3175_v10  ;;  %v338_v10 = vrot.slane %v336_v53, 4  ;;  %2868 = vmatprep.mubr.bf16.mxu1 %v2392_v7  ;;  %v1129_v32 = vsel %vm3359_vm2, %v1124_v18, %v1128_v49  ;;  %v1154_v53 = vshll.u32 %v3508_v27, 16  ;;  %v2530_v7 = vld [vmem:[%s3314_s14 + $0x8] sm:$0xe]  ;;  %v2540_v36 = vrot.slane %v2532_v25, 9 }
  0x35   : > { %2973 = vmatpush3.bf16.msra.mxu0 %v3174_v9  ;;  %2880 = vmatprep.subr.bf16.mxu1 %v3177_v30  ;;  %v2500_v9 = vld [vmem:[%s3314_s14 + $0x40] sm:$0xf]  ;;  %v2520_v39 = vcombine.low %v1115_v23, %v1129_v32  ;;  %v356_v44 = vor.u32 %v355_v35, %v352_v1  ;;  %v2538_v14 = vrot.slane %v2530_v7, 9  ;;  %v1138_v18 = vrot.slane %v1137_v4, 4 }
  0x36   : > { %2974 = vmatprep.subr.bf16.mxu0 %v3176_v29  ;;  %v342_v33 = vor.u32 %v341_v19, %v338_v10  ;;  %v1148_v49 = vshll.u32 %v2500_v9, 16  ;;  %v2531_v10 = vld [vmem:[%s3314_s14 + $0x10] sm:$0xe]  ;;  %v2402_v19 = vcombine.low %v3320_v11, %v3323_v12  ;;  %v1156_v1 = vrot.slane %v1154_v53, 5  ;;  %v2533_v12 = vld [vmem:[%s3314_s14 + $0x20] sm:$0xe] }
  0x37   : > { %2964 = vmatprep.mubr.bf16.mxu0 %v2520_v39  ;;  %v357_v3 = vrot.slane %v356_v44, 4  ;;  %v1339_v32 = vsel %vm3533_vm5, %v2538_v14, %v1338_v57  ;;  %v1143_v21 = vsel %vm3359_vm2, %v1138_v18, %v1142_v34  ;;  %v3186_v35 = vld [vmem:[%s3848_s1 + $0x80] sm:$0xff]   ;;  %v1347_v42 = vsel %vm3533_vm5, %v2540_v36, %v1346_v48  ;;  %v3191_v44 = vld [vmem:[%s3848_s1 + $0x90] sm:$0xff]  }
  0x38   : > { %2881 = vmatpush3.bf16.msra.mxu1 %v3177_v30  ;;  %v3180_v30 = vld [vmem:[%s3848_s1 + $0x168] sm:$0xff]   ;;  %v343_v43 = vrot.slane %v342_v33, 4  ;;  %v1150_v16 = vrot.slane %v1148_v49, 5  ;;  %v1354_v45 = vrot.slane %v3458_v24, 5  ;;  %v1362_v53 = vrot.slane %v3500_v17, 5  ;;  %v3195_v18 = vld [vmem:[%s3848_s1 + $0xa0] sm:$0xff]  }
  0x39   : > { %2975 = vmatpush3.bf16.msra.mxu0 %v3176_v29  ;;  %2882 = vmatprep.subr.bf16.mxu1 %v3179_v6  ;;  %v1145_v29 = vshrl.u32 %v2500_v9, 16  ;;  %v1366_v24 = vrot.slane %v3508_v27, 5  ;;  %v679_v34 = vrot.slane %v3332_v15, 5  ;;  %v683_v17 = vrot.slane %v3377_v56, 5  ;;  %v647_v15 = vld [vmem:[%s3314_s14 + $0x8] sm:$0xe] }
  0x3a   : > { %2976 = vmatprep.subr.bf16.mxu0 %v3178_v54  ;;  %v348_v59 = vsel %vm3359_vm2, %v343_v43, %v347_v20  ;;  %v2539_v20 = vrot.slane %v2531_v10, 9  ;;  %v3189_v43 = vld [vmem:[%s3848_s1 + $0x88] sm:$0xff]   ;;  %v3192_v10 = vld [vmem:[%s3848_s1 + $0x190] sm:$0xff]   ;;  %v2415_v14 = vrot.slane %v647_v15, 9  ;;  %v691_v36 = vrot.slane %v3438_v0, 5  ;;  %v3205_v0 = vld [vmem:[%s3848_s1 + $0xc0] sm:$0xff]  }
  0x3b   : > { %v1147_v5 = vrot.slane %v1145_v29, 4  ;;  %v1358_v29 = vrot.slane %v3462_v26, 5  ;;  %v2405_v26 = vcombine.low %v3473_v46, %v3478_v50  ;;  %v3193_v46 = vld [vmem:[%s3848_s1 + $0x98] sm:$0xff]   ;;  %v3210_v15 = vld [vmem:[%s3848_s1 + $0x1c8] sm:$0xff]  }
  0x3c   : > { %2883 = vmatpush3.bf16.msra.mxu1 %v3179_v6  ;;  %v3183_v6 = vld [vmem:[%s3848_s1 + $0x38] sm:$0xff]   ;;  %v1343_v11 = vsel %vm3533_vm5, %v2539_v20, %v1342_v47 }
  0x3d   : > { %2977 = vmatpush3.bf16.msra.mxu0 %v3178_v54  ;;  %2884 = vmatprep.subr.bf16.mxu1 %v3181_v37  ;;  %v362_v54 = vsel %vm3359_vm2, %v357_v3, %v361_v40  ;;  %v1151_v23 = vor.u32 %v1150_v16, %v1147_v5  ;;  %v2562_v57 = vcombine.low %v1339_v32, %v1343_v11  ;;  %v646_v16 = vld [vmem:[%s3314_s14] sm:$0xe]  ;;  %v3194_v20 = vld [vmem:[%s3848_s1 + $0x198] sm:$0xff]  }
  0x3e   : > { %2978 = vmatprep.subr.bf16.mxu0 %v3180_v30  ;;  %v2393_v9 = vcombine.low %v348_v59, %v362_v54  ;;  %v2403_v40 = vcombine.low %v3369_v51, %v3374_v55  ;;  %v2404_v51 = vcombine.low %v3432_v62, %v3435_v63  ;;  %v675_v55 = vrot.slane %v3326_v13, 5  ;;  %v3190_v62 = vld [vmem:[%s3848_s1 + $0x188] sm:$0xff]   ;;  %v2535_v63 = vld [vmem:[%s3314_s14 + $0x30] sm:$0xe]  ;;  %v2537_v59 = vld [vmem:[%s3314_s14 + $0x40] sm:$0xe] }
  0x3f   : > { %v1152_v33 = vrot.slane %v1151_v23, 4  ;;  %v2534_v13 = vld [vmem:[%s3314_s14 + $0x28] sm:$0xe]  ;;  %v2543_v49 = vrot.slane %v2535_v63, 9  ;;  %v2545_v7 = vrot.slane %v2537_v59, 9  ;;  %v2414_v56 = vrot.slane %v646_v16, 9 }
  0x40   : > { %2885 = vmatpush3.bf16.msra.mxu1 %v3181_v37  ;;  %v2541_v37 = vrot.slane %v2533_v12, 9  ;;  %v2542_v48 = vrot.slane %v2534_v13, 9  ;;  %v687_v54 = vrot.slane %v3382_v60, 5  ;;  %v648_v23 = vld [vmem:[%s3314_s14 + $0x10] sm:$0xe] }
  0x41   : > { %2979 = vmatpush3.bf16.msra.mxu0 %v3180_v30  ;;  %2869 = vmatmul.mubr.bf16.gmra.mrb[4].mxu1 %v2393_v9  ;;  %v1157_v31 = vsel %vm3359_vm2, %v1152_v33, %v1156_v1  ;;  %v1359_v4 = vsel %vm3533_vm5, %v2543_v49, %v1358_v29  ;;  %v680_v9 = vsel %vm3533_vm5, %v2415_v14, %v679_v34  ;;  %v649_v60 = vld [vmem:[%s3314_s14 + $0x18] sm:$0xe]  ;;  %v2416_v25 = vrot.slane %v648_v23, 9  ;;  %v3197_v33 = vld [vmem:[%s3848_s1 + $0xa8] sm:$0xff]  }
  0x42   : > { %2980 = vmatprep.subr.bf16.mxu0 %v3182_v58  ;;  %2886 = vmatprep.subr.bf16.mxu1 %v3183_v6  ;;  %v2521_v39 = vcombine.low %v1143_v21, %v1157_v31  ;;  %v1351_v30 = vsel %vm3533_vm5, %v2541_v37, %v1350_v22  ;;  %v1355_v3 = vsel %vm3533_vm5, %v2542_v48, %v1354_v45  ;;  %v3206_v32 = vld [vmem:[%s3314_s14 + $0x10] ss:$8 sps:$4 sm:$0xff]   ;;  %v699_v29 = vrot.slane %v3481_v52, 5  ;;  %v3209_v49 = vld [vmem:[%s3848_s1 + $0xc8] sm:$0xff]  }
  0x43   : > { %2888 = vmatprep.mubr.bf16.mxu1 %v2402_v19  ;;  %v2563_v47 = vcombine.low %v1347_v42, %v1351_v30  ;;  %v2564_v27 = vcombine.low %v1355_v3, %v1359_v4  ;;  %v676_v19 = vsel %vm3533_vm5, %v2414_v56, %v675_v55  ;;  %v684_v11 = vsel %vm3533_vm5, %v2416_v25, %v683_v17  ;;  %v3200_v31 = vld [vmem:[%s3848_s1 + $0xb0] sm:$0xff]   ;;  %v3203_v37 = vld [vmem:[%s3848_s1 + $0xb8] sm:$0xff]   ;;  %v2616_v25 = vld [vmem:[%s3314_s14 + $0x28] sm:$0xf] }
  0x44   : > { %2887 = vmatpush3.bf16.msra.mxu1 %v3183_v6  ;;  %2965 = vmatmul.mubr.bf16.gmra.mrb[4].mxu0 %v2521_v39  ;;  %v1367_v6 = vsel %vm3533_vm5, %v2545_v7, %v1366_v24  ;;  %v2438_v1 = vcombine.low %v676_v19, %v680_v9  ;;  %v650_v39 = vld [vmem:[%s3314_s14 + $0x20] sm:$0xe]  ;;  %v3204_v45 = vld [vmem:[%s3848_s1 + $0x1b8] sm:$0xff]   ;;  %v3672_v24 = vld [vmem:[%s3314_s14 + $0x14] sm:$0x1] }
  0x45   : > { %2981 = vmatpush3.bf16.msra.mxu0 %v3182_v58  ;;  %2896 = vmatprep.subr.bf16.mxu1 %v3186_v35  ;;  %v2536_v58 = vld [vmem:[%s3314_s14 + $0x38] sm:$0xe]  ;;  %v2418_v42 = vrot.slane %v650_v39, 9  ;;  %v1719_v59 = vshll.u32 %v3672_v24, 16  ;;  %v3208_v7 = vld [vmem:[%s3314_s14 + $0x20] ss:$8 sps:$4 sm:$0xff]  }
  0x46   : > { %2982 = vmatprep.subr.bf16.mxu0 %v3184_v28  ;;  %2984 = vmatprep.mubr.bf16.mxu0 %v2562_v57  ;;  %v2544_v5 = vrot.slane %v2536_v58, 9  ;;  %v3198_v57 = vld [vmem:[%s3848_s1 + $0x1a8] sm:$0xff]   ;;  %v2612_v52 = vld [vmem:[%s3314_s14 + $0x18] sm:$0xf]  ;;  %v3212_v9 = vld [vmem:[%s3848_s1 + $0x1d0] sm:$0xff]  }
  0x47   : > { %v1724_v3 = vshrl.u32 %v2612_v52, 16  ;;  %v1727_v4 = vshll.u32 %v2612_v52, 16  ;;  %v3219_v56 = vld [vmem:[%s3314_s14 + $0x30] ss:$8 sps:$4 sm:$0xff]   ;;  %v3218_v52 = vld [vmem:[%s3848_s1 + $0x1e8] sm:$0xff]  }
  0x48   : > { %v1363_v50 = vsel %vm3533_vm5, %v2544_v5, %v1362_v53  ;;  %v2610_v53 = vld [vmem:[%s3314_s14 + $0x10] sm:$0xf]  ;;  %v3213_v23 = vld [vmem:[%s3848_s1 + $0xd8] sm:$0xff]  }
  0x49   : > { %2983 = vmatpush3.bf16.msra.mxu0 %v3184_v28  ;;  %2889 = vmatmul.mubr.bf16.vlgmr.msra.gmra.mrb[0].mxu1 %v2403_v40  ;;  %v2565_v22 = vcombine.low %v1363_v50, %v1367_v6  ;;  %v2417_v28 = vrot.slane %v649_v60, 9  ;;  %v651_v40 = vld [vmem:[%s3314_s14 + $0x28] sm:$0xe]  ;;  %v1713_v58 = vshll.u32 %v2610_v53, 16  ;;  %v1726_v50 = vrot.slane %v1724_v3, 4 }
  0x4a   : > { %2992 = vmatprep.subr.bf16.mxu0 %v3187_v41  ;;  %2897 = vmatpush3.bf16.msra.mxu1 %v3186_v35  ;;  %v3196_v35 = vld [vmem:[%s3848_s1 + $0x1a0] sm:$0xff]   ;;  %v2419_v30 = vrot.slane %v651_v40, 9  ;;  %v1729_v6 = vrot.slane %v1727_v4, 5 }
  0x4b   : > { %2898 = vmatprep.subr.bf16.mxu1 %v3189_v43  ;;  %2892 = vmatprep.mubr.bf16.mxu1 %v2404_v51  ;;  %v688_v12 = vsel %vm3533_vm5, %v2417_v28, %v687_v54  ;;  %v652_v51 = vld [vmem:[%s3314_s14 + $0x30] sm:$0xe]  ;;  %v1715_v16 = vrot.slane %v1713_v58, 5  ;;  %v1721_v54 = vrot.slane %v1719_v59, 5 }
  0x4c   : > { %2985 = vmatmul.mubr.bf16.vlgmr.msra.gmra.mrb[0].mxu0 %v2563_v47  ;;  %v2439_v21 = vcombine.low %v684_v11, %v688_v12  ;;  %v703_v47 = vrot.slane %v3490_v61, 5  ;;  %v2420_v63 = vrot.slane %v652_v51, 9  ;;  %v3676_v61 = vld [vmem:[%s3314_s14 + $0x1c] sm:$0x1]  ;;  %v3221_v11 = vld [vmem:[%s3314_s14 + $0x40] ss:$8 sps:$4 sm:$0xff]  }
  0x4d   : > { %2993 = vmatpush3.bf16.msra.mxu0 %v3187_v41  ;;  %2988 = vmatprep.mubr.bf16.mxu0 %v2564_v27  ;;  %v695_v41 = vrot.slane %v3441_v2, 5  ;;  %v692_v2 = vsel %vm3533_vm5, %v2418_v42, %v691_v36  ;;  %v1733_v5 = vshll.u32 %v3676_v61, 16  ;;  %v2618_v12 = vld [vmem:[%s3314_s14 + $0x30] sm:$0xf]  ;;  %v1755_v36 = vshll.u32 %v2616_v25, 16 }
  0x4e   : > { %2899 = vmatpush3.bf16.msra.mxu1 %v3189_v43  ;;  %2994 = vmatprep.subr.bf16.mxu0 %v3190_v62  ;;  %v3201_v43 = vld [vmem:[%s3848_s1 + $0x1b0] sm:$0xff]   ;;  %v700_v34 = vsel %vm3533_vm5, %v2420_v63, %v699_v29  ;;  %v1766_v40 = vshrl.u32 %v2618_v12, 16  ;;  %v3721_v51 = vld [vmem:[%s3314_s14 + $0x24] sm:$0x1] }
  0x4f   : > { %2900 = vmatprep.subr.bf16.mxu1 %v3191_v44  ;;  %v696_v55 = vsel %vm3533_vm5, %v2419_v30, %v695_v41  ;;  %v1735_v19 = vrot.slane %v1733_v5, 5  ;;  %v1769_v41 = vshll.u32 %v2618_v12, 16  ;;  %v1757_v29 = vrot.slane %v1755_v36, 5  ;;  %v2624_v5 = vld [vmem:[%s3314_s14 + $0x48] sm:$0xf]  ;;  %v3224_v12 = vld [vmem:[%s3848_s1 + $0x1f8] sm:$0xff]  }
  0x50   : > { %v2440_v13 = vcombine.low %v692_v2, %v696_v55  ;;  %v3724_v2 = vld [vmem:[%s3314_s14 + $0x2c] sm:$0x1]  ;;  %v1747_v58 = vshll.u32 %v3721_v51, 16 }
  0x51   : > { %2893 = vmatmul.mubr.bf16.gmra.mrb[4].mxu1 %v2405_v26  ;;  %2995 = vmatpush3.bf16.msra.mxu0 %v3190_v62  ;;  %v3207_v62 = vld [vmem:[%s3848_s1 + $0x1c0] sm:$0xff]   ;;  %v1710_v26 = vshrl.u32 %v2610_v53, 16  ;;  %v1771_v63 = vrot.slane %v1769_v41, 5  ;;  %v1761_v59 = vshll.u32 %v3724_v2, 16 }
  0x52   : > { %2901 = vmatpush3.bf16.msra.mxu1 %v3191_v44  ;;  %2996 = vmatprep.subr.bf16.mxu0 %v3192_v10  ;;  %v653_v44 = vld [vmem:[%s3314_s14 + $0x38] sm:$0xe]  ;;  %v2622_v53 = vld [vmem:[%s3314_s14 + $0x40] sm:$0xf] }
  0x53   : > { %2902 = vmatprep.subr.bf16.mxu1 %v3193_v46  ;;  %2912 = vmatprep.mubr.bf16.mxu1 %v2438_v1  ;;  %v2421_v48 = vrot.slane %v653_v44, 9  ;;  %v1712_v27 = vrot.slane %v1710_v26, 4  ;;  %v2614_v1 = vld [vmem:[%s3314_s14 + $0x20] sm:$0xf]  ;;  %v3220_v26 = vld [vmem:[%s3848_s1 + $0xf0] sm:$0xff]  }
  0x54   : > { %2989 = vmatmul.mubr.bf16.gmra.mrb[4].mxu0 %v2565_v22 }
  0x55   : > { %2997 = vmatpush3.bf16.msra.mxu0 %v3192_v10  ;;  %3008 = vmatprep.mubr.bf16.mxu0 %v3206_v32  ;;  %v704_v17 = vsel %vm3533_vm5, %v2421_v48, %v703_v47  ;;  %v1716_v10 = vor.u32 %v1715_v16, %v1712_v27  ;;  %v3727_v47 = vld [vmem:[%s3314_s14 + $0x34] sm:$0x1]  ;;  %v1797_v27 = vshll.u32 %v2622_v53, 16 }
  0x56   : > { %2903 = vmatpush3.bf16.msra.mxu1 %v3193_v46  ;;  %2998 = vmatprep.subr.bf16.mxu0 %v3194_v20  ;;  %v3211_v46 = vld [vmem:[%s3848_s1 + $0xd0] sm:$0xff]   ;;  %v2441_v14 = vcombine.low %v700_v34, %v704_v17  ;;  %v1775_v3 = vshll.u32 %v3727_v47, 16  ;;  %v1794_v17 = vshrl.u32 %v2622_v53, 16  ;;  %v2655_v53 = vld [vmem:[%s3314_s14 + $0x18] sm:$0xe] }
  0x57   : > { %2904 = vmatprep.subr.bf16.mxu1 %v3195_v18  ;;  %v1717_v22 = vrot.slane %v1716_v10, 4 }
  0x59   : > { %2999 = vmatpush3.bf16.msra.mxu0 %v3194_v20  ;;  %v3225_v20 = vld [vmem:[%s3314_s14 + $0x8] ss:$8 sps:$4 sm:$0xff]   ;;  %v1722_v28 = vsel %vm3359_vm2, %v1717_v22, %v1721_v54 }
  0x5a   : > { %2905 = vmatpush3.bf16.msra.mxu1 %v3195_v18  ;;  %3000 = vmatprep.subr.bf16.mxu0 %v3196_v35  ;;  %v1730_v18 = vor.u32 %v1729_v6, %v1726_v50  ;;  %v1808_v50 = vshrl.u32 %v2624_v5, 16  ;;  %v1811_v6 = vshll.u32 %v2624_v5, 16  ;;  %v2663_v5 = vrot.slane %v2655_v53, 9 }
  0x5b   : > { %2906 = vmatprep.subr.bf16.mxu1 %v3197_v33 }
  0x5c   : > { %v1731_v60 = vrot.slane %v1730_v18, 4  ;;  %v1763_v18 = vrot.slane %v1761_v59, 5  ;;  %v3230_v59 = vld [vmem:[%s3314_s14 + $0x38] ss:$8 sps:$4 sm:$0xff]  }
  0x5d   : > { %3001 = vmatpush3.bf16.msra.mxu0 %v3196_v35  ;;  %v1738_v35 = vshrl.u32 %v2614_v1, 16 }
  0x5e   : > { %2907 = vmatpush3.bf16.msra.mxu1 %v3197_v33  ;;  %3002 = vmatprep.subr.bf16.mxu0 %v3198_v57  ;;  %v1736_v32 = vsel %vm3359_vm2, %v1731_v60, %v1735_v19  ;;  %v3215_v33 = vld [vmem:[%s3848_s1 + $0xe0] sm:$0xff]   ;;  %v3754_v60 = vld [vmem:[%s3314_s14 + $0x4c] sm:$0x1] }
  0x5f   : > { %2908 = vmatprep.subr.bf16.mxu1 %v3200_v31  ;;  %v2642_v39 = vcombine.low %v1722_v28, %v1736_v32  ;;  %v1740_v55 = vrot.slane %v1738_v35, 4  ;;  %v1810_v28 = vrot.slane %v1808_v50, 4  ;;  %v1813_v32 = vrot.slane %v1811_v6, 5  ;;  %v3226_v35 = vld [vmem:[%s3314_s14 + $0x18] ss:$8 sps:$4 sm:$0xff]   ;;  %v3234_v6 = vld [vmem:[%s3848_s1 + $0x228] sm:$0xff]  }
  0x61   : > { %3003 = vmatpush3.bf16.msra.mxu0 %v3198_v57  ;;  %v1752_v57 = vshrl.u32 %v2616_v25, 16  ;;  %v1799_v25 = vrot.slane %v1797_v27, 5 }
  0x62   : > { %2909 = vmatpush3.bf16.msra.mxu1 %v3200_v31  ;;  %3004 = vmatprep.subr.bf16.mxu0 %v3201_v43  ;;  %v1741_v31 = vshll.u32 %v2614_v1, 16  ;;  %v1796_v1 = vrot.slane %v1794_v17, 4 }
  0x63   : > { %2910 = vmatprep.subr.bf16.mxu1 %v3203_v37 }
  0x64   : > { %v1743_v44 = vrot.slane %v1741_v31, 5 }
  0x65   : > { %3005 = vmatpush3.bf16.msra.mxu0 %v3201_v43  ;;  %v3216_v43 = vld [vmem:[%s3848_s1 + $0x1e0] sm:$0xff]  }
  0x66   : > { %2911 = vmatpush3.bf16.msra.mxu1 %v3203_v37  ;;  %3006 = vmatprep.subr.bf16.mxu0 %v3204_v45  ;;  %v3214_v37 = vld [vmem:[%s3848_s1 + $0x1d8] sm:$0xff]  }
  0x67   : > { %2920 = vmatprep.subr.bf16.mxu1 %v3205_v0 }
  0x69   : > { %2913 = vmatmul.mubr.bf16.vlgmr.msra.gmra.mrb[0].mxu1 %v2439_v21  ;;  %3007 = vmatpush3.bf16.msra.mxu0 %v3204_v45  ;;  %v2620_v21 = vld [vmem:[%s3314_s14 + $0x38] sm:$0xf]  ;;  %v1754_v45 = vrot.slane %v1752_v57, 4 }
  0x6a   : > { %2921 = vmatpush3.bf16.msra.mxu1 %v3205_v0  ;;  %2916 = vmatprep.mubr.bf16.mxu1 %v2440_v13  ;;  %v1780_v42 = vshrl.u32 %v2620_v21, 16  ;;  %v1783_v30 = vshll.u32 %v2620_v21, 16  ;;  %v3217_v0 = vld [vmem:[%s3848_s1 + $0xe8] sm:$0xff]   ;;  %v1768_v13 = vrot.slane %v1766_v40, 4  ;;  %v2658_v21 = vld [vmem:[%s3314_s14 + $0x30] sm:$0xe] }
  0x6b   : > { %2922 = vmatprep.subr.bf16.mxu1 %v3209_v49  ;;  %3016 = vmatprep.subr.bf16.mxu0 %v3207_v62  ;;  %v1758_v34 = vor.u32 %v1757_v29, %v1754_v45 }
  0x6c   : > { %3009 = vmatmul.mubr.bf16.vlgmr.msra.gmra.mrb[0].mxu0 %v3208_v7  ;;  %v1782_v48 = vrot.slane %v1780_v42, 4  ;;  %v1744_v7 = vor.u32 %v1743_v44, %v1740_v55  ;;  %v1772_v16 = vor.u32 %v1771_v63, %v1768_v13  ;;  %v1800_v42 = vor.u32 %v1799_v25, %v1796_v1 }
  0x6d   : > { %3017 = vmatpush3.bf16.msra.mxu0 %v3207_v62  ;;  %3012 = vmatprep.mubr.bf16.mxu0 %v3219_v56  ;;  %v3730_v62 = vld [vmem:[%s3314_s14 + $0x3c] sm:$0x1]  ;;  %v3222_v56 = vld [vmem:[%s3848_s1 + $0x1f0] sm:$0xff]   ;;  %v1759_v54 = vrot.slane %v1758_v34, 4  ;;  %v2017_v55 = vrot.slane %v3727_v47, 5  ;;  %v2009_v25 = vrot.slane %v3721_v51, 5 }
  0x6e   : > { %2923 = vmatpush3.bf16.msra.mxu1 %v3209_v49  ;;  %3018 = vmatprep.subr.bf16.mxu0 %v3210_v15  ;;  %v1785_v49 = vrot.slane %v1783_v30, 5  ;;  %v1789_v4 = vshll.u32 %v3730_v62, 16  ;;  %v1745_v10 = vrot.slane %v1744_v7, 4  ;;  %v1773_v19 = vrot.slane %v1772_v16, 4  ;;  %v3232_v16 = vld [vmem:[%s3848_s1 + $0x218] sm:$0xff]  }
  0x6f   : > { %2924 = vmatprep.subr.bf16.mxu1 %v3211_v46  ;;  %v1764_v57 = vsel %vm3359_vm2, %v1759_v54, %v1763_v18  ;;  %v1814_v30 = vor.u32 %v1813_v32, %v1810_v28  ;;  %v2021_v45 = vrot.slane %v3730_v62, 5  ;;  %v2005_v7 = vrot.slane %v3676_v61, 5 }
  0x70   : > { %v2029_v54 = vrot.slane %v3754_v60, 5  ;;  %v2013_v32 = vrot.slane %v3724_v2, 5 }
  0x71   : > { %2917 = vmatmul.mubr.bf16.gmra.mrb[4].mxu1 %v2441_v14  ;;  %3019 = vmatpush3.bf16.msra.mxu0 %v3210_v15  ;;  %v3223_v15 = vld [vmem:[%s3848_s1 + $0xf8] sm:$0xff]   ;;  %v1749_v14 = vrot.slane %v1747_v58, 5  ;;  %v3231_v58 = vld [vmem:[%s3848_s1 + $0x210] sm:$0xff]   ;;  %v2006_v61 = vsel %vm3533_vm5, %v2663_v5, %v2005_v7 }
  0x72   : > { %2925 = vmatpush3.bf16.msra.mxu1 %v3211_v46  ;;  %2936 = vmatprep.mubr.bf16.mxu1 %v3225_v20  ;;  %v1786_v46 = vor.u32 %v1785_v49, %v1782_v48  ;;  %v1777_v20 = vrot.slane %v1775_v3, 5  ;;  %v2654_v49 = vld [vmem:[%s3314_s14 + $0x10] sm:$0xe] }
  0x73   : > { %2926 = vmatprep.subr.bf16.mxu1 %v3213_v23  ;;  %3020 = vmatprep.subr.bf16.mxu0 %v3212_v9  ;;  %v1750_v31 = vsel %vm3359_vm2, %v1745_v10, %v1749_v14  ;;  %v2662_v3 = vrot.slane %v2654_v49, 9  ;;  %v2661_v10 = vld [vmem:[%s3314_s14 + $0x48] sm:$0xe] }
  0x74   : > { %3013 = vmatmul.mubr.bf16.gmra.mrb[4].mxu0 %v3221_v11  ;;  %v1787_v22 = vrot.slane %v1786_v46, 4  ;;  %v3227_v11 = vld [vmem:[%s3848_s1 + $0x200] sm:$0xff]   ;;  %v1778_v40 = vsel %vm3359_vm2, %v1773_v19, %v1777_v20  ;;  %v2643_v29 = vcombine.low %v1750_v31, %v1764_v57  ;;  %v2669_v19 = vrot.slane %v2661_v10, 9  ;;  %v3236_v20 = vld [vmem:[%s3848_s1 + $0x238] sm:$0xff]  }
  0x75   : > { %3021 = vmatpush3.bf16.msra.mxu0 %v3212_v9  ;;  %3032 = vmatprep.mubr.bf16.mxu0 %v2642_v39  ;;  %v1791_v9 = vrot.slane %v1789_v4, 5  ;;  %v3229_v39 = vld [vmem:[%s3314_s14 + $0x28] ss:$8 sps:$4 sm:$0xff]   ;;  %v2001_v4 = vrot.slane %v3672_v24, 5 }
  0x76   : > { %2927 = vmatpush3.bf16.msra.mxu1 %v3213_v23  ;;  %3022 = vmatprep.subr.bf16.mxu0 %v3214_v37  ;;  %v3751_v23 = vld [vmem:[%s3314_s14 + $0x44] sm:$0x1] }
  0x77   : > { %2928 = vmatprep.subr.bf16.mxu1 %v3215_v33  ;;  %v1803_v36 = vshll.u32 %v3751_v23, 16  ;;  %v1792_v41 = vsel %vm3359_vm2, %v1787_v22, %v1791_v9  ;;  %v2002_v24 = vsel %vm3533_vm5, %v2662_v3, %v2001_v4  ;;  %v2025_v14 = vrot.slane %v3751_v23, 5  ;;  %v2656_v22 = vld [vmem:[%s3314_s14 + $0x20] sm:$0xe]  ;;  %v2657_v9 = vld [vmem:[%s3314_s14 + $0x28] sm:$0xe] }
  0x78   : > { %v2644_v13 = vcombine.low %v1778_v40, %v1792_v41  ;;  %v2686_v50 = vcombine.low %v2002_v24, %v2006_v61  ;;  %v2030_v23 = vsel %vm3533_vm5, %v2669_v19, %v2029_v54  ;;  %v2665_v28 = vrot.slane %v2657_v9, 9 }
  0x79   : > { %3023 = vmatpush3.bf16.msra.mxu0 %v3214_v37  ;;  %v1817_v37 = vshll.u32 %v3754_v60, 16  ;;  %v1805_v63 = vrot.slane %v1803_v36, 5  ;;  %v2664_v60 = vrot.slane %v2656_v22, 9 }
  0x7a   : > { %2929 = vmatpush3.bf16.msra.mxu1 %v3215_v33  ;;  %3024 = vmatprep.subr.bf16.mxu0 %v3216_v43  ;;  %v2659_v33 = vld [vmem:[%s3314_s14 + $0x38] sm:$0xe] }
  0x7b   : > { %2930 = vmatprep.subr.bf16.mxu1 %v3217_v0  ;;  %v2667_v44 = vrot.slane %v2659_v33, 9  ;;  %v1819_v48 = vrot.slane %v1817_v37, 5 }
  0x7d   : > { %3025 = vmatpush3.bf16.msra.mxu0 %v3216_v43  ;;  %v3228_v43 = vld [vmem:[%s3848_s1 + $0x208] sm:$0xff]   ;;  %v2022_v62 = vsel %vm3533_vm5, %v2667_v44, %v2021_v45 }
  0x7e   : > { %2931 = vmatpush3.bf16.msra.mxu1 %v3217_v0  ;;  %3026 = vmatprep.subr.bf16.mxu0 %v3218_v52  ;;  %v2666_v0 = vrot.slane %v2658_v21, 9  ;;  %v2014_v21 = vsel %vm3533_vm5, %v2665_v28, %v2013_v32 }
  0x7f   : > { %2932 = vmatprep.subr.bf16.mxu1 %v3220_v26 }
  0x80   : > { %v2018_v47 = vsel %vm3533_vm5, %v2666_v0, %v2017_v55 }
  0x81   : > { %3027 = vmatpush3.bf16.msra.mxu0 %v3218_v52  ;;  %v1801_v52 = vrot.slane %v1800_v42, 4  ;;  %v2688_v34 = vcombine.low %v2018_v47, %v2022_v62 }
  0x82   : > { %2933 = vmatpush3.bf16.msra.mxu1 %v3220_v26  ;;  %3028 = vmatprep.subr.bf16.mxu0 %v3222_v56  ;;  %v1815_v26 = vrot.slane %v1814_v30, 4 }
  0x83   : > { %2934 = vmatprep.subr.bf16.mxu1 %v3223_v15  ;;  %v1806_v17 = vsel %vm3359_vm2, %v1801_v52, %v1805_v63 }
  0x84   : > { %v1820_v27 = vsel %vm3359_vm2, %v1815_v26, %v1819_v48 }
  0x85   : > { %3029 = vmatpush3.bf16.msra.mxu0 %v3222_v56  ;;  %v2645_v46 = vcombine.low %v1806_v17, %v1820_v27  ;;  %v2660_v56 = vld [vmem:[%s3314_s14 + $0x40] sm:$0xe]  ;;  %s2708_s14 = sshll.u32 %s3857_s16, 5 }
  0x86   : > { %2935 = vmatpush3.bf16.msra.mxu1 %v3223_v15  ;;  %3030 = vmatprep.subr.bf16.mxu0 %v3224_v12  ;;  %v3235_v15 = vld [vmem:[%s3848_s1 + $0x230] sm:$0xff]   ;;  %v2668_v18 = vrot.slane %v2660_v56, 9  ;;  %s208_s28 = scalar_lea.vmem %s3849_s2, %s2708_s14 }
  0x87   : > { %3064 = vmatprep.subr.bf16.mxu1 %v3227_v11 }
  0x88   : > { %v2026_v1 = vsel %vm3533_vm5, %v2668_v18, %v2025_v14 }
  0x89   : > { %2937 = vmatmul.mubr.bf16.vlgmr.msra.gmra.mrb[0].mxu1 %v3226_v35  ;;  %3031 = vmatpush3.bf16.msra.mxu0 %v3224_v12  ;;  %v2010_v12 = vsel %vm3533_vm5, %v2664_v60, %v2009_v25 }
  0x8a   : > { %3072 = vmatpush3.bf16.msra.mxu1 %v3227_v11  ;;  %2940 = vmatprep.mubr.bf16.mxu1 %v3229_v39  ;;  %v2687_v33 = vcombine.low %v2010_v12, %v2014_v21 }
  0x8b   : > { %3065 = vmatprep.subr.bf16.mxu1 %v3228_v43  ;;  %3040 = vmatprep.subr.bf16.mxu0 %v3227_v11 }
  0x8c   : > { %3033 = vmatmul.mubr.bf16.vlgmr.msra.gmra.mrb[0].mxu0 %v2643_v29 }
  0x8d   : > { %3041 = vmatpush3.bf16.msra.mxu0 %v3227_v11  ;;  %3036 = vmatprep.mubr.bf16.mxu0 %v2644_v13  ;;  %v2689_v11 = vcombine.low %v2026_v1, %v2030_v23 }
  0x8e   : > { %3073 = vmatpush3.bf16.msra.mxu1 %v3228_v43  ;;  %3042 = vmatprep.subr.bf16.mxu0 %v3228_v43 }
  0x8f   : > { %3066 = vmatprep.subr.bf16.mxu1 %v3231_v58 }
  0x91   : > { %2941 = vmatmul.mubr.bf16.gmra.mrb[4].mxu1 %v3230_v59  ;;  %3043 = vmatpush3.bf16.msra.mxu0 %v3228_v43 }
  0x92   : > { %3074 = vmatpush3.bf16.msra.mxu1 %v3231_v58  ;;  %3060 = vmatprep.mubr.bf16.mxu1 %v2688_v34 }
  0x93   : > { %3067 = vmatprep.subr.bf16.mxu1 %v3232_v16  ;;  %3044 = vmatprep.subr.bf16.mxu0 %v3231_v58 }
  0x94   : > { %3037 = vmatmul.mubr.bf16.gmra.mrb[4].mxu0 %v2645_v46 }
  0x95   : > { %3045 = vmatpush3.bf16.msra.mxu0 %v3231_v58  ;;  %3056 = vmatprep.mubr.bf16.mxu0 %v2686_v50 }
  0x96   : > { %3075 = vmatpush3.bf16.msra.mxu1 %v3232_v16  ;;  %3046 = vmatprep.subr.bf16.mxu0 %v3232_v16 }
  0x97   : > { %3068 = vmatprep.subr.bf16.mxu1 %v3233_v38 }
  0x99   : > { %3047 = vmatpush3.bf16.msra.mxu0 %v3232_v16 }
  0x9a   : > { %3076 = vmatpush3.bf16.msra.mxu1 %v3233_v38  ;;  %3048 = vmatprep.subr.bf16.mxu0 %v3233_v38 }
  0x9b   : > { %3069 = vmatprep.subr.bf16.mxu1 %v3234_v6 }
  0x9d   : > { %3049 = vmatpush3.bf16.msra.mxu0 %v3233_v38 }
  0x9e   : > { %3077 = vmatpush3.bf16.msra.mxu1 %v3234_v6  ;;  %3050 = vmatprep.subr.bf16.mxu0 %v3234_v6 }
  0x9f   : > { %3070 = vmatprep.subr.bf16.mxu1 %v3235_v15 }
  0xa1   : > { %3051 = vmatpush3.bf16.msra.mxu0 %v3234_v6 }
  0xa2   : > { %3078 = vmatpush3.bf16.msra.mxu1 %v3235_v15  ;;  %3052 = vmatprep.subr.bf16.mxu0 %v3235_v15 }
  0xa3   : > { %3071 = vmatprep.subr.bf16.mxu1 %v3236_v20 }
  0xa5   : > { %3053 = vmatpush3.bf16.msra.mxu0 %v3235_v15 }
  0xa6   : > { %3079 = vmatpush3.bf16.msra.mxu1 %v3236_v20  ;;  %3054 = vmatprep.subr.bf16.mxu0 %v3236_v20 }
  0xa9   : > { %3061 = vmatmul.mubr.bf16.vlgmr.msra.gmra.mrb[8].mxu1 %v2689_v11  ;;  %3055 = vmatpush3.bf16.msra.mxu0 %v3236_v20 }
  0xac   : > { %3057 = vmatmul.mubr.bf16.vlgmr.msra.gmra.mrb[0].mxu0 %v2687_v33 }
 0x15c   : > { %v2938_v35 = vpop.f32.mrb[0].mxu1 }
 0x15d   : > { %v991_v51 = vpop.f32.mrb[1].mxu1 }
 0x15e   : > { %v2939_v31 = vpop.f32.mrb[2].mxu1 }
 0x15f   : > { %v994_v57 = vpop.f32.mrb[3].mxu1 }
 0x164   : > { %v2942_v2 = vpop.f32.mrb[4].mxu1 }
 0x165   : > { %v1007_v36 = vpop.f32.mrb[5].mxu1 }
 0x166   : > { %v2943_v37 = vpop.f32.mrb[6].mxu1 }
 0x167   : > { %v1010_v39 = vpop.f32.mrb[7].mxu1  ;;  %v3038_v40 = vpop.f32.mrb[4].mxu0 }
 0x168   : > { %v3084_v41 = vadd.f32 %v3038_v40, %v2942_v2  ;;  %v1952_v42 = vpop.f32.mrb[5].mxu0 }
 0x169   : > { %v3086_v30 = vadd.f32 %v1952_v42, %v1007_v36  ;;  %v3039_v8 = vpop.f32.mrb[6].mxu0 }
 0x16a   : > { %v3088_v43 = vadd.f32 %v3039_v8, %v2943_v37  ;;  %v1955_v0 = vpop.f32.mrb[7].mxu0 }
 0x16b   : > { %v3090_v55 = vadd.f32 %v1955_v0, %v1010_v39 }
 0x17c   : > { %v3062_v44 = vpop.f32.mrb[8].mxu1 }
 0x17d   : > { %v3085_v45 = vadd.f32 %v3084_v41, %v3062_v44  ;;  %v2162_v29 = vpop.f32.mrb[9].mxu1 }
 0x17e   : > { %v3087_v13 = vadd.f32 %v3086_v30, %v2162_v29  ;;  %v3063_v63 = vpop.f32.mrb[10].mxu1 }
 0x17f   : > { %v3089_v48 = vadd.f32 %v3088_v43, %v3063_v63  ;;  %v2165_v49 = vpop.f32.mrb[11].mxu1  ;;  %v3058_v52 = vpop.f32.mrb[0].mxu0  ;;  %v2245_v20 = vmul.f32 %v3085_v45, %v3085_v45 }
 0x180   : > { %v3091_v53 = vadd.f32 %v3090_v55, %v2165_v49  ;;  %v3080_v47 = vadd.f32 %v3058_v52, %v2938_v35  ;;  %v2146_v62 = vpop.f32.mrb[1].mxu0  ;;  %v2243_v56 = vmul.f32 %v3087_v13, %v3087_v13 }
 0x181   : > { %v2735_v26 = vpack.c.bf16 %v3089_v48, %v3085_v45  ;;  %v3081_v59 = vadd.f32 %v2146_v62, %v991_v51  ;;  %v3059_v3 = vpop.f32.mrb[2].mxu0  ;;  %v2246_v1 = vmul.f32 %v3089_v48, %v3089_v48 }
 0x182   : > { %v2730_v58 = vpack.c.bf16 %v3091_v53, %v3087_v13  ;;  %v3082_v4 = vadd.f32 %v3059_v3, %v2939_v31  ;;  %v2149_v5 = vpop.f32.mrb[3].mxu0  ;;  %v2241_v61 = vmul.f32 %v3080_v47, %v3080_v47  ;;  %v2244_v18 = vmul.f32 %v3091_v53, %v3091_v53 }
 0x183   : > { %2739 = vst [vmem:[%s208_s28 + $0x18] sm:$0xff] %v2735_v26   ;;  %v3083_v7 = vadd.f32 %v2149_v5, %v994_v57  ;;  %v2239_v17 = vmul.f32 %v3081_v59, %v3081_v59 }
 0x184   : > { %2738 = vst [vmem:[%s208_s28 + $0x10] sm:$0xff] %v2730_v58   ;;  %v2725_v34 = vpack.c.bf16 %v3082_v4, %v3080_v47  ;;  %v2242_v50 = vmul.f32 %v3082_v4, %v3082_v4 }
 0x185   : > { %v2720_v27 = vpack.c.bf16 %v3083_v7, %v3081_v59  ;;  %v2225_v16 = vadd.f32 %v3083_v7, %v3081_v59  ;;  %v2240_v24 = vmul.f32 %v3083_v7, %v3083_v7 }
 0x186   : > { %2737 = vst [vmem:[%s208_s28 + $0x8] sm:$0xff] %v2725_v34  }
 0x187   : > { %2721 = vst [vmem:[%s208_s28] sm:$0xff] %v2720_v27   ;;  %v2226_v46 = vadd.f32 %v3080_v47, %v2225_v16  ;;  %v2247_v38 = vadd.f32 %v2240_v24, %v2239_v17 }
 0x189   : > { %v2248_v6 = vadd.f32 %v2247_v38, %v2241_v61  ;;  %v2227_v15 = vadd.f32 %v3082_v4, %v2226_v46 }
 0x18b   : > { %v2228_v10 = vadd.f32 %v3087_v13, %v2227_v15  ;;  %v2249_v14 = vadd.f32 %v2248_v6, %v2242_v50 }
 0x18d   : > { %v2229_v54 = vadd.f32 %v3091_v53, %v2228_v10  ;;  %v2250_v19 = vadd.f32 %v2249_v14, %v2243_v56 }
 0x18f   : > { %v2230_v22 = vadd.f32 %v3085_v45, %v2229_v54  ;;  %v2251_v9 = vadd.f32 %v2250_v19, %v2244_v18 }
 0x191   : > { %v2231_v23 = vadd.f32 %v3089_v48, %v2230_v22  ;;  %v2252_v60 = vadd.f32 %v2251_v9, %v2245_v20 }
 0x193   : > { %v2232_v25 = vrot.slane %v2231_v23, 4  ;;  %v2253_v28 = vadd.f32 %v2252_v60, %v2246_v1 }
 0x195   : > { %v2233_v32 = vadd.f32 %v2232_v25, %v2231_v23  ;;  %v2254_v11 = vrot.slane %v2253_v28, 4 }
 0x197   : > { %v2234_v12 = vrot.slane %v2233_v32, 2  ;;  %v2255_v21 = vadd.f32 %v2254_v11, %v2253_v28 }
 0x199   : > { %v2235_v33 = vadd.f32 %v2234_v12, %v2233_v32  ;;  %v2256_v35 = vrot.slane %v2255_v21, 2 }
 0x19b   : > { %v2236_v51 = vrot.slane %v2235_v33, 1  ;;  %v2257_v31 = vadd.f32 %v2256_v35, %v2255_v21 }
 0x19d   : > { %v2237_v57 = vadd.f32 %v2236_v51, %v2235_v33  ;;  %v2258_v2 = vrot.slane %v2257_v31, 1 }
 0x19f   : > { %2238 = vst [vmem:[%s211_s5] sm:$0x1] %v2237_v57  ;;  %v2259_v36 = vadd.f32 %v2258_v2, %v2257_v31 }
 0x1a1   : > { %2260 = vst [vmem:[%s214_s8] sm:$0x1] %v2259_v36 }
 0x1a2 PF: > { %s15_s15 = sadd.s32 1, %s3243_s15  }
 0x1a3   : > { %p12_p4 = scmp.ge.s32.totalorder %s15_s15, 4  }
 0x1a5   :  { %14 = sbr.rel (!%p12_p4) target bundleno = 1 (0x1), region = 92 }

</bundles_post_ra>
